<compile_context>
chip_gen: v6e
topology: v6e:2x2x1
jax: 0.10.0
libtpu: 0.0.40
codegen_flags: <defaults>
</compile_context>

<pallas_src>
import functools

import jax
import jax.numpy as jnp
from jax import lax
from jax.experimental import pallas as pl
from jax.experimental.pallas import tpu as pltpu

# Dimensions fixed by the module definition.
D_DENSE1 = 128
D_CAT = 248
D_PITCH = D_CAT - D_DENSE1   # 120
D_HID2 = 64
LN_EPS = 1e-5                # torch.nn.LayerNorm default
OUT_LANES = 128              # lane-dense output slab width


def _round_up(x, m):
    return (x + m - 1) // m * m


def _sublane_multiple(dtype):
    # f32 -> 8, bf16 -> 16, int8/fp8 -> 32 (vreg sublane packing)
    itemsize = jnp.dtype(dtype).itemsize
    return 8 * max(1, 4 // itemsize)


def _vmem_plan():
    """Chip-aware scoped-VMEM limit (bytes)."""
    try:
        kind = jax.devices()[0].device_kind.lower()
    except Exception:
        kind = ""
    if "v5" in kind or "v6" in kind:
        return 96 * 2**20            # 128 MiB physical VMEM parts
    return 48 * 2**20                # conservative: v7x (64 MiB) and unknown


def mos_head_kernel(x_ref, p_ref,
                    w1_ref, b1_ref,
                    gx_ref, bx_ref, gp_ref, bp_ref,
                    w2ax_ref, w2ap_ref, b2a_ref,
                    w2b_ref, b2b_ref,
                    o_ref, acc_ref,
                    *, seq_len, ts, chunk, need_mask):
    # x_ref : (TB, TS, D_ssl)  streamed tile of res['x'] (native dtype, bf16)
    # p_ref : (TB, 120)        pitch features for this batch tile
    # weights: (in, out) layout; biases / LN params as (1, width) rows.
    # acc_ref: (TB, D_ssl) f32 scratch, resident across the S grid axis.
    s = pl.program_id(1)

    @pl.when(s == 0)
    def _init():
        acc_ref[...] = jnp.zeros_like(acc_ref)

    # Streaming time-sum (1/S is folded into w1 on the host).  Chunked so the
    # f32 upcast temp is bounded at (TB, chunk, D_ssl) instead of the whole
    # tile; the S-axis tail of a partial block is masked (OOB block contents
    # are unspecified).
    n_chunks = ts // chunk

    def _accumulate(c, carry):
        off = pl.multiple_of(c * chunk, chunk)
        xt = x_ref[:, pl.ds(off, chunk), :].astype(jnp.float32)
        if need_mask:
            pos = (s * ts + off
                   + lax.broadcasted_iota(jnp.int32, (1, chunk, 1), 1))
            xt = jnp.where(pos < seq_len, xt, 0.0)
        acc_ref[...] += jnp.sum(xt, axis=1)
        return carry

    lax.fori_loop(0, n_chunks, _accumulate, 0, unroll=(n_chunks <= 4))

    @pl.when(s == pl.num_programs(1) - 1)
    def _epilogue():
        xsum = acc_ref[...]                                        # (TB, D_ssl)

        # x = self.dense1(mean_t(x))   (mean's 1/S folded into w1)
        h = jnp.dot(xsum, w1_ref[...],
                    preferred_element_type=jnp.float32) + b1_ref[...]   # (TB,128)
        p = p_ref[...].astype(jnp.float32)                         # (TB, 120)

        # LayerNorm over the virtual concat [h, p] (two-pass statistics; the
        # 248-wide concat is never built).
        mean = (jnp.sum(h, axis=-1, keepdims=True)
                + jnp.sum(p, axis=-1, keepdims=True)) * (1.0 / D_CAT)
        hc = h - mean
        pc = p - mean
        var = (jnp.sum(hc * hc, axis=-1, keepdims=True)
               + jnp.sum(pc * pc, axis=-1, keepdims=True)) * (1.0 / D_CAT)
        inv = lax.rsqrt(var + LN_EPS)
        hn = hc * inv * gx_ref[...] + bx_ref[...]                  # (TB, 128)
        pn = pc * inv * gp_ref[...] + bp_ref[...]                  # (TB, 120)

        # dense2: Linear(248, 64) split over the two concat halves, ReLU,
        # Dropout(0.3) == identity in eval mode.
        z = (jnp.dot(hn, w2ax_ref[...], preferred_element_type=jnp.float32)
             + jnp.dot(pn, w2ap_ref[...], preferred_element_type=jnp.float32)
             + b2a_ref[...])                                       # (TB, 64)
        z = jnp.maximum(z, 0.0)

        # Final Linear(64, 1): VPU multiply + lane reduction; store lane-dense
        # (score broadcast over 128 lanes) to avoid a 1-wide masked store.
        score = jnp.sum(z * w2b_ref[...], axis=-1, keepdims=True) + b2b_ref[...]
        o_ref[...] = jnp.broadcast_to(score, o_ref.shape)          # (TB, 128)


def mos_head(x_ssl, pitchs, params, *, tb=8, ts=None, vmem_limit_bytes=None):
    """MosPredictor head: mean_t -> dense1 -> LN(concat pitch) -> dense2.

    x_ssl : (B, S, D_ssl) SSL features (any float dtype, e.g. bf16)
    pitchs: (B, 120)
    returns (B,) scores.
    """
    B, S, D_ssl = x_ssl.shape
    assert pitchs.shape == (B, D_PITCH)

    itemsize = jnp.dtype(x_ssl.dtype).itemsize
    sub = _sublane_multiple(x_ssl.dtype)

    # Small, sublane-aligned batch tile: keeps padding of the streamed tensor
    # to <= 7 rows and gives >= 2 batch tiles (both v7x TensorCores) as soon
    # as B > tb.
    tb = max(8, min(_round_up(tb, 8), _round_up(B, 8)))
    b_tiles = pl.cdiv(B, tb)
    b_pad = b_tiles * tb

    if vmem_limit_bytes is None:
        vmem_limit_bytes = _vmem_plan()

    # ---- S-tile sizing under the VMEM limit ---------------------------------
    # footprint: 2 double-buffered x blocks + f32 chunk-upcast temp (chunk<=128)
    #   + f32 accumulator + (worst-case double-buffered) weights + pitch/out
    #   blocks + headroom for Mosaic internal scratch.
    w_bytes = 4 * (D_ssl * D_DENSE1 + D_CAT * D_HID2
                   + 4 * D_CAT + 2 * D_HID2 + 4)
    fixed_bytes = (tb * D_ssl * 4                        # f32 accumulator
                   + 2 * w_bytes                         # weights (<= 2 bufs)
                   + tb * 128 * D_ssl * 4                # f32 chunk temp
                   + 2 * tb * (D_PITCH + OUT_LANES) * 4  # pitch + out blocks
                   + 4 * 2**20)                          # headroom
    if ts is None:
        budget = max(0, int(vmem_limit_bytes) - fixed_bytes)
        ts = budget // (2 * tb * D_ssl * itemsize)       # 2 = double buffering
    ts = min(int(ts), _round_up(S, sub))
    if ts >= 128:
        ts = (ts // 128) * 128
    else:
        ts = max(sub, (ts // sub) * sub)
    chunk = next(c for c in (128, 64, 32, 16, 8)
                 if c % sub == 0 and ts % c == 0 and c <= ts)
    s_tiles = pl.cdiv(S, ts)
    need_mask = (s_tiles * ts != S)

    # ---- parameter prep: (in, out) layouts, fold 1/S into w1 ----------------
    w1 = (params['dense1_w'].T / jnp.float32(S)).astype(jnp.float32)   # (D_ssl,128)
    b1 = params['dense1_b'][None, :].astype(jnp.float32)               # (1, 128)
    gamma = params['ln_g'].astype(jnp.float32)
    beta = params['ln_b'].astype(jnp.float32)
    gx, gp = gamma[None, :D_DENSE1], gamma[None, D_DENSE1:]
    bx, bp = beta[None, :D_DENSE1], beta[None, D_DENSE1:]
    w2a = params['dense2a_w'].T.astype(jnp.float32)                    # (248, 64)
    w2ax, w2ap = w2a[:D_DENSE1], w2a[D_DENSE1:]                        # (128,64),(120,64)
    b2a = params['dense2a_b'][None, :].astype(jnp.float32)             # (1, 64)
    w2b = params['dense2b_w'].astype(jnp.float32)                      # (1, 64) row
    b2b = params['dense2b_b'][None, :].astype(jnp.float32)             # (1, 1)

    kernel = functools.partial(mos_head_kernel, seq_len=S, ts=ts,
                               chunk=chunk, need_mask=need_mask)

    flops = (2 * B * S * D_ssl
             + 2 * B * (D_ssl * D_DENSE1 + D_CAT * D_HID2 + D_HID2))
    bytes_accessed = (B * S * D_ssl * itemsize
                      + B * D_PITCH * jnp.dtype(pitchs.dtype).itemsize
                      + w_bytes + b_pad * OUT_LANES * 4)

    args = (x_ssl, pitchs, w1, b1, gx, bx, gp, bp, w2ax, w2ap, b2a, w2b, b2b)

    def _call(single_buffer_consts):
        def _const(arr):   # DMA'd once (block index never changes)
            if single_buffer_consts:
                return pl.BlockSpec(arr.shape, lambda b, s: (0, 0),
                                    pipeline_mode=pl.Buffered(1))
            return pl.BlockSpec(arr.shape, lambda b, s: (0, 0))

        grid_spec = pltpu.PrefetchScalarGridSpec(
            num_scalar_prefetch=0,
            grid=(b_tiles, s_tiles),
            in_specs=[
                pl.BlockSpec((tb, ts, D_ssl), lambda b, s: (b, s, 0)),  # x stream
                pl.BlockSpec((tb, D_PITCH), lambda b, s: (b, 0)),       # pitch
                _const(w1), _const(b1),
                _const(gx), _const(bx), _const(gp), _const(bp),
                _const(w2ax), _const(w2ap), _const(b2a),
                _const(w2b), _const(b2b),
            ],
            out_specs=pl.BlockSpec((tb, OUT_LANES), lambda b, s: (b, 0)),
            scratch_shapes=[pltpu.VMEM((tb, D_ssl), jnp.float32)],
        )
        return pl.pallas_call(
            kernel,
            grid_spec=grid_spec,
            out_shape=jax.ShapeDtypeStruct((b_pad, OUT_LANES), jnp.float32),
            compiler_params=pltpu.CompilerParams(
                dimension_semantics=("parallel", "arbitrary"),
                vmem_limit_bytes=int(vmem_limit_bytes)),
            cost_estimate=pl.CostEstimate(
                flops=int(flops),
                transcendentals=int(B),
                bytes_accessed=int(bytes_accessed)),
        )(*args)

    try:
        out = _call(True)
    except Exception:
        # Single-buffered constant specs unsupported on this jax version;
        # fall back to default (double-buffered) weight blocks.
        out = _call(False)

    return out[:B, 0]                                                  # (B,)


def ssl_stub(wav, params):
    """Stand-in for self.ssl_model(wav, mask=False, features_only=True)['x'].

    # TODO(synk): the real ssl_model (e.g. wav2vec2/HuBERT) is an external
    # module passed to __init__ with no architecture defined in this file; it
    # is replaced by a deterministic frame + linear projection stub, and the
    # head kernel streams the full (B, S, D_ssl) feature tensor it produces.
    """
    B = wav.shape[0]
    wav = jnp.squeeze(wav, axis=1)                   # (B, T)
    F = params['w_ssl'].shape[0]
    S = wav.shape[-1] // F
    frames = wav[:, :S * F].reshape(B, S, F)
    # Emit features in bf16 — the dtype a real SSL encoder would stream to HBM.
    return (frames @ params['w_ssl']).astype(jnp.bfloat16)            # (B,S,D)


def mos_predictor_forward(wav, pitchs, params, **head_kwargs):
    """wav: (B, 1, T), pitchs: (B, 120) -> (B,) MOS scores."""
    x_ssl = ssl_stub(wav, params)
    return mos_head(x_ssl, pitchs, params, **head_kwargs)


def _reference_forward(wav, pitchs, params):
    """Pure-JAX reference mirroring the PyTorch forward (eval mode)."""
    x_ssl = ssl_stub(wav, params)
    x = jnp.mean(x_ssl.astype(jnp.float32), axis=1)
    x = x @ params['dense1_w'].T + params['dense1_b']
    xc = jnp.concatenate([x, pitchs.astype(jnp.float32)], axis=-1)
    mu = jnp.mean(xc, axis=-1, keepdims=True)
    var = jnp.mean((xc - mu) ** 2, axis=-1, keepdims=True)
    xc = (xc - mu) / jnp.sqrt(var + LN_EPS) * params['ln_g'] + params['ln_b']
    z = jnp.maximum(xc @ params['dense2a_w'].T + params['dense2a_b'], 0.0)
    out = z @ params['dense2b_w'].T + params['dense2b_b']
    return jnp.squeeze(out, axis=1)


if __name__ == "__main__":
    # Make the pure-JAX reference matmuls full f32 so it matches the kernel's
    # f32 MXU math to tight tolerance.
    jax.config.update("jax_default_matmul_precision", "highest")

    # S deliberately NOT a multiple of the forced S tile so the in-kernel
    # tail masking is exercised; T = S * F = 2560.
    B, S, F, D_SSL = 2, 40, 64, 256
    key = jax.random.PRNGKey(0)
    ks = jax.random.split(key, 11)

    # Deterministic synthetic parameters (shapes follow the module __init__).
    params = {
        'w_ssl':     jax.random.normal(ks[0], (F, D_SSL), jnp.float32) * 0.1,
        'dense1_w':  jax.random.normal(ks[1], (D_DENSE1, D_SSL), jnp.float32) * 0.05,
        'dense1_b':  jax.random.normal(ks[2], (D_DENSE1,), jnp.float32) * 0.01,
        'ln_g':      1.0 + 0.1 * jax.random.normal(ks[9], (D_CAT,), jnp.float32),
        'ln_b':      0.01 * jax.random.normal(ks[10], (D_CAT,), jnp.float32),
        'dense2a_w': jax.random.normal(ks[3], (D_HID2, D_CAT), jnp.float32) * 0.05,
        'dense2a_b': jax.random.normal(ks[4], (D_HID2,), jnp.float32) * 0.01,
        'dense2b_w': jax.random.normal(ks[5], (1, D_HID2), jnp.float32) * 0.05,
        'dense2b_b': jax.random.normal(ks[6], (1,), jnp.float32) * 0.01,
    }

    wav = jax.random.normal(ks[7], (B, 1, S * F), jnp.float32)
    pitchs = jax.random.normal(ks[8], (B, D_PITCH), jnp.float32)

    ref = _reference_forward(wav, pitchs, params)

    # Forced small S tile: exercises multi-step streaming accumulation
    # (3 S steps), the partial last S tile (tail masking), and the partial
    # batch block (B=2 < tb=8).
    out = mos_predictor_forward(wav, pitchs, params, ts=16)
    out = jax.block_until_ready(out)
    assert out.shape == (B,), out.shape
    assert jnp.allclose(out, ref, rtol=5e-4, atol=5e-4), (out, ref)

    # Default (VMEM-budgeted) S tile: single S step with tail masking.
    out2 = mos_predictor_forward(wav, pitchs, params)
    out2 = jax.block_until_ready(out2)
    assert jnp.allclose(out2, ref, rtol=5e-4, atol=5e-4), (out2, ref)

    print("KERNEL_OK")
</pallas_src>

<mosaic_0001>
module attributes {stable_mosaic.version = 11 : i64} {
  func.func @mos_head_kernel(%arg0: i32, %arg1: i32, %arg2: memref<8x16x256xbf16, #tpu.memory_space<vmem>>, %arg3: memref<8x120xf32, #tpu.memory_space<vmem>>, %arg4: memref<256x128xf32, #tpu.memory_space<vmem>>, %arg5: memref<1x128xf32, #tpu.memory_space<vmem>>, %arg6: memref<1x128xf32, #tpu.memory_space<vmem>>, %arg7: memref<1x128xf32, #tpu.memory_space<vmem>>, %arg8: memref<1x120xf32, #tpu.memory_space<vmem>>, %arg9: memref<1x120xf32, #tpu.memory_space<vmem>>, %arg10: memref<128x64xf32, #tpu.memory_space<vmem>>, %arg11: memref<120x64xf32, #tpu.memory_space<vmem>>, %arg12: memref<1x64xf32, #tpu.memory_space<vmem>>, %arg13: memref<1x64xf32, #tpu.memory_space<vmem>>, %arg14: memref<1x1xf32, #tpu.memory_space<vmem>>, %arg15: memref<8x128xf32, #tpu.memory_space<vmem>>, %arg16: memref<8x256xf32, #tpu.memory_space<vmem>>) attributes {dimension_semantics = [#tpu.dimension_semantics<parallel>, #tpu.dimension_semantics<arbitrary>], iteration_bounds = array<i64: 1, 3>, scalar_prefetch = 0 : i64, scratch_operands = 1 : i64, tpu.core_type = #tpu.core_type<tc>, window_params = [{transform_indices = @transform_0, window_bounds = array<i64: 8, 16, 256>}, {transform_indices = @transform_1, window_bounds = array<i64: 8, 120>}, {pipeline_mode = #tpu.pipeline_mode<synchronous>, transform_indices = @transform_2, window_bounds = array<i64: 256, 128>}, {pipeline_mode = #tpu.pipeline_mode<synchronous>, transform_indices = @transform_3, window_bounds = array<i64: 1, 128>}, {pipeline_mode = #tpu.pipeline_mode<synchronous>, transform_indices = @transform_4, window_bounds = array<i64: 1, 128>}, {pipeline_mode = #tpu.pipeline_mode<synchronous>, transform_indices = @transform_5, window_bounds = array<i64: 1, 128>}, {pipeline_mode = #tpu.pipeline_mode<synchronous>, transform_indices = @transform_6, window_bounds = array<i64: 1, 120>}, {pipeline_mode = #tpu.pipeline_mode<synchronous>, transform_indices = @transform_7, window_bounds = array<i64: 1, 120>}, {pipeline_mode = #tpu.pipeline_mode<synchronous>, transform_indices = @transform_8, window_bounds = array<i64: 128, 64>}, {pipeline_mode = #tpu.pipeline_mode<synchronous>, transform_indices = @transform_9, window_bounds = array<i64: 120, 64>}, {pipeline_mode = #tpu.pipeline_mode<synchronous>, transform_indices = @transform_10, window_bounds = array<i64: 1, 64>}, {pipeline_mode = #tpu.pipeline_mode<synchronous>, transform_indices = @transform_11, window_bounds = array<i64: 1, 64>}, {pipeline_mode = #tpu.pipeline_mode<synchronous>, transform_indices = @transform_12, window_bounds = array<i64: 1, 1>}, {transform_indices = @transform_13, window_bounds = array<i64: 8, 128>}]} {
    %c0_i32 = arith.constant 0 : i32
    %0 = arith.cmpi eq, %arg1, %c0_i32 : i32
    %1 = arith.extui %0 : i1 to i32
    %c0_i32_0 = arith.constant 0 : i32
    %2 = arith.cmpi ne, %1, %c0_i32_0 : i32
    scf.if %2 {
      %cst_10 = arith.constant 0.000000e+00 : f32
      %26 = vector.broadcast %cst_10 : f32 to vector<8x256xf32>
      %c0_11 = arith.constant 0 : index
      %c0_12 = arith.constant 0 : index
      %27 = vector.load %arg16[%c0_11, %c0_12] : memref<8x256xf32, #tpu.memory_space<vmem>>, vector<8x256xf32>
      tpu.vector_store %arg16[%c0_11, %c0_12], %26 {strides = array<i32>} : memref<8x256xf32, #tpu.memory_space<vmem>>, vector<8x256xf32>,
    } else {
    }
    %c0_i32_1 = arith.constant 0 : i32
    %c16_i32 = arith.constant 16 : i32
    %3 = arith.muli %c0_i32_1, %c16_i32 : i32
    %4 = tpu.assume_multiple %3, 16 : i32
    %c0 = arith.constant 0 : index
    %5 = arith.index_cast %4 : i32 to index
    %c0_2 = arith.constant 0 : index
    %6 = vector.load %arg2[%c0, %5, %c0_2] : memref<8x16x256xbf16, #tpu.memory_space<vmem>>, vector<8x16x256xbf16>
    %7 = arith.extf %6 : vector<8x16x256xbf16> to vector<8x16x256xf32>
    %c16_i32_3 = arith.constant 16 : i32
    %8 = arith.muli %arg1, %c16_i32_3 : i32
    %9 = arith.addi %8, %4 : i32
    %10 = tpu.iota {dimensions = array<i32: 1>} : vector<1x16x1xi32>
    %11 = vector.broadcast %9 : i32 to vector<1x16x1xi32>
    %12 = arith.addi %11, %10 : vector<1x16x1xi32>
    %c40_i32 = arith.constant 40 : i32
    %13 = vector.broadcast %c40_i32 : i32 to vector<1x16x1xi32>
    %14 = arith.cmpi slt, %12, %13 : vector<1x16x1xi32>
    %cst = arith.constant 0.000000e+00 : f32
    %15 = vector.shape_cast %14 : vector<1x16x1xi1> to vector<1x16x1xi1>
    %16 = vector.broadcast %15 : vector<1x16x1xi1> to vector<8x16x256xi1>
    %17 = vector.broadcast %cst : f32 to vector<8x16x256xf32>
    %18 = arith.select %16, %7, %17 : vector<8x16x256xi1>, vector<8x16x256xf32>
    %c0_4 = arith.constant 0 : index
    %c0_5 = arith.constant 0 : index
    %19 = vector.load %arg16[%c0_4, %c0_5] : memref<8x256xf32, #tpu.memory_space<vmem>>, vector<8x256xf32>
    %cst_6 = arith.constant dense<0.000000e+00> : vector<8x256xf32>
    %20 = vector.multi_reduction <add>, %18, %cst_6 [1] : vector<8x16x256xf32> to vector<8x256xf32>
    %21 = arith.addf %19, %20 : vector<8x256xf32>
    %c0_7 = arith.constant 0 : index
    %c0_8 = arith.constant 0 : index
    %22 = vector.load %arg16[%c0_7, %c0_8] : memref<8x256xf32, #tpu.memory_space<vmem>>, vector<8x256xf32>
    tpu.vector_store %arg16[%c0_7, %c0_8], %21 {strides = array<i32>} : memref<8x256xf32, #tpu.memory_space<vmem>>, vector<8x256xf32>,
    %c1_i32 = arith.constant 1 : i32
    %c2_i32 = arith.constant 2 : i32
    %23 = arith.cmpi eq, %arg1, %c2_i32 : i32
    %24 = arith.extui %23 : i1 to i32
    %c0_i32_9 = arith.constant 0 : i32
    %25 = arith.cmpi ne, %24, %c0_i32_9 : i32
    scf.if %25 {
      %c0_10 = arith.constant 0 : index
      %c0_11 = arith.constant 0 : index
      %26 = vector.load %arg16[%c0_10, %c0_11] : memref<8x256xf32, #tpu.memory_space<vmem>>, vector<8x256xf32>
      %c0_12 = arith.constant 0 : index
      %c0_13 = arith.constant 0 : index
      %27 = vector.load %arg4[%c0_12, %c0_13] : memref<256x128xf32, #tpu.memory_space<vmem>>, vector<256x128xf32>
      %cst_14 = arith.constant dense<0.000000e+00> : vector<8x128xf32>
      %28 = tpu.matmul %26, %27, %cst_14 {dimension_numbers = #tpu.dot_dimension_numbers<[1], [0], [0], [1], [0, 0, 1, 1], [], []>, precision = #tpu.contract_precision<fp32>} : vector<8x256xf32>, vector<256x128xf32>, vector<8x128xf32> -> vector<8x128xf32>
      %c0_15 = arith.constant 0 : index
      %c0_16 = arith.constant 0 : index
      %29 = vector.load %arg5[%c0_15, %c0_16] : memref<1x128xf32, #tpu.memory_space<vmem>>, vector<1x128xf32>
      %30 = vector.broadcast %29 : vector<1x128xf32> to vector<8x128xf32>
      %31 = arith.addf %28, %30 : vector<8x128xf32>
      %c0_17 = arith.constant 0 : index
      %c0_18 = arith.constant 0 : index
      %32 = vector.load %arg3[%c0_17, %c0_18] : memref<8x120xf32, #tpu.memory_space<vmem>>, vector<8x120xf32>
      %cst_19 = arith.constant dense<0.000000e+00> : vector<8xf32>
      %33 = vector.multi_reduction <add>, %31, %cst_19 [1] : vector<8x128xf32> to vector<8xf32>
      %34 = vector.shape_cast %33 : vector<8xf32> to vector<8x1xf32>
      %cst_20 = arith.constant dense<0.000000e+00> : vector<8xf32>
      %35 = vector.multi_reduction <add>, %32, %cst_20 [1] : vector<8x120xf32> to vector<8xf32>
      %36 = vector.shape_cast %35 : vector<8xf32> to vector<8x1xf32>
      %37 = arith.addf %34, %36 : vector<8x1xf32>
      %cst_21 = arith.constant 0.00403225794 : f32
      %38 = vector.broadcast %cst_21 : f32 to vector<8x1xf32>
      %39 = arith.mulf %37, %38 : vector<8x1xf32>
      %40 = vector.broadcast %39 : vector<8x1xf32> to vector<8x128xf32>
      %41 = arith.subf %31, %40 : vector<8x128xf32>
      %42 = vector.broadcast %39 : vector<8x1xf32> to vector<8x120xf32>
      %43 = arith.subf %32, %42 : vector<8x120xf32>
      %44 = arith.mulf %41, %41 : vector<8x128xf32>
      %cst_22 = arith.constant dense<0.000000e+00> : vector<8xf32>
      %45 = vector.multi_reduction <add>, %44, %cst_22 [1] : vector<8x128xf32> to vector<8xf32>
      %46 = vector.shape_cast %45 : vector<8xf32> to vector<8x1xf32>
      %47 = arith.mulf %43, %43 : vector<8x120xf32>
      %cst_23 = arith.constant dense<0.000000e+00> : vector<8xf32>
      %48 = vector.multi_reduction <add>, %47, %cst_23 [1] : vector<8x120xf32> to vector<8xf32>
      %49 = vector.shape_cast %48 : vector<8xf32> to vector<8x1xf32>
      %50 = arith.addf %46, %49 : vector<8x1xf32>
      %cst_24 = arith.constant 0.00403225794 : f32
      %51 = vector.broadcast %cst_24 : f32 to vector<8x1xf32>
      %52 = arith.mulf %50, %51 : vector<8x1xf32>
      %cst_25 = arith.constant 9.99999974E-6 : f32
      %53 = vector.broadcast %cst_25 : f32 to vector<8x1xf32>
      %54 = arith.addf %52, %53 : vector<8x1xf32>
      %55 = math.rsqrt %54 : vector<8x1xf32>
      %56 = vector.broadcast %55 : vector<8x1xf32> to vector<8x128xf32>
      %57 = arith.mulf %41, %56 : vector<8x128xf32>
      %c0_26 = arith.constant 0 : index
      %c0_27 = arith.constant 0 : index
      %58 = vector.load %arg6[%c0_26, %c0_27] : memref<1x128xf32, #tpu.memory_space<vmem>>, vector<1x128xf32>
      %59 = vector.broadcast %58 : vector<1x128xf32> to vector<8x128xf32>
      %60 = arith.mulf %57, %59 : vector<8x128xf32>
      %c0_28 = arith.constant 0 : index
      %c0_29 = arith.constant 0 : index
      %61 = vector.load %arg7[%c0_28, %c0_29] : memref<1x128xf32, #tpu.memory_space<vmem>>, vector<1x128xf32>
      %62 = vector.broadcast %61 : vector<1x128xf32> to vector<8x128xf32>
      %63 = arith.addf %60, %62 : vector<8x128xf32>
      %64 = vector.broadcast %55 : vector<8x1xf32> to vector<8x120xf32>
      %65 = arith.mulf %43, %64 : vector<8x120xf32>
      %c0_30 = arith.constant 0 : index
      %c0_31 = arith.constant 0 : index
      %66 = vector.load %arg8[%c0_30, %c0_31] : memref<1x120xf32, #tpu.memory_space<vmem>>, vector<1x120xf32>
      %67 = vector.broadcast %66 : vector<1x120xf32> to vector<8x120xf32>
      %68 = arith.mulf %65, %67 : vector<8x120xf32>
      %c0_32 = arith.constant 0 : index
      %c0_33 = arith.constant 0 : index
      %69 = vector.load %arg9[%c0_32, %c0_33] : memref<1x120xf32, #tpu.memory_space<vmem>>, vector<1x120xf32>
      %70 = vector.broadcast %69 : vector<1x120xf32> to vector<8x120xf32>
      %71 = arith.addf %68, %70 : vector<8x120xf32>
      %c0_34 = arith.constant 0 : index
      %c0_35 = arith.constant 0 : index
      %72 = vector.load %arg10[%c0_34, %c0_35] : memref<128x64xf32, #tpu.memory_space<vmem>>, vector<128x64xf32>
      %cst_36 = arith.constant dense<0.000000e+00> : vector<8x64xf32>
      %73 = tpu.matmul %63, %72, %cst_36 {dimension_numbers = #tpu.dot_dimension_numbers<[1], [0], [0], [1], [0, 0, 1, 1], [], []>, precision = #tpu.contract_precision<fp32>} : vector<8x128xf32>, vector<128x64xf32>, vector<8x64xf32> -> vector<8x64xf32>
      %c0_37 = arith.constant 0 : index
      %c0_38 = arith.constant 0 : index
      %74 = vector.load %arg11[%c0_37, %c0_38] : memref<120x64xf32, #tpu.memory_space<vmem>>, vector<120x64xf32>
      %cst_39 = arith.constant dense<0.000000e+00> : vector<8x64xf32>
      %75 = tpu.matmul %71, %74, %cst_39 {dimension_numbers = #tpu.dot_dimension_numbers<[1], [0], [0], [1], [0, 0, 1, 1], [], []>, precision = #tpu.contract_precision<fp32>} : vector<8x120xf32>, vector<120x64xf32>, vector<8x64xf32> -> vector<8x64xf32>
      %76 = arith.addf %73, %75 : vector<8x64xf32>
      %c0_40 = arith.constant 0 : index
      %c0_41 = arith.constant 0 : index
      %77 = vector.load %arg12[%c0_40, %c0_41] : memref<1x64xf32, #tpu.memory_space<vmem>>, vector<1x64xf32>
      %78 = vector.broadcast %77 : vector<1x64xf32> to vector<8x64xf32>
      %79 = arith.addf %76, %78 : vector<8x64xf32>
      %cst_42 = arith.constant 0.000000e+00 : f32
      %80 = vector.broadcast %cst_42 : f32 to vector<8x64xf32>
      %81 = arith.maximumf %79, %80 : vector<8x64xf32>
      %c0_43 = arith.constant 0 : index
      %c0_44 = arith.constant 0 : index
      %82 = vector.load %arg13[%c0_43, %c0_44] : memref<1x64xf32, #tpu.memory_space<vmem>>, vector<1x64xf32>
      %83 = vector.broadcast %82 : vector<1x64xf32> to vector<8x64xf32>
      %84 = arith.mulf %81, %83 : vector<8x64xf32>
      %cst_45 = arith.constant dense<0.000000e+00> : vector<8xf32>
      %85 = vector.multi_reduction <add>, %84, %cst_45 [1] : vector<8x64xf32> to vector<8xf32>
      %86 = vector.shape_cast %85 : vector<8xf32> to vector<8x1xf32>
      %c0_46 = arith.constant 0 : index
      %c0_47 = arith.constant 0 : index
      %87 = vector.load %arg14[%c0_46, %c0_47] : memref<1x1xf32, #tpu.memory_space<vmem>>, vector<1x1xf32>
      %88 = vector.broadcast %87 : vector<1x1xf32> to vector<8x1xf32>
      %89 = arith.addf %86, %88 : vector<8x1xf32>
      %90 = vector.shape_cast %89 : vector<8x1xf32> to vector<8x1xf32>
      %91 = vector.broadcast %90 : vector<8x1xf32> to vector<8x128xf32>
      %c0_48 = arith.constant 0 : index
      %c0_49 = arith.constant 0 : index
      %92 = vector.load %arg15[%c0_48, %c0_49] : memref<8x128xf32, #tpu.memory_space<vmem>>, vector<8x128xf32>
      tpu.vector_store %arg15[%c0_48, %c0_49], %91 {strides = array<i32>} : memref<8x128xf32, #tpu.memory_space<vmem>>, vector<8x128xf32>,
    } else {
    }
    return
  }
  func.func @transform_0(%arg0: i32, %arg1: i32) -> (i32, i32, i32) {
    %c0_i32 = arith.constant 0 : i32
    %c0_i32_0 = arith.constant 0 : i32
    return %arg0, %arg1, %c0_i32 : i32, i32, i32
  }
  func.func @transform_1(%arg0: i32, %arg1: i32) -> (i32, i32) {
    %c0_i32 = arith.constant 0 : i32
    %c0_i32_0 = arith.constant 0 : i32
    return %arg0, %c0_i32 : i32, i32
  }
  func.func @transform_2(%arg0: i32, %arg1: i32) -> (i32, i32) {
    %c0_i32 = arith.constant 0 : i32
    %c0_i32_0 = arith.constant 0 : i32
    %c0_i32_1 = arith.constant 0 : i32
    return %c0_i32, %c0_i32_0 : i32, i32
  }
  func.func @transform_3(%arg0: i32, %arg1: i32) -> (i32, i32) {
    %c0_i32 = arith.constant 0 : i32
    %c0_i32_0 = arith.constant 0 : i32
    %c0_i32_1 = arith.constant 0 : i32
    return %c0_i32, %c0_i32_0 : i32, i32
  }
  func.func @transform_4(%arg0: i32, %arg1: i32) -> (i32, i32) {
    %c0_i32 = arith.constant 0 : i32
    %c0_i32_0 = arith.constant 0 : i32
    %c0_i32_1 = arith.constant 0 : i32
    return %c0_i32, %c0_i32_0 : i32, i32
  }
  func.func @transform_5(%arg0: i32, %arg1: i32) -> (i32, i32) {
    %c0_i32 = arith.constant 0 : i32
    %c0_i32_0 = arith.constant 0 : i32
    %c0_i32_1 = arith.constant 0 : i32
    return %c0_i32, %c0_i32_0 : i32, i32
  }
  func.func @transform_6(%arg0: i32, %arg1: i32) -> (i32, i32) {
    %c0_i32 = arith.constant 0 : i32
    %c0_i32_0 = arith.constant 0 : i32
    %c0_i32_1 = arith.constant 0 : i32
    return %c0_i32, %c0_i32_0 : i32, i32
  }
  func.func @transform_7(%arg0: i32, %arg1: i32) -> (i32, i32) {
    %c0_i32 = arith.constant 0 : i32
    %c0_i32_0 = arith.constant 0 : i32
    %c0_i32_1 = arith.constant 0 : i32
    return %c0_i32, %c0_i32_0 : i32, i32
  }
  func.func @transform_8(%arg0: i32, %arg1: i32) -> (i32, i32) {
    %c0_i32 = arith.constant 0 : i32
    %c0_i32_0 = arith.constant 0 : i32
    %c0_i32_1 = arith.constant 0 : i32
    return %c0_i32, %c0_i32_0 : i32, i32
  }
  func.func @transform_9(%arg0: i32, %arg1: i32) -> (i32, i32) {
    %c0_i32 = arith.constant 0 : i32
    %c0_i32_0 = arith.constant 0 : i32
    %c0_i32_1 = arith.constant 0 : i32
    return %c0_i32, %c0_i32_0 : i32, i32
  }
  func.func @transform_10(%arg0: i32, %arg1: i32) -> (i32, i32) {
    %c0_i32 = arith.constant 0 : i32
    %c0_i32_0 = arith.constant 0 : i32
    %c0_i32_1 = arith.constant 0 : i32
    return %c0_i32, %c0_i32_0 : i32, i32
  }
  func.func @transform_11(%arg0: i32, %arg1: i32) -> (i32, i32) {
    %c0_i32 = arith.constant 0 : i32
    %c0_i32_0 = arith.constant 0 : i32
    %c0_i32_1 = arith.constant 0 : i32
    return %c0_i32, %c0_i32_0 : i32, i32
  }
  func.func @transform_12(%arg0: i32, %arg1: i32) -> (i32, i32) {
    %c0_i32 = arith.constant 0 : i32
    %c0_i32_0 = arith.constant 0 : i32
    %c0_i32_1 = arith.constant 0 : i32
    return %c0_i32, %c0_i32_0 : i32, i32
  }
  func.func @transform_13(%arg0: i32, %arg1: i32) -> (i32, i32) {
    %c0_i32 = arith.constant 0 : i32
    %c0_i32_0 = arith.constant 0 : i32
    return %arg0, %c0_i32 : i32, i32
  }
}

module attributes {stable_mosaic.version = 11 : i64} {
  func.func @mos_head_kernel(%arg0: i32, %arg1: i32, %arg2: memref<8x16x256xbf16, #tpu.memory_space<vmem>>, %arg3: memref<8x120xf32, #tpu.memory_space<vmem>>, %arg4: memref<256x128xf32, #tpu.memory_space<vmem>>, %arg5: memref<1x128xf32, #tpu.memory_space<vmem>>, %arg6: memref<1x128xf32, #tpu.memory_space<vmem>>, %arg7: memref<1x128xf32, #tpu.memory_space<vmem>>, %arg8: memref<1x120xf32, #tpu.memory_space<vmem>>, %arg9: memref<1x120xf32, #tpu.memory_space<vmem>>, %arg10: memref<128x64xf32, #tpu.memory_space<vmem>>, %arg11: memref<120x64xf32, #tpu.memory_space<vmem>>, %arg12: memref<1x64xf32, #tpu.memory_space<vmem>>, %arg13: memref<1x64xf32, #tpu.memory_space<vmem>>, %arg14: memref<1x1xf32, #tpu.memory_space<vmem>>, %arg15: memref<8x128xf32, #tpu.memory_space<vmem>>, %arg16: memref<8x256xf32, #tpu.memory_space<vmem>>) attributes {dimension_semantics = [#tpu.dimension_semantics<parallel>, #tpu.dimension_semantics<arbitrary>], iteration_bounds = array<i64: 1, 3>, scalar_prefetch = 0 : i64, scratch_operands = 1 : i64, tpu.core_type = #tpu.core_type<tc>, window_params = [{transform_indices = @transform_0, window_bounds = array<i64: 8, 16, 256>}, {transform_indices = @transform_1, window_bounds = array<i64: 8, 120>}, {pipeline_mode = #tpu.pipeline_mode<synchronous>, transform_indices = @transform_2, window_bounds = array<i64: 256, 128>}, {pipeline_mode = #tpu.pipeline_mode<synchronous>, transform_indices = @transform_3, window_bounds = array<i64: 1, 128>}, {pipeline_mode = #tpu.pipeline_mode<synchronous>, transform_indices = @transform_4, window_bounds = array<i64: 1, 128>}, {pipeline_mode = #tpu.pipeline_mode<synchronous>, transform_indices = @transform_5, window_bounds = array<i64: 1, 128>}, {pipeline_mode = #tpu.pipeline_mode<synchronous>, transform_indices = @transform_6, window_bounds = array<i64: 1, 120>}, {pipeline_mode = #tpu.pipeline_mode<synchronous>, transform_indices = @transform_7, window_bounds = array<i64: 1, 120>}, {pipeline_mode = #tpu.pipeline_mode<synchronous>, transform_indices = @transform_8, window_bounds = array<i64: 128, 64>}, {pipeline_mode = #tpu.pipeline_mode<synchronous>, transform_indices = @transform_9, window_bounds = array<i64: 120, 64>}, {pipeline_mode = #tpu.pipeline_mode<synchronous>, transform_indices = @transform_10, window_bounds = array<i64: 1, 64>}, {pipeline_mode = #tpu.pipeline_mode<synchronous>, transform_indices = @transform_11, window_bounds = array<i64: 1, 64>}, {pipeline_mode = #tpu.pipeline_mode<synchronous>, transform_indices = @transform_12, window_bounds = array<i64: 1, 1>}, {transform_indices = @transform_13, window_bounds = array<i64: 8, 128>}]} {
    %c0_i32 = arith.constant 0 : i32
    %0 = arith.cmpi eq, %arg1, %c0_i32 : i32
    %1 = arith.extui %0 : i1 to i32
    %c0_i32_0 = arith.constant 0 : i32
    %2 = arith.cmpi ne, %1, %c0_i32_0 : i32
    scf.if %2 {
      %cst_10 = arith.constant 0.000000e+00 : f32
      %26 = vector.broadcast %cst_10 : f32 to vector<8x256xf32>
      %c0_11 = arith.constant 0 : index
      %c0_12 = arith.constant 0 : index
      %27 = vector.load %arg16[%c0_11, %c0_12] : memref<8x256xf32, #tpu.memory_space<vmem>>, vector<8x256xf32>
      tpu.vector_store %arg16[%c0_11, %c0_12], %26 {strides = array<i32>} : memref<8x256xf32, #tpu.memory_space<vmem>>, vector<8x256xf32>,
    } else {
    }
    %c0_i32_1 = arith.constant 0 : i32
    %c16_i32 = arith.constant 16 : i32
    %3 = arith.muli %c0_i32_1, %c16_i32 : i32
    %4 = tpu.assume_multiple %3, 16 : i32
    %c0 = arith.constant 0 : index
    %5 = arith.index_cast %4 : i32 to index
    %c0_2 = arith.constant 0 : index
    %6 = vector.load %arg2[%c0, %5, %c0_2] : memref<8x16x256xbf16, #tpu.memory_space<vmem>>, vector<8x16x256xbf16>
    %7 = arith.extf %6 : vector<8x16x256xbf16> to vector<8x16x256xf32>
    %c16_i32_3 = arith.constant 16 : i32
    %8 = arith.muli %arg1, %c16_i32_3 : i32
    %9 = arith.addi %8, %4 : i32
    %10 = tpu.iota {dimensions = array<i32: 1>} : vector<1x16x1xi32>
    %11 = vector.broadcast %9 : i32 to vector<1x16x1xi32>
    %12 = arith.addi %11, %10 : vector<1x16x1xi32>
    %c40_i32 = arith.constant 40 : i32
    %13 = vector.broadcast %c40_i32 : i32 to vector<1x16x1xi32>
    %14 = arith.cmpi slt, %12, %13 : vector<1x16x1xi32>
    %cst = arith.constant 0.000000e+00 : f32
    %15 = vector.shape_cast %14 : vector<1x16x1xi1> to vector<1x16x1xi1>
    %16 = vector.broadcast %15 : vector<1x16x1xi1> to vector<8x16x256xi1>
    %17 = vector.broadcast %cst : f32 to vector<8x16x256xf32>
    %18 = arith.select %16, %7, %17 : vector<8x16x256xi1>, vector<8x16x256xf32>
    %c0_4 = arith.constant 0 : index
    %c0_5 = arith.constant 0 : index
    %19 = vector.load %arg16[%c0_4, %c0_5] : memref<8x256xf32, #tpu.memory_space<vmem>>, vector<8x256xf32>
    %cst_6 = arith.constant dense<0.000000e+00> : vector<8x256xf32>
    %20 = vector.multi_reduction <add>, %18, %cst_6 [1] : vector<8x16x256xf32> to vector<8x256xf32>
    %21 = arith.addf %19, %20 : vector<8x256xf32>
    %c0_7 = arith.constant 0 : index
    %c0_8 = arith.constant 0 : index
    %22 = vector.load %arg16[%c0_7, %c0_8] : memref<8x256xf32, #tpu.memory_space<vmem>>, vector<8x256xf32>
    tpu.vector_store %arg16[%c0_7, %c0_8], %21 {strides = array<i32>} : memref<8x256xf32, #tpu.memory_space<vmem>>, vector<8x256xf32>,
    %c1_i32 = arith.constant 1 : i32
    %c2_i32 = arith.constant 2 : i32
    %23 = arith.cmpi eq, %arg1, %c2_i32 : i32
    %24 = arith.extui %23 : i1 to i32
    %c0_i32_9 = arith.constant 0 : i32
    %25 = arith.cmpi ne, %24, %c0_i32_9 : i32
    scf.if %25 {
      %c0_10 = arith.constant 0 : index
      %c0_11 = arith.constant 0 : index
      %26 = vector.load %arg16[%c0_10, %c0_11] : memref<8x256xf32, #tpu.memory_space<vmem>>, vector<8x256xf32>
      %c0_12 = arith.constant 0 : index
      %c0_13 = arith.constant 0 : index
      %27 = vector.load %arg4[%c0_12, %c0_13] : memref<256x128xf32, #tpu.memory_space<vmem>>, vector<256x128xf32>
      %cst_14 = arith.constant dense<0.000000e+00> : vector<8x128xf32>
      %28 = tpu.matmul %26, %27, %cst_14 {dimension_numbers = #tpu.dot_dimension_numbers<[1], [0], [0], [1], [0, 0, 1, 1], [], []>, precision = #tpu.contract_precision<fp32>} : vector<8x256xf32>, vector<256x128xf32>, vector<8x128xf32> -> vector<8x128xf32>
      %c0_15 = arith.constant 0 : index
      %c0_16 = arith.constant 0 : index
      %29 = vector.load %arg5[%c0_15, %c0_16] : memref<1x128xf32, #tpu.memory_space<vmem>>, vector<1x128xf32>
      %30 = vector.broadcast %29 : vector<1x128xf32> to vector<8x128xf32>
      %31 = arith.addf %28, %30 : vector<8x128xf32>
      %c0_17 = arith.constant 0 : index
      %c0_18 = arith.constant 0 : index
      %32 = vector.load %arg3[%c0_17, %c0_18] : memref<8x120xf32, #tpu.memory_space<vmem>>, vector<8x120xf32>
      %cst_19 = arith.constant dense<0.000000e+00> : vector<8xf32>
      %33 = vector.multi_reduction <add>, %31, %cst_19 [1] : vector<8x128xf32> to vector<8xf32>
      %34 = vector.shape_cast %33 : vector<8xf32> to vector<8x1xf32>
      %cst_20 = arith.constant dense<0.000000e+00> : vector<8xf32>
      %35 = vector.multi_reduction <add>, %32, %cst_20 [1] : vector<8x120xf32> to vector<8xf32>
      %36 = vector.shape_cast %35 : vector<8xf32> to vector<8x1xf32>
      %37 = arith.addf %34, %36 : vector<8x1xf32>
      %cst_21 = arith.constant 0.00403225794 : f32
      %38 = vector.broadcast %cst_21 : f32 to vector<8x1xf32>
      %39 = arith.mulf %37, %38 : vector<8x1xf32>
      %40 = vector.broadcast %39 : vector<8x1xf32> to vector<8x128xf32>
      %41 = arith.subf %31, %40 : vector<8x128xf32>
      %42 = vector.broadcast %39 : vector<8x1xf32> to vector<8x120xf32>
      %43 = arith.subf %32, %42 : vector<8x120xf32>
      %44 = arith.mulf %41, %41 : vector<8x128xf32>
      %cst_22 = arith.constant dense<0.000000e+00> : vector<8xf32>
      %45 = vector.multi_reduction <add>, %44, %cst_22 [1] : vector<8x128xf32> to vector<8xf32>
      %46 = vector.shape_cast %45 : vector<8xf32> to vector<8x1xf32>
      %47 = arith.mulf %43, %43 : vector<8x120xf32>
      %cst_23 = arith.constant dense<0.000000e+00> : vector<8xf32>
      %48 = vector.multi_reduction <add>, %47, %cst_23 [1] : vector<8x120xf32> to vector<8xf32>
      %49 = vector.shape_cast %48 : vector<8xf32> to vector<8x1xf32>
      %50 = arith.addf %46, %49 : vector<8x1xf32>
      %cst_24 = arith.constant 0.00403225794 : f32
      %51 = vector.broadcast %cst_24 : f32 to vector<8x1xf32>
      %52 = arith.mulf %50, %51 : vector<8x1xf32>
      %cst_25 = arith.constant 9.99999974E-6 : f32
      %53 = vector.broadcast %cst_25 : f32 to vector<8x1xf32>
      %54 = arith.addf %52, %53 : vector<8x1xf32>
      %55 = math.rsqrt %54 : vector<8x1xf32>
      %56 = vector.broadcast %55 : vector<8x1xf32> to vector<8x128xf32>
      %57 = arith.mulf %41, %56 : vector<8x128xf32>
      %c0_26 = arith.constant 0 : index
      %c0_27 = arith.constant 0 : index
      %58 = vector.load %arg6[%c0_26, %c0_27] : memref<1x128xf32, #tpu.memory_space<vmem>>, vector<1x128xf32>
      %59 = vector.broadcast %58 : vector<1x128xf32> to vector<8x128xf32>
      %60 = arith.mulf %57, %59 : vector<8x128xf32>
      %c0_28 = arith.constant 0 : index
      %c0_29 = arith.constant 0 : index
      %61 = vector.load %arg7[%c0_28, %c0_29] : memref<1x128xf32, #tpu.memory_space<vmem>>, vector<1x128xf32>
      %62 = vector.broadcast %61 : vector<1x128xf32> to vector<8x128xf32>
      %63 = arith.addf %60, %62 : vector<8x128xf32>
      %64 = vector.broadcast %55 : vector<8x1xf32> to vector<8x120xf32>
      %65 = arith.mulf %43, %64 : vector<8x120xf32>
      %c0_30 = arith.constant 0 : index
      %c0_31 = arith.constant 0 : index
      %66 = vector.load %arg8[%c0_30, %c0_31] : memref<1x120xf32, #tpu.memory_space<vmem>>, vector<1x120xf32>
      %67 = vector.broadcast %66 : vector<1x120xf32> to vector<8x120xf32>
      %68 = arith.mulf %65, %67 : vector<8x120xf32>
      %c0_32 = arith.constant 0 : index
      %c0_33 = arith.constant 0 : index
      %69 = vector.load %arg9[%c0_32, %c0_33] : memref<1x120xf32, #tpu.memory_space<vmem>>, vector<1x120xf32>
      %70 = vector.broadcast %69 : vector<1x120xf32> to vector<8x120xf32>
      %71 = arith.addf %68, %70 : vector<8x120xf32>
      %c0_34 = arith.constant 0 : index
      %c0_35 = arith.constant 0 : index
      %72 = vector.load %arg10[%c0_34, %c0_35] : memref<128x64xf32, #tpu.memory_space<vmem>>, vector<128x64xf32>
      %cst_36 = arith.constant dense<0.000000e+00> : vector<8x64xf32>
      %73 = tpu.matmul %63, %72, %cst_36 {dimension_numbers = #tpu.dot_dimension_numbers<[1], [0], [0], [1], [0, 0, 1, 1], [], []>, precision = #tpu.contract_precision<fp32>} : vector<8x128xf32>, vector<128x64xf32>, vector<8x64xf32> -> vector<8x64xf32>
      %c0_37 = arith.constant 0 : index
      %c0_38 = arith.constant 0 : index
      %74 = vector.load %arg11[%c0_37, %c0_38] : memref<120x64xf32, #tpu.memory_space<vmem>>, vector<120x64xf32>
      %cst_39 = arith.constant dense<0.000000e+00> : vector<8x64xf32>
      %75 = tpu.matmul %71, %74, %cst_39 {dimension_numbers = #tpu.dot_dimension_numbers<[1], [0], [0], [1], [0, 0, 1, 1], [], []>, precision = #tpu.contract_precision<fp32>} : vector<8x120xf32>, vector<120x64xf32>, vector<8x64xf32> -> vector<8x64xf32>
      %76 = arith.addf %73, %75 : vector<8x64xf32>
      %c0_40 = arith.constant 0 : index
      %c0_41 = arith.constant 0 : index
      %77 = vector.load %arg12[%c0_40, %c0_41] : memref<1x64xf32, #tpu.memory_space<vmem>>, vector<1x64xf32>
      %78 = vector.broadcast %77 : vector<1x64xf32> to vector<8x64xf32>
      %79 = arith.addf %76, %78 : vector<8x64xf32>
      %cst_42 = arith.constant 0.000000e+00 : f32
      %80 = vector.broadcast %cst_42 : f32 to vector<8x64xf32>
      %81 = arith.maximumf %79, %80 : vector<8x64xf32>
      %c0_43 = arith.constant 0 : index
      %c0_44 = arith.constant 0 : index
      %82 = vector.load %arg13[%c0_43, %c0_44] : memref<1x64xf32, #tpu.memory_space<vmem>>, vector<1x64xf32>
      %83 = vector.broadcast %82 : vector<1x64xf32> to vector<8x64xf32>
      %84 = arith.mulf %81, %83 : vector<8x64xf32>
      %cst_45 = arith.constant dense<0.000000e+00> : vector<8xf32>
      %85 = vector.multi_reduction <add>, %84, %cst_45 [1] : vector<8x64xf32> to vector<8xf32>
      %86 = vector.shape_cast %85 : vector<8xf32> to vector<8x1xf32>
      %c0_46 = arith.constant 0 : index
      %c0_47 = arith.constant 0 : index
      %87 = vector.load %arg14[%c0_46, %c0_47] : memref<1x1xf32, #tpu.memory_space<vmem>>, vector<1x1xf32>
      %88 = vector.broadcast %87 : vector<1x1xf32> to vector<8x1xf32>
      %89 = arith.addf %86, %88 : vector<8x1xf32>
      %90 = vector.shape_cast %89 : vector<8x1xf32> to vector<8x1xf32>
      %91 = vector.broadcast %90 : vector<8x1xf32> to vector<8x128xf32>
      %c0_48 = arith.constant 0 : index
      %c0_49 = arith.constant 0 : index
      %92 = vector.load %arg15[%c0_48, %c0_49] : memref<8x128xf32, #tpu.memory_space<vmem>>, vector<8x128xf32>
      tpu.vector_store %arg15[%c0_48, %c0_49], %91 {strides = array<i32>} : memref<8x128xf32, #tpu.memory_space<vmem>>, vector<8x128xf32>,
    } else {
    }
    return
  }
  func.func @transform_0(%arg0: i32, %arg1: i32) -> (i32, i32, i32) {
    %c0_i32 = arith.constant 0 : i32
    %c0_i32_0 = arith.constant 0 : i32
    return %arg0, %arg1, %c0_i32 : i32, i32, i32
  }
  func.func @transform_1(%arg0: i32, %arg1: i32) -> (i32, i32) {
    %c0_i32 = arith.constant 0 : i32
    %c0_i32_0 = arith.constant 0 : i32
    return %arg0, %c0_i32 : i32, i32
  }
  func.func @transform_2(%arg0: i32, %arg1: i32) -> (i32, i32) {
    %c0_i32 = arith.constant 0 : i32
    %c0_i32_0 = arith.constant 0 : i32
    %c0_i32_1 = arith.constant 0 : i32
    return %c0_i32, %c0_i32_0 : i32, i32
  }
  func.func @transform_3(%arg0: i32, %arg1: i32) -> (i32, i32) {
    %c0_i32 = arith.constant 0 : i32
    %c0_i32_0 = arith.constant 0 : i32
    %c0_i32_1 = arith.constant 0 : i32
    return %c0_i32, %c0_i32_0 : i32, i32
  }
  func.func @transform_4(%arg0: i32, %arg1: i32) -> (i32, i32) {
    %c0_i32 = arith.constant 0 : i32
    %c0_i32_0 = arith.constant 0 : i32
    %c0_i32_1 = arith.constant 0 : i32
    return %c0_i32, %c0_i32_0 : i32, i32
  }
  func.func @transform_5(%arg0: i32, %arg1: i32) -> (i32, i32) {
    %c0_i32 = arith.constant 0 : i32
    %c0_i32_0 = arith.constant 0 : i32
    %c0_i32_1 = arith.constant 0 : i32
    return %c0_i32, %c0_i32_0 : i32, i32
  }
  func.func @transform_6(%arg0: i32, %arg1: i32) -> (i32, i32) {
    %c0_i32 = arith.constant 0 : i32
    %c0_i32_0 = arith.constant 0 : i32
    %c0_i32_1 = arith.constant 0 : i32
    return %c0_i32, %c0_i32_0 : i32, i32
  }
  func.func @transform_7(%arg0: i32, %arg1: i32) -> (i32, i32) {
    %c0_i32 = arith.constant 0 : i32
    %c0_i32_0 = arith.constant 0 : i32
    %c0_i32_1 = arith.constant 0 : i32
    return %c0_i32, %c0_i32_0 : i32, i32
  }
  func.func @transform_8(%arg0: i32, %arg1: i32) -> (i32, i32) {
    %c0_i32 = arith.constant 0 : i32
    %c0_i32_0 = arith.constant 0 : i32
    %c0_i32_1 = arith.constant 0 : i32
    return %c0_i32, %c0_i32_0 : i32, i32
  }
  func.func @transform_9(%arg0: i32, %arg1: i32) -> (i32, i32) {
    %c0_i32 = arith.constant 0 : i32
    %c0_i32_0 = arith.constant 0 : i32
    %c0_i32_1 = arith.constant 0 : i32
    return %c0_i32, %c0_i32_0 : i32, i32
  }
  func.func @transform_10(%arg0: i32, %arg1: i32) -> (i32, i32) {
    %c0_i32 = arith.constant 0 : i32
    %c0_i32_0 = arith.constant 0 : i32
    %c0_i32_1 = arith.constant 0 : i32
    return %c0_i32, %c0_i32_0 : i32, i32
  }
  func.func @transform_11(%arg0: i32, %arg1: i32) -> (i32, i32) {
    %c0_i32 = arith.constant 0 : i32
    %c0_i32_0 = arith.constant 0 : i32
    %c0_i32_1 = arith.constant 0 : i32
    return %c0_i32, %c0_i32_0 : i32, i32
  }
  func.func @transform_12(%arg0: i32, %arg1: i32) -> (i32, i32) {
    %c0_i32 = arith.constant 0 : i32
    %c0_i32_0 = arith.constant 0 : i32
    %c0_i32_1 = arith.constant 0 : i32
    return %c0_i32, %c0_i32_0 : i32, i32
  }
  func.func @transform_13(%arg0: i32, %arg1: i32) -> (i32, i32) {
    %c0_i32 = arith.constant 0 : i32
    %c0_i32_0 = arith.constant 0 : i32
    return %arg0, %c0_i32 : i32, i32
  }
}

</mosaic_0001>

<bundles_post_ra>
// kernel: tpu_custom_call.1
= control target key start
LH: loop header
LB: loop body
LE: loop exit
PB: predicated region body
PF: predicated region fallthrough
CT: control target
= control target key end

     0   :  { %s6631_s0 = inlined_call_operand.vmem [shape: bf16[2,40,256], index: 0, kind: input, shape index: {}]   ;;  %s6632_s1 = inlined_call_operand.vmem [shape: f32[2,120], index: 1, kind: input, shape index: {}]   ;;  %s6633_s2 = inlined_call_operand.vmem [shape: f32[256,128], index: 2, kind: input, shape index: {}]   ;;  %s6634_s3 = inlined_call_operand.vmem [shape: f32[1,128], index: 3, kind: input, shape index: {}]   ;;  %s6635_s4 = inlined_call_operand.vmem [shape: f32[1,128], index: 4, kind: input, shape index: {}]   ;;  %s6636_s5 = inlined_call_operand.vmem [shape: f32[1,128], index: 5, kind: input, shape index: {}]   ;;  %s6637_s6 = inlined_call_operand.vmem [shape: f32[1,120], index: 6, kind: input, shape index: {}]   ;;  %s6638_s7 = inlined_call_operand.vmem [shape: f32[1,120], index: 7, kind: input, shape index: {}]   ;;  %s6639_s8 = inlined_call_operand.vmem [shape: f32[128,64], index: 8, kind: input, shape index: {}]   ;;  %s6640_s9 = inlined_call_operand.vmem [shape: f32[120,64], index: 9, kind: input, shape index: {}]   ;;  %s6641_s10 = inlined_call_operand.vmem [shape: f32[1,64], index: 10, kind: input, shape index: {}]   ;;  %s6642_s11 = inlined_call_operand.vmem [shape: f32[1,64], index: 11, kind: input, shape index: {}]   ;;  %s6643_s12 = inlined_call_operand.<no memory space> [shape: f32[1,1], index: 12, kind: input, shape index: {}]   ;;  %s6644_s13 = inlined_call_operand.hbm [shape: f32[8,128], index: 13, kind: output, shape index: {}]  }
   0x1   :  { %6717 = sst [smem:[#allocation36_spill]] %s6631_s0  ;;  %v18_v0 = vstv %s6643_s12 }
   0x2   :  { %6718 = sst [smem:[#allocation37_spill]] %s6644_s13  ;;  %19 = vst [vmem:[#allocation3] sm:$0x1] %v18_v0 }
   0x3   :  { %20 = vsyncpa [#allocation6], 0  ;;  %s4721_s27 = smov 0   ;;  %s4723_s28 = smov 0  }
   0x4   :  { %s4725_s29 = smov 0   ;;  %s4727_s30 = smov 0  }
   0x5   :  { %s4729_s14 = smov 0  }
   0x6 LB: > { %6719 = sst [smem:[#allocation8_spill]] %s4589_s28  ;;  %s35_s15 = sadd.s32 1, %s4597_s30  ;;  %s4601_s14 = sphi %s4729_s14, %s26_s14   ;;  %s4597_s30 = sphi %s4727_s30, %s6831_s30   ;;  %s4593_s29 = sphi %s4725_s29, %s6830_s29   ;;  %s4589_s28 = sphi %s4723_s28, %s6829_s28   ;;  %s4585_s27 = sphi %s4721_s27, %s6828_s27  }
   0x7   : > { %6720 = sst [smem:[#allocation9_spill]] %s4597_s30  ;;  %p36_p0 = scmp.ge.s32.totalorder %s35_s15, 3 }
   0x8   : > { %p54_p1 = scmp.ne.s32.totalorder %s4589_s28, %s4585_s27  ;;  %p55_p2 = scmp.eq.s32.totalorder %s4601_s14, 0 }
   0x9   : > { %s6833_s15 = smov (%p36_p0, %s35_s15), 0  ;;  %s47_s17 = sadd.s32 1, %s4589_s28 }
   0xa   : > { %6721 = sst [smem:[#allocation10_spill]] %s6833_s15  ;;  %p56_p3 = por %p55_p2, %p54_p1 }
   0xb   : > { %s43_s16 = ssub.s32 %s4597_s30, %s6833_s15  ;;  %p3494_p5 = scmp.ge.s32.totalorder %s4601_s14, 3 }
   0xc   : > { %p45_p4 = scmp.eq.s32.totalorder %s43_s16, 0 }
   0xd   : > { %409 = sbr.rel (%p3494_p5) target bundleno = 69 (0x45), region = 64 }
   0xe   : > { %s4757_s18 = scalar_select %p45_p4, %s4589_s28, %s47_s17  }
  0x10   : > { %6722 = sst [smem:[#allocation11_spill]] %s4757_s18 }
  0x12   : > { %412 = sbr.rel (!%p56_p3) target bundleno = 69 (0x45), region = 68  ;;  %s414_s19 = sand.u32 (%p56_p3), 1, %s4589_s28  }
  0x13   : > { %s3496_s20 = sshll.u32 (%p56_p3), %s4597_s30, 1  ;;  %s3495_s21 = sshll.u32 (%p56_p3), %s414_s19, 7 }
  0x14   : > { %s421_s22 = ssub.s32 (%p56_p3), 5, %s3496_s20  ;;  %s3541_s23 = sshll.u32 (%p56_p3), %s4597_s30, 4 }
  0x15   : > { %p422_p6 = scmp.lt.s32.totalorder (%p56_p3), %s421_s22, 2  ;;  %s6723_s0 = sld [smem:[#allocation36_spill]] (%p56_p3) }
  0x16   : > { %s4771_s17 = scalar_lea.vmem (%p56_p3), [#allocation4], %s3495_s21  }
  0x17   : > { %s6835_s22 = smov (!%p422_p6, %s421_s22), 2 }
  0x18   : > { %s3539_s16 = sshll.u32 %s6835_s22, 8 }
  0x19   : > { %p3502_p7 = scmp.eq.s32.totalorder %s3539_s16, 0 }
  0x1a   : > { %s4774_s12 = sshrl.u32 (!%p3502_p7), %s6835_s22, 1 }
  0x1b   : > { %s4768_s26 = scalar_lea.vmem %s6723_s0, %s3541_s23   ;;  %434 = sbr.rel (%p3502_p7) target bundleno = 69 (0x45), region = 72 }
  0x1c   : > { %p3503_p8 = scmp.le.s32.totalorder (!%p3502_p7), %s4774_s12, 0 }
  0x20   : > { %3411 = sbr.rel (%p3503_p8) target bundleno = 48 (0x30), region = 193  ;;  %s6724_s19 = smov (!%p3503_p8), %s4771_s17 }
  0x21   : > { %s6725_s20 = smov (!%p3503_p8), %s4768_s26  ;;  %s4783_s24 = smov (!%p3503_p8), 0  }
  0x22   : > { %s4785_s23 = smov (!%p3503_p8), 0   ;;  %s4787_s21 = smov (!%p3503_p8), 0  }
  0x25 LB: >> { %v565_v1 = vld [vmem:[%s4609_s20] sm:$0xff]  ;;  %v567_v2 = vld [vmem:[%s4609_s20 + $0x8] sm:$0xff]  ;;  %s573_s25 = sadd.s32 1, %s4613_s24  ;;  %v571_v4 = vld [vmem:[%s4609_s20 + $0x30] sm:$0xff]  ;;  %s576_s16 = sadd.s32 1, %s4617_s23  ;;  %s4621_s21 = sphi %s4787_s21, %s558_s21   ;;  %s4617_s23 = sphi %s4785_s23, %s6727_s23   ;;  %s4613_s24 = sphi %s4783_s24, %s6726_s24   ;;  %s4609_s20 = sphi %s6725_s20, %s586_s20   ;;  %s4605_s19 = sphi %s6724_s19, %s587_s19  }
  0x26   : >> { %v569_v3 = vld [vmem:[%s4609_s20 + $0x28] sm:$0xff]  ;;  %566 = vst [vmem:[%s4605_s19] sm:$0xff] %v565_v1  ;;  %568 = vst [vmem:[%s4605_s19 + $0x8] sm:$0xff] %v567_v2  ;;  %p574_p9 = scmp.ge.s32.totalorder %s573_s25, %s4774_s12  ;;  %s558_s21 = sadd.s32 1, %s4621_s21  }
  0x27   : >> { %570 = vst [vmem:[%s4605_s19 + $0x10] sm:$0xff] %v569_v3  ;;  %572 = vst [vmem:[%s4605_s19 + $0x18] sm:$0xff] %v571_v4  ;;  %p557_p11 = scmp.ge.s32.totalorder %s558_s21, %s4774_s12 }
  0x28   : >> { %s6837_s25 = smov (%p574_p9, %s573_s25), 0  ;;  %s6839_s16 = smov (!%p574_p9, %s576_s16), %s4617_s23 }
  0x29   : >> { %p578_p10 = scmp.ge.s32.totalorder %s6839_s16, 1  ;;  %s3504_s0 = sshll.u32 %s6837_s25, 4 }
  0x2a   : >> { %s6726_s24 = smov %s6837_s25 }
  0x2b   : >> { %s6841_s16 = smov (%p578_p10, %s6839_s16), 0  ;;  %560 = sbr.rel (!%p557_p11) target bundleno = 37 (0x25), region = 199 }
  0x2c   : >> { %s580_s15 = smul.u32 80, %s6841_s16  ;;  %s3505_s30 = sshll.u32 %s6841_s16, 5 }
  0x2d   : >> { %s585_s18 = sadd.s32 %s3505_s30, %s3504_s0  ;;  %s6727_s23 = smov %s6841_s16 }
  0x2e   : >> { %s582_s28 = sadd.s32 %s3504_s0, %s580_s15  ;;  %s587_s19 = scalar_lea.vmem %s4771_s17, %s585_s18 [#allocation4]  }
  0x2f   : >> { %s586_s20 = scalar_lea.vmem %s4768_s26, %s582_s28  }
  0x30 PF: > { %s627_s0 = sand.u32 1, %s6835_s22   ;;  %s3542_s28 = sshll.u32 %s4774_s12, 4 }
  0x31   : > { %s4814_s30 = scalar_lea.vmem %s4768_s26, %s3542_s28   ;;  %s4817_s15 = scalar_lea.vmem %s4771_s17, %s3542_s28 [#allocation4]  }
  0x32   : > { %s4821_s18 = sshll.u32 %s627_s0, 1 }
  0x33   : > { %p3518_p12 = scmp.le.s32.totalorder %s4821_s18, 0 }
  0x34   : > { %s6728_s19 = smov (!%p3518_p12), %s4817_s15  ;;  %s6729_s20 = smov (!%p3518_p12), %s4814_s30 }
  0x35   : > { %3445 = sbr.rel (%p3518_p12) target bundleno = 69 (0x45), region = 215  ;;  %s4830_s24 = smov (!%p3518_p12), 0  }
  0x36   : > { %s4832_s23 = smov (!%p3518_p12), 0   ;;  %s4834_s12 = smov (!%p3518_p12), 0  }
  0x3a LB: >> { %v644_v5 = vld [vmem:[%s4629_s20] sm:$0xff]  ;;  %s646_s26 = sadd.s32 1, %s4633_s24  ;;  %s649_s17 = sadd.s32 1, %s4637_s23  ;;  %s4641_s12 = sphi %s4834_s12, %s637_s12   ;;  %s4637_s23 = sphi %s4832_s23, %s6731_s23   ;;  %s4633_s24 = sphi %s4830_s24, %s6730_s24   ;;  %s4629_s20 = sphi %s6729_s20, %s659_s20   ;;  %s4625_s19 = sphi %s6728_s19, %s660_s19  }
  0x3b   : >> { %645 = vst [vmem:[%s4625_s19] sm:$0xff] %v644_v5  ;;  %p647_p13 = scmp.ge.s32.totalorder %s646_s26, %s627_s0  ;;  %s637_s12 = sadd.s32 1, %s4641_s12  }
  0x3c   : >> { %p636_p1 = scmp.ge.s32.totalorder %s637_s12, %s4821_s18 }
  0x3d   : >> { %s6843_s26 = smov (%p647_p13, %s646_s26), 0  ;;  %s6845_s17 = smov (!%p647_p13, %s649_s17), %s4637_s23 }
  0x3e   : >> { %p651_p0 = scmp.ge.s32.totalorder %s6845_s17, 2  ;;  %s3519_s21 = sshll.u32 %s6843_s26, 3 }
  0x3f   : >> { %s6730_s24 = smov %s6843_s26 }
  0x40   : >> { %s6847_s17 = smov (%p651_p0, %s6845_s17), 0  ;;  %639 = sbr.rel (!%p636_p1) target bundleno = 58 (0x3a), region = 221 }
  0x41   : >> { %s653_s25 = smul.u32 40, %s6847_s17  ;;  %s3520_s16 = sshll.u32 %s6847_s17, 4 }
  0x42   : >> { %s658_s28 = sadd.s32 %s3520_s16, %s3519_s21  ;;  %s6731_s23 = smov %s6847_s17 }
  0x43   : >> { %s655_s13 = sadd.s32 %s3519_s21, %s653_s25  ;;  %s660_s19 = scalar_lea.vmem %s4817_s15, %s658_s28 [#allocation4]  }
  0x44   : >> { %s659_s20 = scalar_lea.vmem %s4814_s30, %s655_s13  }
  0x45 PF: > { %p3522_p2 = scmp.ge.s32.totalorder %s4601_s14, 1  ;;  %p665_p3 = scmp.lt.s32.totalorder %s4601_s14, 4 }
  0x47   : > { %p666_p4 = pnand %p3522_p2, %p665_p3 }
  0x48   : > { %s672_s13 = sand.u32 (!%p666_p4), 1, %s4585_s27   ;;  %p3524_p5 = scmp.ne.s32.totalorder (!%p666_p4), %s4593_s29, 0 }
  0x49   : > { %669 = sbr.rel (%p666_p4) target bundleno = 1442 (0x5a2), region = 134  ;;  %s3523_s21 = sshll.u32 (!%p666_p4), %s672_s13, 7 }
  0x4a   : > { %s4859_s25 = scalar_lea.vmem (!%p666_p4), [#allocation4], %s3523_s21 }
  0x4e   : > { %739 = sbr.rel (%p3524_p5) target bundleno = 85 (0x55), region = 142 }
  0x53   : > { %v4643_v6 = vmov 0.0  }
  0x54   : > { %740 = vst [vmem:[#allocation2] sm:$0xff] %v4643_v6  ;;  %741 = vst [vmem:[#allocation2 + $0x8] sm:$0xff] %v4643_v6 }
  0x55 PF: > { %v745_v7 = vld [vmem:[%s4859_s25] sm:$0xff]  ;;  %v4864_v8 = vld [vmem:[%s4859_s25 + $0x8] sm:$0xff]  ;;  %v747_v9 = vld [vmem:[%s4859_s25 + $0x10] sm:$0xff]  ;;  %v795_v18 = vlaneseq  ;;  %s3525_s27 = sshll.u32 %s4593_s29, 4  ;;  %vm969_vm2 = vcmask 1041409   ;;  %vm971_vm3 = vcmask 1042434  }
  0x56   : > { %v4868_v10 = vld [vmem:[%s4859_s25 + $0x18] sm:$0xff]  ;;  %v749_v11 = vld [vmem:[%s4859_s25 + $0x20] sm:$0xff]  ;;  %v4872_v12 = vld [vmem:[%s4859_s25 + $0x28] sm:$0xff]  ;;  %v761_v15 = vunpack.c.l.bf16 %v745_v7  ;;  %v762_v16 = vunpack.c.h.bf16 %v745_v7  ;;  %v763_v17 = vunpack.c.l.bf16 %v4864_v8  ;;  %v764_v20 = vunpack.c.h.bf16 %v4864_v8  ;;  %p3526_p6 = scmp.ne.s32.totalorder %s4593_s29, 2 }
  0x57   : > { %v4875_v13 = vld [vmem:[%s4859_s25 + $0x30] sm:$0xff]  ;;  %v4878_v14 = vld [vmem:[%s4859_s25 + $0x38] sm:$0xff]  ;;  %v4882_v19 = vld [vmem:[%s4859_s25 + $0x40] sm:$0xff]  ;;  %v765_v21 = vunpack.c.l.bf16 %v747_v9  ;;  %v766_v22 = vunpack.c.h.bf16 %v747_v9  ;;  %v767_v23 = vunpack.c.l.bf16 %v4868_v10  ;;  %v768_v26 = vunpack.c.h.bf16 %v4868_v10 }
  0x58   : > { %v754_v24 = vld [vmem:[%s4859_s25 + $0x48] sm:$0xff]  ;;  %v755_v25 = vld [vmem:[%s4859_s25 + $0x50] sm:$0xff]  ;;  %v769_v27 = vunpack.c.l.bf16 %v749_v11  ;;  %v770_v28 = vunpack.c.h.bf16 %v749_v11  ;;  %v771_v29 = vunpack.c.l.bf16 %v4872_v12  ;;  %v756_v30 = vld [vmem:[%s4859_s25 + $0x58] sm:$0xff]  ;;  %v772_v31 = vunpack.c.h.bf16 %v4872_v12 }
  0x59   : > { %v773_v32 = vunpack.c.l.bf16 %v4875_v13  ;;  %v774_v33 = vunpack.c.h.bf16 %v4875_v13  ;;  %v775_v34 = vunpack.c.l.bf16 %v4878_v14  ;;  %v757_v35 = vld [vmem:[%s4859_s25 + $0x60] sm:$0xff]  ;;  %v758_v36 = vld [vmem:[%s4859_s25 + $0x68] sm:$0xff]  ;;  %v776_v37 = vunpack.c.h.bf16 %v4878_v14  ;;  %v4901_v41 = vld [vmem:[%s4859_s25 + $0x70] sm:$0xff] }
  0x5a   : > { %v777_v38 = vunpack.c.l.bf16 %v4882_v19  ;;  %v796_v39 = vshrl.u32 %v795_v18, 7  ;;  %v798_v40 = vstv %s3525_s27  ;;  %v778_v42 = vunpack.c.h.bf16 %v4882_v19  ;;  %v4905_v46 = vld [vmem:[%s4859_s25 + $0x78] sm:$0xff] }
  0x5b   : > { %v779_v43 = vunpack.c.l.bf16 %v754_v24  ;;  %v780_v44 = vunpack.c.h.bf16 %v754_v24  ;;  %v781_v45 = vunpack.c.l.bf16 %v755_v25  ;;  %v782_v47 = vunpack.c.h.bf16 %v755_v25 }
  0x5c   : > { %v783_v48 = vunpack.c.l.bf16 %v756_v30  ;;  %v797_v49 = vadd.s32 8, %v796_v39  ;;  %v4907_v50 = vadd.s32 %v798_v40, %v796_v39  ;;  %v784_v51 = vunpack.c.h.bf16 %v756_v30 }
  0x5d   : > { %v785_v52 = vunpack.c.l.bf16 %v757_v35  ;;  %v786_v53 = vunpack.c.h.bf16 %v757_v35  ;;  %v787_v54 = vunpack.c.l.bf16 %v758_v36  ;;  %v788_v55 = vunpack.c.h.bf16 %v758_v36 }
  0x5e   : > { %v789_v56 = vunpack.c.l.bf16 %v4901_v41  ;;  %v4910_v57 = vadd.s32 %v798_v40, %v797_v49  ;;  %vm801_vm0 = vcmp.lt.s32.totalorder %v4907_v50, 40  ;;  %v790_v58 = vunpack.c.h.bf16 %v4901_v41 }
  0x5f   : > { %v791_v59 = vunpack.c.l.bf16 %v4905_v46  ;;  %v792_v60 = vunpack.c.h.bf16 %v4905_v46  ;;  %v807_v61 = vsel %vm801_vm0, %v761_v15, 0.0  ;;  %v808_v62 = vsel %vm801_vm0, %v762_v16, 0.0 }
  0x60   : > { %vm802_vm1 = vcmp.lt.s32.totalorder %v4910_v57, 40  ;;  %v811_v63 = vsel %vm801_vm0, %v765_v21, 0.0  ;;  %v812_v0 = vsel %vm801_vm0, %v766_v22, 0.0  ;;  %v815_v2 = vsel %vm801_vm0, %v769_v27, 0.0 }
  0x61   : > { %v809_v1 = vsel %vm802_vm1, %v763_v17, 0.0  ;;  %v816_v3 = vsel %vm801_vm0, %v770_v28, 0.0  ;;  %v819_v4 = vsel %vm801_vm0, %v773_v32, 0.0  ;;  %v810_v5 = vsel %vm802_vm1, %v764_v20, 0.0 }
  0x62   : > { %v813_v6 = vsel %vm802_vm1, %v767_v23, 0.0  ;;  %v814_v7 = vsel %vm802_vm1, %v768_v26, 0.0  ;;  %v817_v8 = vsel %vm802_vm1, %v771_v29, 0.0  ;;  %v818_v9 = vsel %vm802_vm1, %v772_v31, 0.0 }
  0x63   : > { %v820_v10 = vsel %vm801_vm0, %v774_v33, 0.0  ;;  %v821_v11 = vsel %vm802_vm1, %v775_v34, 0.0  ;;  %v822_v12 = vsel %vm802_vm1, %v776_v37, 0.0  ;;  %v4951_v13 = vsel %vm801_vm0, %v777_v38, 0.0 }
  0x64   : > { %v4955_v14 = vsel %vm801_vm0, %v778_v42, 0.0  ;;  %v4959_v15 = vsel %vm802_vm1, %v779_v43, 0.0  ;;  %v4963_v16 = vsel %vm802_vm1, %v780_v44, 0.0  ;;  %v4967_v17 = vsel %vm801_vm0, %v781_v45, 0.0 }
  0x65   : > { %v4971_v18 = vsel %vm801_vm0, %v782_v47, 0.0  ;;  %v4975_v19 = vsel %vm802_vm1, %v783_v48, 0.0  ;;  %v4979_v20 = vsel %vm802_vm1, %v784_v51, 0.0  ;;  %v4983_v21 = vsel %vm801_vm0, %v785_v52, 0.0 }
  0x66   : > { %v4987_v22 = vsel %vm801_vm0, %v786_v53, 0.0  ;;  %v4991_v23 = vsel %vm802_vm1, %v787_v54, 0.0  ;;  %v4995_v24 = vsel %vm802_vm1, %v788_v55, 0.0  ;;  %v4999_v25 = vsel %vm801_vm0, %v789_v56, 0.0 }
  0x67   : > { %v841_v26 = vadd.f32 %v809_v1, %v807_v61  ;;  %v848_v27 = vadd.f32 %v810_v5, %v808_v62  ;;  %v855_v28 = vadd.f32 %v813_v6, %v811_v63  ;;  %v862_v29 = vadd.f32 %v814_v7, %v812_v0 }
  0x68   : > { %v869_v30 = vadd.f32 %v817_v8, %v815_v2  ;;  %v876_v31 = vadd.f32 %v818_v9, %v816_v3  ;;  %v883_v32 = vadd.f32 %v821_v11, %v819_v4  ;;  %v890_v36 = vadd.f32 %v822_v12, %v820_v10 }
  0x69   : > { %v842_v33 = vrot.slane %v841_v26, 4  ;;  %v849_v34 = vrot.slane %v848_v27, 4  ;;  %v856_v35 = vrot.slane %v855_v28, 4  ;;  %v863_v37 = vrot.slane %v862_v29, 4 }
  0x6a   : > { %v870_v38 = vrot.slane %v869_v30, 4  ;;  %v877_v39 = vrot.slane %v876_v31, 4  ;;  %v884_v40 = vrot.slane %v883_v32, 4  ;;  %v891_v45 = vrot.slane %v890_v36, 4 }
  0x6b   : > { %v843_v42 = vadd.f32 %v842_v33, %v841_v26  ;;  %v850_v43 = vadd.f32 %v849_v34, %v848_v27  ;;  %v857_v44 = vadd.f32 %v856_v35, %v855_v28  ;;  %v864_v47 = vadd.f32 %v863_v37, %v862_v29 }
  0x6c   : > { %v871_v48 = vadd.f32 %v870_v38, %v869_v30  ;;  %v878_v49 = vadd.f32 %v877_v39, %v876_v31  ;;  %v885_v51 = vadd.f32 %v884_v40, %v883_v32  ;;  %v892_v55 = vadd.f32 %v891_v45, %v890_v36 }
  0x6d   : > { %v844_v52 = vrot.slane %v843_v42, 2  ;;  %v851_v53 = vrot.slane %v850_v43, 2  ;;  %v858_v54 = vrot.slane %v857_v44, 2  ;;  %v865_v56 = vrot.slane %v864_v47, 2 }
  0x6e   : > { %v872_v61 = vrot.slane %v871_v48, 2  ;;  %v879_v62 = vrot.slane %v878_v49, 2  ;;  %v886_v63 = vrot.slane %v885_v51, 2  ;;  %v893_v3 = vrot.slane %v892_v55, 2 }
  0x6f   : > { %v845_v0 = vadd.f32 %v844_v52, %v843_v42  ;;  %v852_v1 = vadd.f32 %v851_v53, %v850_v43  ;;  %v859_v2 = vadd.f32 %v858_v54, %v857_v44  ;;  %v866_v4 = vadd.f32 %v865_v56, %v864_v47 }
  0x70   : > { %v873_v5 = vadd.f32 %v872_v61, %v871_v48  ;;  %v5001_v6 = vadd.f32 %v879_v62, %v878_v49  ;;  %v5003_v7 = vadd.f32 %v886_v63, %v885_v51  ;;  %v5005_v11 = vadd.f32 %v893_v3, %v892_v55 }
  0x71   : > { %v846_v8 = vrot.slane %v845_v0, 1  ;;  %v853_v9 = vrot.slane %v852_v1, 1  ;;  %v860_v10 = vrot.slane %v859_v2, 1  ;;  %v836_v12 = vsel %vm801_vm0, %v790_v58, 0.0 }
  0x72   : > { %v837_v26 = vsel %vm802_vm1, %v791_v59, 0.0  ;;  %v867_v27 = vrot.slane %v866_v4, 1  ;;  %v874_v28 = vrot.slane %v873_v5, 1  ;;  %v838_v29 = vsel %vm802_vm1, %v792_v60, 0.0 }
  0x73   : > { %v5019_v30 = vadd.f32 %v846_v8, %v845_v0  ;;  %v881_v31 = vrot.slane %v5001_v6, 1  ;;  %v888_v41 = vrot.slane %v5003_v7, 1  ;;  %v5023_v50 = vadd.f32 %v853_v9, %v852_v1 }
  0x74   : > { %v5025_v58 = vadd.f32 %v860_v10, %v859_v2  ;;  %v5027_v32 = vadd.f32 %v867_v27, %v866_v4  ;;  %v895_v59 = vrot.slane %v5005_v11, 1  ;;  %v5030_v33 = vadd.f32 %v874_v28, %v873_v5 }
  0x75   : > { %v897_v46 = vadd.f32 %v4959_v15, %v4951_v13  ;;  %v904_v57 = vadd.f32 %v4963_v16, %v4955_v14  ;;  %v911_v60 = vadd.f32 %v4975_v19, %v4967_v17  ;;  %v918_v34 = vadd.f32 %v4979_v20, %v4971_v18 }
  0x76   : > { %v925_v35 = vadd.f32 %v4991_v23, %v4983_v21  ;;  %v932_v36 = vadd.f32 %v4995_v24, %v4987_v22  ;;  %v939_v37 = vadd.f32 %v837_v26, %v4999_v25  ;;  %v946_v15 = vadd.f32 %v838_v29, %v836_v12 }
  0x77   : > { %v898_v38 = vrot.slane %v897_v46, 4  ;;  %v905_v39 = vrot.slane %v904_v57, 4  ;;  %v912_v13 = vrot.slane %v911_v60, 4  ;;  %v919_v40 = vrot.slane %v918_v34, 4 }
  0x78   : > { %v926_v14 = vrot.slane %v925_v35, 4  ;;  %v933_v16 = vrot.slane %v932_v36, 4  ;;  %v940_v42 = vrot.slane %v939_v37, 4  ;;  %v947_v20 = vrot.slane %v946_v15, 4 }
  0x79   : > { %v899_v17 = vadd.f32 %v898_v38, %v897_v46  ;;  %v906_v19 = vadd.f32 %v905_v39, %v904_v57  ;;  %v913_v18 = vadd.f32 %v912_v13, %v911_v60  ;;  %v920_v21 = vadd.f32 %v919_v40, %v918_v34 }
  0x7a   : > { %v927_v23 = vadd.f32 %v926_v14, %v925_v35  ;;  %v934_v43 = vadd.f32 %v933_v16, %v932_v36  ;;  %v941_v22 = vadd.f32 %v940_v42, %v939_v37  ;;  %vm973_vm4 = vcmask 1043459  }
  0x7b   : > { %v900_v24 = vrot.slane %v899_v17, 2  ;;  %v907_v25 = vrot.slane %v906_v19, 2  ;;  %v914_v44 = vrot.slane %v913_v18, 2  ;;  %v948_v45 = vadd.f32 %v947_v20, %v946_v15 }
  0x7c   : > { %vm975_vm5 = vcmask 1044484   ;;  %v921_v47 = vrot.slane %v920_v21, 2  ;;  %v928_v48 = vrot.slane %v927_v23, 2  ;;  %v935_v49 = vrot.slane %v934_v43, 2 }
  0x7d   : > { %v942_v51 = vrot.slane %v941_v22, 2  ;;  %v901_v52 = vadd.f32 %v900_v24, %v899_v17  ;;  %v908_v53 = vadd.f32 %v907_v25, %v906_v19  ;;  %v915_v54 = vadd.f32 %v914_v44, %v913_v18 }
  0x7e   : > { %v949_v55 = vrot.slane %v948_v45, 2  ;;  %v922_v56 = vadd.f32 %v921_v47, %v920_v21  ;;  %v929_v61 = vadd.f32 %v928_v48, %v927_v23  ;;  %v936_v62 = vadd.f32 %v935_v49, %v934_v43 }
  0x7f   : > { %v943_v63 = vadd.f32 %v942_v51, %v941_v22  ;;  %v902_v0 = vrot.slane %v901_v52, 1  ;;  %v909_v1 = vrot.slane %v908_v53, 1  ;;  %v916_v2 = vrot.slane %v915_v54, 1 }
  0x80   : > { %v950_v3 = vadd.f32 %v949_v55, %v948_v45  ;;  %v882_v4 = vadd.f32 %v881_v31, %v5001_v6  ;;  %v923_v5 = vrot.slane %v922_v56, 1  ;;  %v930_v8 = vrot.slane %v929_v61, 1 }
  0x81   : > { %v937_v9 = vrot.slane %v936_v62, 1  ;;  %v889_v10 = vadd.f32 %v888_v41, %v5003_v7  ;;  %v896_v12 = vadd.f32 %v895_v59, %v5005_v11  ;;  %v944_v26 = vrot.slane %v943_v63, 1 }
  0x82   : > { %v951_v27 = vrot.slane %v950_v3, 1  ;;  %v903_v28 = vadd.f32 %v902_v0, %v901_v52  ;;  %v910_v29 = vadd.f32 %v909_v1, %v908_v53  ;;  %vm977_vm6 = vcmask 1045509  }
  0x83   : > { %vm979_vm7 = vcmask 1046534   ;;  %v917_v46 = vadd.f32 %v916_v2, %v915_v54  ;;  %v924_v57 = vadd.f32 %v923_v5, %v922_v56  ;;  %v970_v60 = vsel %vm969_vm2, %v5025_v58, %v5019_v30  ;;  %v839_v58 = vld [vmem:[#allocation2] sm:$0xff] }
  0x84   : > { %v983_v6 = vsel %vm969_vm2, %v5027_v32, %v5023_v50  ;;  %v931_v31 = vadd.f32 %v930_v8, %v929_v61  ;;  %v938_v7 = vadd.f32 %v937_v9, %v936_v62  ;;  %v972_v11 = vsel %vm971_vm3, %v5030_v33, %v970_v60  ;;  %v840_v50 = vld [vmem:[#allocation2 + $0x8] sm:$0xff] }
  0x85   : > { %v984_v41 = vsel %vm971_vm3, %v882_v4, %v983_v6  ;;  %v945_v59 = vadd.f32 %v944_v26, %v943_v63  ;;  %v952_v34 = vadd.f32 %v951_v27, %v950_v3  ;;  %v974_v35 = vsel %vm973_vm4, %v889_v10, %v972_v11 }
  0x86   : > { %v985_v36 = vsel %vm973_vm4, %v896_v12, %v984_v41  ;;  %v976_v37 = vsel %vm975_vm5, %v903_v28, %v974_v35  ;;  %vm981_vm8 = vcmask 1047559  }
  0x87   : > { %v986_v30 = vsel %vm975_vm5, %v910_v29, %v985_v36  ;;  %v978_v32 = vsel %vm977_vm6, %v917_v46, %v976_v37 }
  0x88   : > { %v987_v38 = vsel %vm977_vm6, %v924_v57, %v986_v30  ;;  %v980_v33 = vsel %vm979_vm7, %v931_v31, %v978_v32 }
  0x89   : > { %v988_v39 = vsel %vm979_vm7, %v938_v7, %v987_v38  ;;  %v982_v13 = vsel %vm981_vm8, %v945_v59, %v980_v33  ;;  %999 = sbr.rel (%p3526_p6) target bundleno = 1421 (0x58d), region = 146 }
  0x8a   : > { %v989_v15 = vsel %vm981_vm8, %v952_v34, %v988_v39  ;;  %v992_v40 = vadd.f32 %v982_v13, %v839_v58 }
  0x8b   : > { %v993_v14 = vadd.f32 %v989_v15, %v840_v50 }
  0x8c   : > { %994 = vst [vmem:[#allocation2] sm:$0xff] %v992_v40 }
  0x8d   : > { %995 = vst [vmem:[#allocation2 + $0x8] sm:$0xff] %v993_v14 }
  0x8e   : > { %v1033_v16 = vld [vmem:[%s6633_s2 + $0xf8] sm:$0xff]  ;;  %v1032_v17 = vld [vmem:[%s6633_s2 + $0xf0] sm:$0xff]  ;;  %v1031_v23 = vld [vmem:[%s6633_s2 + $0xe8] sm:$0xff]  ;;  %vm1906_vm9 = vcmask 982016   ;;  %vm4645_vm10 = vmmov 0   ;;  %vm3279_vm11 = vcmask 523264  }
  0x8f   : > { %v1017_v42 = vld [vmem:[%s6633_s2 + $0x78] sm:$0xff]  ;;  %v5075_v19 = vand.u32 4294901760, %v1033_v16  ;;  %v5079_v20 = vand.u32 4294901760, %v1032_v17  ;;  %v1016_v21 = vld [vmem:[%s6633_s2 + $0x70] sm:$0xff]  ;;  %v1015_v43 = vld [vmem:[%s6633_s2 + $0x68] sm:$0xff]  ;;  %v5092_v24 = vand.u32 4294901760, %v1031_v23 }
  0x90   : > { %v5077_v18 = vand.u32 4294901760, %v1017_v42  ;;  %v5090_v22 = vand.u32 4294901760, %v1016_v21  ;;  %v5094_v25 = vand.u32 4294901760, %v1015_v43  ;;  %v1030_v44 = vld [vmem:[%s6633_s2 + $0xe0] sm:$0xff]  ;;  %v1029_v47 = vld [vmem:[%s6633_s2 + $0xd8] sm:$0xff]  ;;  %v5123_v54 = vld [vmem:[%s6633_s2 + $0xd0] sm:$0xff] }
  0x91   : > { %v1014_v45 = vld [vmem:[%s6633_s2 + $0x60] sm:$0xff]  ;;  %3544 = vmatprep.subr.mxu0 %v5075_v19  ;;  %v5106_v48 = vand.u32 4294901760, %v1030_v44  ;;  %v5110_v51 = vand.u32 4294901760, %v1029_v47  ;;  %v5113_v52 = vsub.f32 %v1033_v16, %v5075_v19  ;;  %v5118_v53 = vld [vmem:[%s6633_s2 + $0x58] sm:$0xff]  ;;  %v5128_v55 = vld [vmem:[%s6633_s2 + $0x50] sm:$0xff]  ;;  %v5138_v62 = vand.u32 4294901760, %v5123_v54 }
  0x92   : > { %v5108_v49 = vand.u32 4294901760, %v1014_v45  ;;  %3545 = vmatpush3.msra.mxu0 %v5077_v18  ;;  %v5132_v56 = vand.u32 4294901760, %v5118_v53  ;;  %v5135_v61 = vsub.f32 %v1017_v42, %v5077_v18  ;;  %v5141_v63 = vsub.f32 %v1032_v17, %v5079_v20  ;;  %v5146_v0 = vld [vmem:[%s6633_s2 + $0xc8] sm:$0xff]  ;;  %v5156_v2 = vld [vmem:[%s6633_s2 + $0xc0] sm:$0xff]  ;;  %v5208_v11 = vld [vmem:[%s6633_s2 + $0xb8] sm:$0xff] }
  0x93   : > { %6732 = vst [vmem:[#allocation12_spill] sm:$0xff] %v5138_v62  ;;  %v5151_v1 = vld [vmem:[%s6633_s2 + $0x48] sm:$0xff]  ;;  %3546 = vmatprep.subr.mxu0 %v5079_v20  ;;  %v6661_v3 = vand.u32 4294901760, %v5113_v52  ;;  %v5161_v4 = vand.u32 4294901760, %v5128_v55  ;;  %v5164_v5 = vsub.f32 %v1016_v21, %v5090_v22  ;;  %v5167_v8 = vand.u32 4294901760, %v5146_v0  ;;  %v5181_v27 = vld [vmem:[%s6633_s2 + $0x40] sm:$0xff] }
  0x94   : > { %3547 = vmatpush3.msra.mxu0 %v5090_v22  ;;  %v6660_v9 = vand.u32 4294901760, %v5135_v61  ;;  %v6658_v10 = vand.u32 4294901760, %v5141_v63  ;;  %v5173_v12 = vsub.f32 %v1031_v23, %v5092_v24  ;;  %v5176_v26 = vand.u32 4294901760, %v5151_v1  ;;  %v5221_v36 = vld [vmem:[%s6633_s2 + $0x38] sm:$0xff]  ;;  %v5231_v32 = vld [vmem:[%s6633_s2 + $0xb0] sm:$0xff]  ;;  %v5261_v17 = vld [vmem:[%s6633_s2 + $0xa8] sm:$0xff] }
  0x95   : > { %6733 = vst [vmem:[#allocation13_spill] sm:$0xff] %v5161_v4  ;;  %6734 = vst [vmem:[#allocation14_spill] sm:$0xff] %v5167_v8  ;;  %3548 = vmatprep.subr.mxu0 %v5092_v24  ;;  %v1269_v28 = vsub.f32 %v5113_v52, %v6661_v3  ;;  %v6657_v29 = vand.u32 4294901760, %v5164_v5  ;;  %v5189_v46 = vsub.f32 %v1015_v43, %v5094_v25  ;;  %v5192_v57 = vand.u32 4294901760, %v5156_v2  ;;  %v5246_v15 = vld [vmem:[%s6633_s2 + $0x30] sm:$0xff] }
  0x96   : > { %6735 = vst [vmem:[#allocation15_spill] sm:$0xff] %v5176_v26  ;;  %3549 = vmatpush3.msra.mxu0 %v5094_v25  ;;  %v1157_v60 = vsub.f32 %v5135_v61, %v6660_v9  ;;  %v1276_v6 = vsub.f32 %v5141_v63, %v6658_v10  ;;  %v6655_v31 = vand.u32 4294901760, %v5173_v12  ;;  %v5203_v7 = vsub.f32 %v1030_v44, %v5106_v48  ;;  %v5397_v9 = vld [vmem:[%s6633_s2 + $0x88] sm:$0xff] }
  0x97   : > { %6736 = vst [vmem:[#allocation16_spill] sm:$0xff] %v5192_v57  ;;  %3550 = vmatprep.subr.mxu0 %v5106_v48  ;;  %v1270_v41 = vand.u32 4294901760, %v1269_v28  ;;  %v1164_v59 = vsub.f32 %v5164_v5, %v6657_v29  ;;  %v6653_v34 = vand.u32 4294901760, %v5189_v46  ;;  %v5216_v35 = vand.u32 4294901760, %v5181_v27 }
  0x98   : > { %3551 = vmatpush3.msra.mxu0 %v5108_v49  ;;  %v1158_v37 = vand.u32 4294901760, %v1157_v60  ;;  %v1277_v30 = vand.u32 4294901760, %v1276_v6  ;;  %v1283_v58 = vsub.f32 %v5173_v12, %v6655_v31  ;;  %v6652_v50 = vand.u32 4294901760, %v5203_v7  ;;  %v5370_v31 = vld [vmem:[%s6633_s2 + $0x90] sm:$0xff] }
  0x99   : > { %6737 = vst [vmem:[#allocation17_spill] sm:$0xff] %v5216_v35  ;;  %3552 = vmatprep.subr.mxu0 %v5110_v51  ;;  %3579 = vmatprep.subr.mxu1 %v1270_v41  ;;  %v1165_v38 = vand.u32 4294901760, %v1164_v59  ;;  %v1171_v33 = vsub.f32 %v5189_v46, %v6653_v34  ;;  %v5238_v39 = vsub.f32 %v1014_v45, %v5108_v49  ;;  %v5241_v13 = vand.u32 4294901760, %v5208_v11  ;;  %v5275_v45 = vld [vmem:[%s6633_s2 + $0x28] sm:$0xff]  ;;  %v5354_v34 = vld [vmem:[%s6633_s2 + $0x18] sm:$0xff] }
  0x9a   : > { %3553 = vmatpush3.msra.mxu0 %v5132_v56  ;;  %3580 = vmatpush3.msra.mxu1 %v1158_v37  ;;  %v1284_v40 = vand.u32 4294901760, %v1283_v58  ;;  %v1290_v14 = vsub.f32 %v5203_v7, %v6652_v50  ;;  %v5253_v16 = vsub.f32 %v1029_v47, %v5110_v51  ;;  %v5256_v42 = vand.u32 4294901760, %v5221_v36 }
  0x9b   : > { %6738 = vst [vmem:[#allocation18_spill] sm:$0xff] %v5241_v13  ;;  %3554 = vmatprep.subr.mxu0 %v5138_v62  ;;  %3581 = vmatprep.subr.mxu1 %v1277_v30  ;;  %v1172_v21 = vand.u32 4294901760, %v1171_v33  ;;  %v6650_v23 = vand.u32 4294901760, %v5238_v39  ;;  %v5267_v43 = vsub.f32 %v5118_v53, %v5132_v56  ;;  %v5270_v44 = vand.u32 4294901760, %v5231_v32 }
  0x9c   : > { %6739 = vst [vmem:[#allocation19_spill] sm:$0xff] %v5256_v42  ;;  %3555 = vmatpush3.msra.mxu0 %v5161_v4  ;;  %3582 = vmatpush3.msra.mxu1 %v1165_v38  ;;  %v1291_v47 = vand.u32 4294901760, %v1290_v14  ;;  %v6648_v28 = vand.u32 4294901760, %v5253_v16  ;;  %v5281_v60 = vsub.f32 %v5123_v54, %v5138_v62  ;;  %v5284_v53 = vand.u32 4294901760, %v5246_v15  ;;  %v5301_v54 = vld [vmem:[%s6633_s2 + $0xa0] sm:$0xff] }
  0x9d   : > { %6740 = vst [vmem:[#allocation20_spill] sm:$0xff] %v5270_v44  ;;  %3556 = vmatprep.subr.mxu0 %v5167_v8  ;;  %3583 = vmatprep.subr.mxu1 %v1284_v40  ;;  %v1178_v6 = vsub.f32 %v5238_v39, %v6650_v23  ;;  %v6649_v41 = vand.u32 4294901760, %v5267_v43  ;;  %v5293_v59 = vsub.f32 %v5128_v55, %v5161_v4  ;;  %v5296_v37 = vand.u32 4294901760, %v5261_v17 }
  0x9e   : > { %6741 = vst [vmem:[#allocation21_spill] sm:$0xff] %v5284_v53  ;;  %3557 = vmatpush3.msra.mxu0 %v5176_v26  ;;  %3584 = vmatpush3.msra.mxu1 %v1172_v21  ;;  %v1297_v30 = vsub.f32 %v5253_v16, %v6648_v28  ;;  %v6651_v58 = vand.u32 4294901760, %v5281_v60  ;;  %v5310_v55 = vsub.f32 %v5146_v0, %v5167_v8  ;;  %v5313_v38 = vand.u32 4294901760, %v5275_v45  ;;  %v5327_v0 = vld [vmem:[%s6633_s2 + $0x20] sm:$0xff] }
  0x9f   : > { %6742 = vst [vmem:[#allocation22_spill] sm:$0xff] %v5296_v37  ;;  %3558 = vmatprep.subr.mxu0 %v5192_v57  ;;  %3585 = vmatprep.subr.mxu1 %v1291_v47  ;;  %v1179_v33 = vand.u32 4294901760, %v1178_v6  ;;  %v1185_v40 = vsub.f32 %v5267_v43, %v6649_v41  ;;  %v6654_v14 = vand.u32 4294901760, %v5293_v59  ;;  %v5322_v21 = vsub.f32 %v5151_v1, %v5176_v26  ;;  %v5340_v1 = vld [vmem:[%s6633_s2 + $0x98] sm:$0xff] }
  0xa0   : > { %6743 = vst [vmem:[#allocation23_spill] sm:$0xff] %v5313_v38  ;;  %3559 = vmatpush3.msra.mxu0 %v5216_v35  ;;  %v1298_v28 = vand.u32 4294901760, %v1297_v30  ;;  %v1304_v47 = vsub.f32 %v5281_v60, %v6651_v58  ;;  %v6656_v6 = vand.u32 4294901760, %v5310_v55  ;;  %v5335_v41 = vand.u32 4294901760, %v5301_v54 }
  0xa1   : > { %3586 = vmatpush3.msra.mxu1 %v1179_v33  ;;  %3560 = vmatprep.subr.mxu0 %v5241_v13  ;;  %v1186_v23 = vand.u32 4294901760, %v1185_v40  ;;  %v1192_v30 = vsub.f32 %v5293_v59, %v6654_v14  ;;  %v6659_v58 = vand.u32 4294901760, %v5322_v21  ;;  %v5349_v50 = vsub.f32 %v5156_v2, %v5192_v57 }
  0xa2   : > { %6744 = vst [vmem:[#allocation24_spill] sm:$0xff] %v5335_v41  ;;  %3587 = vmatprep.subr.mxu1 %v1298_v28  ;;  %3561 = vmatpush3.msra.mxu0 %v5256_v42  ;;  %v1305_v33 = vand.u32 4294901760, %v1304_v47  ;;  %v1311_v40 = vsub.f32 %v5310_v55, %v6656_v6  ;;  %v5361_v14 = vand.u32 4294901760, %v5327_v0  ;;  %v5365_v2 = vsub.f32 %v5181_v27, %v5216_v35  ;;  %v5383_v27 = vld [vmem:[%s6633_s2 + $0x10] sm:$0xff] }
  0xa3   : > { %3588 = vmatpush3.msra.mxu1 %v1186_v23  ;;  %3562 = vmatprep.subr.mxu0 %v5270_v44  ;;  %v1193_v28 = vand.u32 4294901760, %v1192_v30  ;;  %v1199_v47 = vsub.f32 %v5322_v21, %v6659_v58  ;;  %v6664_v6 = vand.u32 4294901760, %v5349_v50  ;;  %v5378_v29 = vand.u32 4294901760, %v5340_v1 }
  0xa4   : > { %6745 = vst [vmem:[#allocation25_spill] sm:$0xff] %v5361_v14  ;;  %3589 = vmatprep.subr.mxu1 %v1305_v33  ;;  %3563 = vmatpush3.msra.mxu0 %v5284_v53  ;;  %v1312_v23 = vand.u32 4294901760, %v1311_v40  ;;  %v6665_v30 = vand.u32 4294901760, %v5365_v2  ;;  %v5389_v10 = vsub.f32 %v5208_v11, %v5241_v13  ;;  %v5392_v58 = vand.u32 4294901760, %v5354_v34 }
  0xa5   : > { %3590 = vmatpush3.msra.mxu1 %v1193_v28  ;;  %3564 = vmatprep.subr.mxu0 %v5296_v37  ;;  %v1200_v33 = vand.u32 4294901760, %v1199_v47  ;;  %v1318_v40 = vsub.f32 %v5349_v50, %v6664_v6  ;;  %v5405_v11 = vsub.f32 %v5221_v36, %v5256_v42  ;;  %v5408_v3 = vand.u32 4294901760, %v5370_v31  ;;  %v5425_v36 = vld [vmem:[%s6633_s2 + $0x8] sm:$0xff] }
  0xa6   : > { %6746 = vst [vmem:[#allocation26_spill] sm:$0xff] %v5392_v58  ;;  %3591 = vmatprep.subr.mxu1 %v1312_v23  ;;  %3565 = vmatpush3.msra.mxu0 %v5313_v38  ;;  %v1206_v28 = vsub.f32 %v5365_v2, %v6665_v30  ;;  %v5417_v13 = vsub.f32 %v5231_v32, %v5270_v44  ;;  %v5420_v6 = vand.u32 4294901760, %v5383_v27  ;;  %v5434_v32 = vand.u32 4294901760, %v5397_v9  ;;  %v5439_v44 = vld [vmem:[%s6633_s2 + $0x80] sm:$0xff] }
  0xa7   : > { %6747 = vst [vmem:[#allocation27_spill] sm:$0xff] %v5408_v3  ;;  %3592 = vmatpush3.msra.mxu1 %v1200_v33  ;;  %3566 = vmatprep.subr.mxu0 %v5335_v41  ;;  %v1319_v23 = vand.u32 4294901760, %v1318_v40  ;;  %v5431_v47 = vsub.f32 %v5246_v15, %v5284_v53  ;;  %v6750_v42 = vand.u32 4294901760, %v5389_v10  ;;  %v5448_v15 = vsub.f32 %v5261_v17, %v5296_v37  ;;  %v5465_v17 = vld [vmem:[%s6633_s2] sm:$0xff] }
  0xa8   : > { %6748 = vst [vmem:[#allocation28_spill] sm:$0xff] %v5420_v6  ;;  %6749 = vst [vmem:[#allocation29_spill] sm:$0xff] %v5434_v32  ;;  %3567 = vmatpush3.msra.mxu0 %v5361_v14  ;;  %v1207_v33 = vand.u32 4294901760, %v1206_v28  ;;  %v6684_v30 = vand.u32 4294901760, %v5417_v13  ;;  %v6752_v53 = vand.u32 4294901760, %v5405_v11  ;;  %v5456_v28 = vand.u32 4294901760, %v5425_v36 }
  0xa9   : > { %v1325_v40 = vsub.f32 %v5389_v10, %v6750_v42  ;;  %6751 = vst [vmem:[#allocation30_spill] sm:$0xff] %v5448_v15  ;;  %3593 = vmatprep.subr.mxu1 %v1319_v23  ;;  %3568 = vmatprep.subr.mxu0 %v5378_v29  ;;  %v5460_v42 = vsub.f32 %v5275_v45, %v5313_v38  ;;  %v5473_v37 = vand.u32 4294901760, %v5439_v44  ;;  %v1001_v45 = vld [vmem:[#allocation2 + $0x8] sm:$0xff]  ;;  %v6753_v26 = vand.u32 4294901760, %v5431_v47 }
  0xaa   : > { %v1213_v35 = vsub.f32 %v5405_v11, %v6752_v53  ;;  %3594 = vmatpush3.msra.mxu1 %v1207_v33  ;;  %3569 = vmatpush3.msra.mxu0 %v5392_v58  ;;  %v1332_v53 = vsub.f32 %v5417_v13, %v6684_v30  ;;  %v5482_v8 = vsub.f32 %v5301_v54, %v5335_v41  ;;  %v1000_v30 = vld [vmem:[#allocation2] sm:$0xff]  ;;  %v6754_v4 = vand.u32 4294901760, %v5448_v15 }
  0xab   : > { %v1326_v23 = vand.u32 4294901760, %v1325_v40  ;;  %3570 = vmatprep.subr.mxu0 %v5408_v3  ;;  %v1220_v33 = vsub.f32 %v5431_v47, %v6753_v26  ;;  %v5489_v62 = vand.u32 4294901760, %v5465_v17  ;;  %v5493_v26 = vsub.f32 %v5327_v0, %v5361_v14 }
  0xac   : > { %v1214_v38 = vand.u32 4294901760, %v1213_v35  ;;  %v1333_v57 = vand.u32 4294901760, %v1332_v53  ;;  %3571 = vmatpush3.msra.mxu0 %v5420_v6  ;;  %v1339_v35 = vsub.f32 %v5448_v15, %v6754_v4  ;;  %v6755_v54 = vand.u32 4294901760, %v5460_v42 }
  0xad   : > { %3595 = vmatprep.subr.mxu1 %v1326_v23  ;;  %v1221_v40 = vand.u32 4294901760, %v1220_v33  ;;  %3572 = vmatprep.subr.mxu0 %v5434_v32  ;;  %v6693_v53 = vand.u32 4294901760, %v5482_v8  ;;  %v5500_v41 = vand.u32 4294901760, %v1001_v45  ;;  %v6694_v15 = vand.u32 4294901760, %v5493_v26 }
  0xae   : > { %3596 = vmatpush3.msra.mxu1 %v1214_v38  ;;  %v1227_v23 = vsub.f32 %v5460_v42, %v6755_v54  ;;  %v1340_v4 = vand.u32 4294901760, %v1339_v35  ;;  %3573 = vmatpush3.msra.mxu0 %v5456_v28  ;;  %v5506_v38 = vsub.f32 %v5340_v1, %v5378_v29  ;;  %v5508_v0 = vand.u32 4294901760, %v1000_v30 }
  0xaf   : > { %6756 = vst [vmem:[#allocation31_spill] sm:$0xff] %v5500_v41  ;;  %3597 = vmatprep.subr.mxu1 %v1333_v57  ;;  %3574 = vmatprep.subr.mxu0 %v5473_v37  ;;  %v1346_v54 = vsub.f32 %v5482_v8, %v6693_v53  ;;  %v5515_v57 = vsub.f32 %v1001_v45, %v5500_v41 }
  0xb0   : > { %6757 = vst [vmem:[#allocation32_spill] sm:$0xff] %v5508_v0  ;;  %3598 = vmatpush3.msra.mxu1 %v1221_v40  ;;  %v1228_v33 = vand.u32 4294901760, %v1227_v23  ;;  %v5519_v35 = vsub.f32 %v5354_v34, %v5392_v58  ;;  %3575 = vmatpush3.msra.mxu0 %v5489_v62  ;;  %v1234_v1 = vsub.f32 %v5493_v26, %v6694_v15 }
  0xb1   : > { %3599 = vmatprep.subr.mxu1 %v1340_v4  ;;  %v5527_v23 = vsub.f32 %v1000_v30, %v5508_v0  ;;  %v5531_v45 = vsub.f32 %v5370_v31, %v5408_v3  ;;  %v1347_v53 = vand.u32 4294901760, %v1346_v54  ;;  %v6699_v34 = vand.u32 4294901760, %v5515_v57  ;;  %3614 = vmatprep.subr.mxu0 %v5113_v52 }
  0xb2   : > { %3600 = vmatpush3.msra.mxu1 %v1228_v33  ;;  %v6702_v4 = vand.u32 4294901760, %v5519_v35  ;;  %v5538_v15 = vsub.f32 %v5383_v27, %v5420_v6  ;;  %v1235_v40 = vand.u32 4294901760, %v1234_v1  ;;  %v6758_v30 = vand.u32 4294901760, %v5506_v38  ;;  %1378 = vmatprep.mubr.f32.mxu1 %v5500_v41 }
  0xb3   : > { %3601 = vmatprep.subr.mxu1 %v1347_v53  ;;  %v1140_v54 = vsub.f32 %v5515_v57, %v6699_v34  ;;  %v6759_v33 = vand.u32 4294901760, %v5527_v23  ;;  %v6760_v41 = vand.u32 4294901760, %v5531_v45  ;;  %v5565_v6 = vsub.f32 %v5425_v36, %v5456_v28 }
  0xb4   : > { %v1353_v58 = vsub.f32 %v5506_v38, %v6758_v30  ;;  %v1241_v27 = vsub.f32 %v5519_v35, %v6702_v4  ;;  %v5555_v30 = vsub.f32 %v5397_v9, %v5434_v32  ;;  %3602 = vmatpush3.msra.mxu1 %v1235_v40  ;;  %v6762_v3 = vand.u32 4294901760, %v5538_v15 }
  0xb5   : > { %v1146_v53 = vsub.f32 %v5527_v23, %v6759_v33  ;;  %v1360_v34 = vsub.f32 %v5531_v45, %v6760_v41  ;;  %6761 = vst [vmem:[#allocation33_spill] sm:$0xff] %v5565_v6  ;;  %v1141_v4 = vand.u32 4294901760, %v1140_v54  ;;  %v6709_v33 = vand.u32 4294901760, %v5565_v6 }
  0xb6   : > { %v1354_v31 = vand.u32 4294901760, %v1353_v58  ;;  %v1242_v1 = vand.u32 4294901760, %v1241_v27  ;;  %v1248_v9 = vsub.f32 %v5538_v15, %v6762_v3  ;;  %v6710_v58 = vand.u32 4294901760, %v5555_v30 }
  0xb7   : > { %v1147_v40 = vand.u32 4294901760, %v1146_v53  ;;  %v1361_v32 = vand.u32 4294901760, %v1360_v34  ;;  %v5574_v41 = vsub.f32 %v5439_v44, %v5473_v37  ;;  %1142 = vmatprep.mubr.f32.mxu0 %v1141_v4  ;;  %v5581_v3 = vsub.f32 %v5465_v17, %v5489_v62 }
  0xb8   : > { %3603 = vmatprep.subr.mxu1 %v1354_v31  ;;  %v1249_v36 = vand.u32 4294901760, %v1248_v9  ;;  %v1367_v54 = vsub.f32 %v5555_v30, %v6710_v58  ;;  %v1255_v34 = vsub.f32 %v5565_v6, %v6709_v33  ;;  %v6765_v9 = vld [vmem:[#allocation12_spill] sm:$0xff]  ;;  %v6779_v58 = vand.u32 4294901760, %v5113_v52 }
  0xb9   : > { %6763 = vst [vmem:[#allocation34_spill] sm:$0xff] %v5574_v41  ;;  %3604 = vmatpush3.msra.mxu1 %v1242_v1  ;;  %6764 = vst [vmem:[#allocation35_spill] sm:$0xff] %v5581_v3  ;;  %1148 = vmatmul.mubr.f32.vlgmr.msra.gmra.mxu0 %v1147_v40  ;;  %v6708_v44 = vand.u32 4294901760, %v5574_v41  ;;  %v6707_v31 = vand.u32 4294901760, %v5581_v3  ;;  %v6766_v40 = vld [vmem:[#allocation13_spill] sm:$0xff]  ;;  %v6778_v33 = vld [vmem:[#allocation24_spill] sm:$0xff] }
  0xba   : > { %3605 = vmatprep.subr.mxu1 %v1361_v32  ;;  %3615 = vmatpush3.msra.mxu0 %v5135_v61  ;;  %v1368_v4 = vand.u32 4294901760, %v1367_v54  ;;  %v1256_v27 = vand.u32 4294901760, %v1255_v34  ;;  %v6768_v54 = vld [vmem:[#allocation14_spill] sm:$0xff]  ;;  %v6769_v34 = vld [vmem:[#allocation15_spill] sm:$0xff]  ;;  %v6787_v52 = vand.u32 4294901760, %v5173_v12 }
  0xbb   : > { %3606 = vmatpush3.msra.mxu1 %v1249_v36  ;;  %3616 = vmatprep.subr.mxu0 %v5141_v63  ;;  %v1374_v17 = vsub.f32 %v5574_v41, %v6708_v44  ;;  %v1262_v32 = vsub.f32 %v5581_v3, %v6707_v31  ;;  %v6767_v36 = vld [vmem:[#allocation30_spill] sm:$0xff]  ;;  %v6777_v44 = vld [vmem:[#allocation23_spill] sm:$0xff] }
  0xbc   : > { %1515 = vmatprep.mubr.f32.mxu0 %v5515_v57  ;;  %3617 = vmatpush3.msra.mxu0 %v5164_v5  ;;  %v6776_v31 = vld [vmem:[#allocation22_spill] sm:$0xff] }
  0xbd   : > { %3607 = vmatprep.subr.mxu1 %v1368_v4  ;;  %3618 = vmatprep.subr.mxu0 %v5173_v12  ;;  %v1375_v1 = vand.u32 4294901760, %v1374_v17  ;;  %v1263_v53 = vand.u32 4294901760, %v1262_v32  ;;  %v6770_v4 = vld [vmem:[#allocation16_spill] sm:$0xff]  ;;  %v6772_v17 = vld [vmem:[#allocation18_spill] sm:$0xff]  ;;  %v6773_v32 = vld [vmem:[#allocation19_spill] sm:$0xff]  ;;  %v6792_v12 = vand.u32 4294901760, %v5527_v23 }
  0xbe   : > { %3608 = vmatpush3.msra.mxu1 %v1256_v27  ;;  %3619 = vmatpush3.msra.mxu0 %v5189_v46  ;;  %v6771_v27 = vld [vmem:[#allocation17_spill] sm:$0xff] }
  0xbf   : > { %3609 = vmatprep.subr.mxu1 %v1375_v1  ;;  %3620 = vmatprep.subr.mxu0 %v5203_v7  ;;  %v6774_v1 = vld [vmem:[#allocation20_spill] sm:$0xff] }
  0xc0   : > { %3610 = vmatpush3.msra.mxu1 %v1263_v53  ;;  %3621 = vmatpush3.msra.mxu0 %v5238_v39  ;;  %v6775_v53 = vld [vmem:[#allocation21_spill] sm:$0xff] }
  0xc1   : > { %1380 = vmatmul.mubr.f32.vlgmr.msra.gmra.mxu1 %v5508_v0  ;;  %3622 = vmatprep.subr.mxu0 %v5253_v16  ;;  %v6780_v0 = vld [vmem:[#allocation26_spill] sm:$0xff] }
  0xc2   : > { %3649 = vmatprep.subr.mxu1 %v5075_v19  ;;  %3623 = vmatpush3.msra.mxu0 %v5267_v43 }
  0xc3   : > { %3650 = vmatpush3.msra.mxu1 %v5077_v18  ;;  %3624 = vmatprep.subr.mxu0 %v5281_v60 }
  0xc4   : > { %3651 = vmatprep.subr.mxu1 %v5079_v20  ;;  %3625 = vmatpush3.msra.mxu0 %v5293_v59 }
  0xc5   : > { %3652 = vmatpush3.msra.mxu1 %v5090_v22  ;;  %3626 = vmatprep.subr.mxu0 %v5310_v55 }
  0xc6   : > { %3653 = vmatprep.subr.mxu1 %v5092_v24  ;;  %3627 = vmatpush3.msra.mxu0 %v5322_v21 }
  0xc7   : > { %3654 = vmatpush3.msra.mxu1 %v5094_v25  ;;  %3628 = vmatprep.subr.mxu0 %v5349_v50 }
  0xc8   : > { %3655 = vmatprep.subr.mxu1 %v5106_v48  ;;  %3629 = vmatpush3.msra.mxu0 %v5365_v2 }
  0xc9   : > { %3656 = vmatpush3.msra.mxu1 %v5108_v49  ;;  %3630 = vmatprep.subr.mxu0 %v5389_v10 }
  0xca   : > { %3657 = vmatprep.subr.mxu1 %v5110_v51  ;;  %3631 = vmatpush3.msra.mxu0 %v5405_v11 }
  0xcb   : > { %3658 = vmatpush3.msra.mxu1 %v5132_v56  ;;  %3632 = vmatprep.subr.mxu0 %v5417_v13 }
  0xcc   : > { %3659 = vmatprep.subr.mxu1 %v6765_v9  ;;  %3633 = vmatpush3.msra.mxu0 %v5431_v47 }
  0xcd   : > { %3660 = vmatpush3.msra.mxu1 %v6766_v40  ;;  %3634 = vmatprep.subr.mxu0 %v6767_v36 }
  0xce   : > { %3661 = vmatprep.subr.mxu1 %v6768_v54  ;;  %3635 = vmatpush3.msra.mxu0 %v5460_v42 }
  0xcf   : > { %3662 = vmatpush3.msra.mxu1 %v6769_v34  ;;  %3636 = vmatprep.subr.mxu0 %v5482_v8 }
  0xd0   : > { %3663 = vmatprep.subr.mxu1 %v6770_v4  ;;  %3637 = vmatpush3.msra.mxu0 %v5493_v26 }
  0xd1   : > { %3664 = vmatpush3.msra.mxu1 %v6771_v27  ;;  %3638 = vmatprep.subr.mxu0 %v5506_v38 }
  0xd2   : > { %3665 = vmatprep.subr.mxu1 %v6772_v17  ;;  %3639 = vmatpush3.msra.mxu0 %v5519_v35 }
  0xd3   : > { %3666 = vmatpush3.msra.mxu1 %v6773_v32  ;;  %3640 = vmatprep.subr.mxu0 %v5531_v45 }
  0xd4   : > { %3667 = vmatprep.subr.mxu1 %v6774_v1  ;;  %3641 = vmatpush3.msra.mxu0 %v5538_v15 }
  0xd5   : > { %3668 = vmatpush3.msra.mxu1 %v6775_v53  ;;  %3642 = vmatprep.subr.mxu0 %v5555_v30 }
  0xd6   : > { %3669 = vmatprep.subr.mxu1 %v6776_v31  ;;  %3643 = vmatpush3.msra.mxu0 %v5565_v6  ;;  %v6781_v6 = vand.u32 4294901760, %v5135_v61  ;;  %v6788_v61 = vand.u32 4294901760, %v5189_v46  ;;  %v6794_v46 = vand.u32 4294901760, %v5267_v43  ;;  %v6812_v43 = vand.u32 4294901760, %v5538_v15 }
  0xd7   : > { %3670 = vmatpush3.msra.mxu1 %v6777_v44  ;;  %3644 = vmatprep.subr.mxu0 %v5574_v41  ;;  %v6782_v44 = vld [vmem:[#allocation27_spill] sm:$0xff]  ;;  %v6786_v41 = vld [vmem:[#allocation29_spill] sm:$0xff] }
  0xd8   : > { %3671 = vmatprep.subr.mxu1 %v6778_v33  ;;  %3645 = vmatpush3.msra.mxu0 %v5581_v3  ;;  %v6783_v33 = vand.u32 4294901760, %v5141_v63  ;;  %v6784_v3 = vld [vmem:[#allocation28_spill] sm:$0xff]  ;;  %v6789_v63 = vand.u32 4294901760, %v5203_v7  ;;  %v6795_v7 = vand.u32 4294901760, %v5281_v60  ;;  %v6813_v60 = vand.u32 4294901760, %v5555_v30 }
  0xd9   : > { %3672 = vmatpush3.msra.mxu1 %v5361_v14  ;;  %1518 = vmatmul.mubr.f32.vlgmr.msra.gmra.mxu0 %v5527_v23  ;;  %v6785_v14 = vand.u32 4294901760, %v5164_v5  ;;  %v6790_v5 = vand.u32 4294901760, %v5515_v57  ;;  %v6824_v57 = vld [vmem:[#allocation32_spill] sm:$0xff] }
  0xda   : > { %3673 = vmatprep.subr.mxu1 %v5378_v29  ;;  %3684 = vmatprep.subr.mxu0 %v6779_v58  ;;  %v3527_v58 = vld [vmem:[%s6634_s3] ss:$0 sm:$0xff] }
  0xdb   : > { %3674 = vmatpush3.msra.mxu1 %v6780_v0  ;;  %3685 = vmatpush3.msra.mxu0 %v6781_v6  ;;  %v6793_v6 = vand.u32 4294901760, %v5253_v16  ;;  %v6797_v16 = vand.u32 4294901760, %v5310_v55 }
  0xdc   : > { %3675 = vmatprep.subr.mxu1 %v6782_v44  ;;  %3686 = vmatprep.subr.mxu0 %v6783_v33 }
  0xdd   : > { %3676 = vmatpush3.msra.mxu1 %v6784_v3  ;;  %3687 = vmatpush3.msra.mxu0 %v6785_v14  ;;  %v6791_v14 = vand.u32 4294901760, %v5238_v39  ;;  %v6796_v39 = vand.u32 4294901760, %v5293_v59  ;;  %v6814_v59 = vld [vmem:[#allocation33_spill] sm:$0xff] }
  0xde   : > { %3677 = vmatprep.subr.mxu1 %v6786_v41  ;;  %3688 = vmatprep.subr.mxu0 %v6787_v52  ;;  %v6815_v55 = vand.u32 4294901760, %v6814_v59 }
  0xdf   : > { %3678 = vmatpush3.msra.mxu1 %v5456_v28  ;;  %3689 = vmatpush3.msra.mxu0 %v6788_v61 }
  0xe0   : > { %3679 = vmatprep.subr.mxu1 %v5473_v37  ;;  %3690 = vmatprep.subr.mxu0 %v6789_v63 }
  0xe1   : > { %3680 = vmatpush3.msra.mxu1 %v5489_v62  ;;  %1622 = vmatprep.mubr.f32.mxu1 %v6790_v5 }
  0xe2   : > { %3691 = vmatpush3.msra.mxu0 %v6791_v14  ;;  %1626 = vmatmul.mubr.f32.vlgmr.msra.gmra.mxu1 %v6792_v12 }
  0xe3   : > { %3692 = vmatprep.subr.mxu0 %v6793_v6  ;;  %3719 = vmatprep.subr.mxu1 %v5075_v19  ;;  %v6798_v19 = vand.u32 4294901760, %v5322_v21  ;;  %v6816_v21 = vld [vmem:[#allocation23_spill] sm:$0xff] }
  0xe4   : > { %3693 = vmatpush3.msra.mxu0 %v6794_v46  ;;  %3720 = vmatpush3.msra.mxu1 %v5077_v18  ;;  %v6799_v18 = vand.u32 4294901760, %v5349_v50  ;;  %v6809_v50 = vand.u32 4294901760, %v5506_v38  ;;  %v6823_v38 = vld [vmem:[#allocation25_spill] sm:$0xff] }
  0xe5   : > { %3694 = vmatprep.subr.mxu0 %v6795_v7  ;;  %3721 = vmatprep.subr.mxu1 %v5079_v20  ;;  %v6800_v20 = vand.u32 4294901760, %v5365_v2  ;;  %v6817_v2 = vld [vmem:[#allocation34_spill] sm:$0xff] }
  0xe6   : > { %3695 = vmatpush3.msra.mxu0 %v6796_v39  ;;  %3722 = vmatpush3.msra.mxu1 %v5090_v22  ;;  %v6801_v22 = vand.u32 4294901760, %v5389_v10  ;;  %v6808_v10 = vand.u32 4294901760, %v5493_v26  ;;  %v6822_v26 = vld [vmem:[#allocation31_spill] sm:$0xff] }
  0xe7   : > { %3696 = vmatprep.subr.mxu0 %v6797_v16  ;;  %3723 = vmatprep.subr.mxu1 %v5092_v24  ;;  %v6802_v24 = vand.u32 4294901760, %v5405_v11  ;;  %v6818_v11 = vand.u32 4294901760, %v6817_v2  ;;  %v1989_v39 = vld [vmem:[%s6640_s9 + $0x70] sm:$0xff] }
  0xe8   : > { %3697 = vmatpush3.msra.mxu0 %v6798_v19  ;;  %3724 = vmatpush3.msra.mxu1 %v5094_v25  ;;  %v6803_v25 = vand.u32 4294901760, %v5417_v13  ;;  %v6810_v13 = vand.u32 4294901760, %v5519_v35  ;;  %v5783_v19 = vand.u32 4294901760, %v1989_v39 }
  0xe9   : > { %3698 = vmatprep.subr.mxu0 %v6799_v18  ;;  %3725 = vmatprep.subr.mxu1 %v5106_v48  ;;  %v6804_v48 = vand.u32 4294901760, %v5431_v47  ;;  %v6819_v47 = vld [vmem:[#allocation24_spill] sm:$0xff]  ;;  %v1988_v18 = vld [vmem:[%s6640_s9 + $0x68] sm:$0xff] }
  0xea   : > { %3699 = vmatpush3.msra.mxu0 %v6800_v20  ;;  %3726 = vmatpush3.msra.mxu1 %v5108_v49  ;;  %v6805_v49 = vand.u32 4294901760, %v6767_v36  ;;  %v5789_v20 = vsub.f32 %v1989_v39, %v5783_v19 }
  0xeb   : > { %3700 = vmatprep.subr.mxu0 %v6801_v22  ;;  %3727 = vmatprep.subr.mxu1 %v5110_v51  ;;  %v6806_v51 = vand.u32 4294901760, %v5460_v42  ;;  %v6820_v42 = vld [vmem:[#allocation35_spill] sm:$0xff]  ;;  %v5791_v22 = vand.u32 4294901760, %v1988_v18 }
  0xec   : > { %3701 = vmatpush3.msra.mxu0 %v6802_v24  ;;  %3728 = vmatpush3.msra.mxu1 %v5132_v56  ;;  %v6807_v56 = vand.u32 4294901760, %v5482_v8  ;;  %v6811_v8 = vand.u32 4294901760, %v5531_v45  ;;  %v6821_v15 = vand.u32 4294901760, %v6820_v42  ;;  %v1987_v24 = vld [vmem:[%s6640_s9 + $0x60] sm:$0xff] }
  0xed   : > { %3702 = vmatprep.subr.mxu0 %v6803_v25  ;;  %3729 = vmatprep.subr.mxu1 %v6765_v9  ;;  %v2088_v25 = vand.u32 4294901760, %v5789_v20 }
  0xee   : > { %3703 = vmatpush3.msra.mxu0 %v6804_v48  ;;  %3730 = vmatpush3.msra.mxu1 %v6766_v40  ;;  %v5798_v48 = vsub.f32 %v1988_v18, %v5791_v22 }
  0xef   : > { %3704 = vmatprep.subr.mxu0 %v6805_v49  ;;  %3731 = vmatprep.subr.mxu1 %v6768_v54  ;;  %v5800_v49 = vand.u32 4294901760, %v1987_v24 }
  0xf0   : > { %3705 = vmatpush3.msra.mxu0 %v6806_v51  ;;  %3732 = vmatpush3.msra.mxu1 %v6769_v34  ;;  %v1986_v51 = vld [vmem:[%s6640_s9 + $0x58] sm:$0xff] }
  0xf1   : > { %3706 = vmatprep.subr.mxu0 %v6807_v56  ;;  %3733 = vmatprep.subr.mxu1 %v6770_v4  ;;  %v2089_v56 = vsub.f32 %v5789_v20, %v2088_v25 }
  0xf2   : > { %3707 = vmatpush3.msra.mxu0 %v6808_v10  ;;  %3734 = vmatpush3.msra.mxu1 %v6771_v27  ;;  %v2095_v10 = vand.u32 4294901760, %v5798_v48 }
  0xf3   : > { %3708 = vmatprep.subr.mxu0 %v6809_v50  ;;  %3735 = vmatprep.subr.mxu1 %v6772_v17  ;;  %v5810_v50 = vsub.f32 %v1987_v24, %v5800_v49 }
  0xf4   : > { %3709 = vmatpush3.msra.mxu0 %v6810_v13  ;;  %3736 = vmatpush3.msra.mxu1 %v6773_v32  ;;  %v4644_v13 = vmov 0.0   ;;  %v2096_v59 = vsub.f32 %v5798_v48, %v2095_v10 }
  0xf5   : > { %3710 = vmatprep.subr.mxu0 %v6811_v8  ;;  %3737 = vmatprep.subr.mxu1 %v6774_v1  ;;  %v5813_v8 = vand.u32 4294901760, %v1986_v51 }
  0xf6   : > { %3711 = vmatpush3.msra.mxu0 %v6812_v43  ;;  %3738 = vmatpush3.msra.mxu1 %v6775_v53  ;;  %v1903_v53 = vld [vmem:[%s6632_s1] sm:$0xff]  ;;  %v1985_v43 = vld [vmem:[%s6640_s9 + $0x50] sm:$0xff] }
  0xf7   : > { %3712 = vmatprep.subr.mxu0 %v6813_v60  ;;  %3739 = vmatprep.subr.mxu1 %v6776_v31  ;;  %v1907_v52 = vsel %vm1906_vm9, %v1903_v53, 0.0  ;;  %v2090_v60 = vand.u32 4294901760, %v2089_v56  ;;  %v5827_v2 = vsub.f32 %v1986_v51, %v5813_v8 }
  0xf8   : > { %3713 = vmatpush3.msra.mxu0 %v6815_v55  ;;  %3740 = vmatpush3.msra.mxu1 %v6816_v21  ;;  %v2102_v55 = vand.u32 4294901760, %v5810_v50  ;;  %v5824_v21 = vand.u32 4294901760, %v1985_v43 }
  0xf9   : > { %3714 = vmatprep.subr.mxu0 %v6818_v11  ;;  %3741 = vmatprep.subr.mxu1 %v6819_v47  ;;  %v1984_v11 = vld [vmem:[%s6640_s9 + $0x48] sm:$0xff]  ;;  %v2097_v47 = vand.u32 4294901760, %v2096_v59 }
  0xfa   : > { %3715 = vmatpush3.msra.mxu0 %v6821_v15  ;;  %1792 = vmatprep.mubr.f32.mxu0 %v6822_v26  ;;  %v2103_v42 = vsub.f32 %v5810_v50, %v2102_v55  ;;  %v5837_v15 = vsub.f32 %v1985_v43, %v5824_v21 }
  0xfb   : > { %3742 = vmatpush3.msra.mxu1 %v6823_v38  ;;  %1794 = vmatmul.mubr.f32.vlgmr.msra.gmra.mxu0 %v6824_v57  ;;  %v2109_v38 = vand.u32 4294901760, %v5827_v2 }
  0xfc   : > { %3743 = vmatprep.subr.mxu1 %v5378_v29  ;;  %1896 = vmatprep.mubr.f32.mxu1 %v6822_v26  ;;  %v5840_v26 = vand.u32 4294901760, %v1984_v11 }
  0xfd   : > { %3744 = vmatpush3.msra.mxu1 %v6780_v0  ;;  %3952 = vmatprep.subr.mxu0 %v4644_v13 }
  0xfe   : > { %3745 = vmatprep.subr.mxu1 %v6782_v44  ;;  %3953 = vmatpush3.msra.mxu0 %v5783_v19 }
  0xff   : > { %3746 = vmatpush3.msra.mxu1 %v6784_v3  ;;  %3954 = vmatprep.subr.mxu0 %v4644_v13 }
 0x100   : > { %3747 = vmatprep.subr.mxu1 %v6786_v41  ;;  %3955 = vmatpush3.msra.mxu0 %v5791_v22 }
 0x101   : > { %3748 = vmatpush3.msra.mxu1 %v5456_v28  ;;  %3956 = vmatprep.subr.mxu0 %v4644_v13 }
 0x102   : > { %3749 = vmatprep.subr.mxu1 %v5473_v37  ;;  %3957 = vmatpush3.msra.mxu0 %v5800_v49 }
 0x103   : > { %3750 = vmatpush3.msra.mxu1 %v5489_v62  ;;  %3958 = vmatprep.subr.mxu0 %v4644_v13 }
 0x104   : > { %1898 = vmatmul.mubr.f32.vlgmr.msra.gmra.mxu1 %v6824_v57  ;;  %3985 = vmatprep.subr.mxu1 %v4644_v13  ;;  %v1983_v57 = vld [vmem:[%s6640_s9 + $0x40] sm:$0xff] }
 0x105   : > { %3986 = vmatpush3.msra.mxu1 %v2090_v60  ;;  %3959 = vmatpush3.msra.mxu0 %v5813_v8 }
 0x106   : > { %3987 = vmatprep.subr.mxu1 %v4644_v13  ;;  %3960 = vmatprep.subr.mxu0 %v4644_v13 }
 0x107   : > { %3988 = vmatpush3.msra.mxu1 %v2097_v47  ;;  %3961 = vmatpush3.msra.mxu0 %v5824_v21 }
 0x108   : > { %3989 = vmatprep.subr.mxu1 %v4644_v13  ;;  %3962 = vmatprep.subr.mxu0 %v4644_v13 }
 0x109   : > { %3963 = vmatpush3.msra.mxu0 %v5840_v26  ;;  %4015 = vmatprep.mubr.msk.f32.mxu1 %vm4645_vm10, %v4644_v13 }
 0x10a   : > { %3964 = vmatprep.subr.mxu0 %v4644_v13  ;;  %3982 = vmatprep.mubr.msk.f32.mxu0 %vm4645_vm10, %v4644_v13 }
 0x179   : > { %v3576_v35 = vpop.f32.mrf.mxu0 }
 0x17b   : > { %v3577_v29 = vpop.f32.mrf.mxu0 }
 0x17c   : > { %v3578_v0 = vadd.f32 %v3577_v29, %v3576_v35  ;;  %v2104_v35 = vand.u32 4294901760, %v2103_v42  ;;  %v2116_v29 = vand.u32 4294901760, %v5837_v15 }
 0x17e   : > { %v1150_v28 = vadd.f32 %v3578_v0, %v3527_v58  ;;  %v1982_v0 = vld [vmem:[%s6640_s9 + $0x38] sm:$0xff]  ;;  %3990 = vmatpush3.msra.mxu1 %v2104_v35  ;;  %v2117_v58 = vsub.f32 %v5837_v15, %v2116_v29 }
 0x17f   : > { %3991 = vmatprep.subr.mxu1 %v4644_v13 }
 0x181   : > { %v3611_v23 = vpop.f32.mrf.mxu1 }
 0x183   : > { %v3612_v30 = vpop.f32.mrf.mxu1 }
 0x184   : > { %v3613_v44 = vadd.f32 %v3612_v30, %v3611_v23  ;;  %v5850_v23 = vsub.f32 %v1984_v11, %v5840_v26  ;;  %v2110_v30 = vsub.f32 %v5827_v2, %v2109_v38 }
 0x186   : > { %v1382_v9 = vadd.f32 %v3613_v44, %v1150_v28  ;;  %v2111_v28 = vand.u32 4294901760, %v2110_v30  ;;  %v1981_v44 = vld [vmem:[%s6640_s9 + $0x30] sm:$0xff] }
 0x188   : > { %3992 = vmatpush3.msra.mxu1 %v2111_v28 }
 0x189   : > { %3993 = vmatprep.subr.mxu1 %v4644_v13 }
 0x199   : > { %v3646_v45 = vpop.f32.mrf.mxu0 }
 0x19b   : > { %v3647_v33 = vpop.f32.mrf.mxu0 }
 0x19c   : > { %v3648_v31 = vadd.f32 %v3647_v33, %v3646_v45  ;;  %v5853_v45 = vand.u32 4294901760, %v1983_v57  ;;  %v2123_v33 = vand.u32 4294901760, %v5850_v23 }
 0x19e   : > { %v1520_v36 = vadd.f32 %v3648_v31, %v1382_v9  ;;  %v2124_v31 = vsub.f32 %v5850_v23, %v2123_v33  ;;  %3965 = vmatpush3.msra.mxu0 %v5853_v45 }
 0x19f   : > { %3966 = vmatprep.subr.mxu0 %v4644_v13 }
 0x1a2   : > { %v3681_v41 = vpop.f32.mrf.mxu1 }
 0x1a4   : > { %v3682_v37 = vpop.f32.mrf.mxu1 }
 0x1a5   : > { %v3683_v40 = vadd.f32 %v3682_v37, %v3681_v41  ;;  %v5868_v41 = vsub.f32 %v1983_v57, %v5853_v45  ;;  %v2118_v37 = vand.u32 4294901760, %v2117_v58 }
 0x1a7   : > { %v1628_v4 = vadd.f32 %v3683_v40, %v1520_v36  ;;  %v5886_v40 = vand.u32 4294901760, %v1981_v44  ;;  %v1980_v36 = vld [vmem:[%s6640_s9 + $0x28] sm:$0xff]  ;;  %3994 = vmatpush3.msra.mxu1 %v2118_v37 }
 0x1a8   : > { %3995 = vmatprep.subr.mxu1 %v4644_v13 }
 0x1bb   : > { %v3716_v3 = vpop.f32.mrf.mxu0 }
 0x1bd   : > { %v3717_v62 = vpop.f32.mrf.mxu0 }
 0x1be   : > { %v3718_v54 = vadd.f32 %v3717_v62, %v3716_v3  ;;  %v5871_v3 = vand.u32 4294901760, %v1982_v0  ;;  %v2130_v62 = vand.u32 4294901760, %v5868_v41 }
 0x1c0   : > { %v1796_v17 = vadd.f32 %v3718_v54, %v1628_v4  ;;  %v5883_v9 = vsub.f32 %v1982_v0, %v5871_v3  ;;  %v1979_v54 = vld [vmem:[%s6640_s9 + $0x20] sm:$0xff]  ;;  %v2125_v4 = vand.u32 4294901760, %v2124_v31  ;;  %3967 = vmatpush3.msra.mxu0 %v5871_v3 }
 0x1c1   : > { %3968 = vmatprep.subr.mxu0 %v4644_v13 }
 0x1c2   : > { %3996 = vmatpush3.msra.mxu1 %v2125_v4  ;;  %3969 = vmatpush3.msra.mxu0 %v5886_v40 }
 0x1c3   : > { %3997 = vmatprep.subr.mxu1 %v4644_v13  ;;  %3970 = vmatprep.subr.mxu0 %v4644_v13 }
 0x1c4   : > { %v3751_v34 = vpop.f32.mrf.mxu1 }
 0x1c6   : > { %v3752_v27 = vpop.f32.mrf.mxu1 }
 0x1c7   : > { %v3753_v32 = vadd.f32 %v3752_v27, %v3751_v34  ;;  %v1978_v34 = vld [vmem:[%s6640_s9 + $0x18] sm:$0xff]  ;;  %v2131_v27 = vsub.f32 %v5868_v41, %v2130_v62 }
 0x1c9   : > { %v1900_v1 = vadd.f32 %v3753_v32, %v1796_v17  ;;  %v2137_v17 = vand.u32 4294901760, %v5883_v9  ;;  %v5904_v32 = vand.u32 4294901760, %v1980_v36 }
 0x1cb   : > { %1904 = vadd.xlane.f32.xlu0 %v1900_v1  ;;  %v5930_v39 = vsub.f32 %v1980_v36, %v5904_v32  ;;  %3971 = vmatpush3.msra.mxu0 %v5904_v32 }
 0x1cc   : > { %3972 = vmatprep.subr.mxu0 %v4644_v13 }
 0x1cd   : > { %v2151_v60 = vand.u32 4294901760, %v5930_v39 }
 0x1cf   : > { %1908 = vadd.xlane.f32.xlu0 %v1907_v52  ;;  %v5913_v52 = vsub.f32 %v1981_v44, %v5886_v40  ;;  %v2152_v30 = vsub.f32 %v5930_v39, %v2151_v60 }
 0x1d1   : > { %v2144_v18 = vand.u32 4294901760, %v5913_v52  ;;  %v2153_v31 = vand.u32 4294901760, %v2152_v30 }
 0x1d3   : > { %v2145_v47 = vsub.f32 %v5913_v52, %v2144_v18 }
 0x1d5   : > { %v2146_v58 = vand.u32 4294901760, %v2145_v47 }
 0x254   : > { %v1905_v61 = vpop.xlane.xlu0 %1904 }
 0x258   : > { %v1909_v63 = vpop.xlane.xlu0 %1908 }
 0x259   : > { %v1910_v5 = vadd.f32 %v1909_v63, %v1905_v61  ;;  %v5916_v61 = vand.u32 4294901760, %v1979_v54  ;;  %v5918_v63 = vand.u32 4294901760, %v1978_v34 }
 0x25b   : > { %v1911_v14 = vmul.f32 0.004032258, %v1910_v5  ;;  %v5937_v24 = vsub.f32 %v1979_v54, %v5916_v61  ;;  %v5941_v51 = vsub.f32 %v1978_v34, %v5918_v63  ;;  %3973 = vmatpush3.msra.mxu0 %v5916_v61 }
 0x25c   : > { %3974 = vmatprep.subr.mxu0 %v4644_v13 }
 0x25d   : > { %v5771_v12 = vsub.f32 %v1903_v53, %v1911_v14  ;;  %v5773_v6 = vsub.f32 %v1900_v1, %v1911_v14  ;;  %v1977_v1 = vld [vmem:[%s6640_s9 + $0x10] sm:$0xff]  ;;  %v1976_v53 = vld [vmem:[%s6640_s9 + $0x8] sm:$0xff]  ;;  %v1975_v14 = vld [vmem:[%s6640_s9] sm:$0xff]  ;;  %v2158_v42 = vand.u32 4294901760, %v5937_v24  ;;  %v2165_v57 = vand.u32 4294901760, %v5941_v51  ;;  %3975 = vmatpush3.msra.mxu0 %v5918_v63 }
 0x25e   : > { %v5920_v5 = vand.u32 4294901760, %v1977_v1  ;;  %v5952_v11 = vand.u32 4294901760, %v1975_v14  ;;  %3976 = vmatprep.subr.mxu0 %v4644_v13 }
 0x25f   : > { %v1914_v46 = vmul.f32 %v5773_v6, %v5773_v6  ;;  %v1917_v7 = vmul.f32 %v5771_v12, %v5771_v12  ;;  %v2159_v28 = vsub.f32 %v5937_v24, %v2158_v42  ;;  %v2166_v44 = vsub.f32 %v5941_v51, %v2165_v57 }
 0x260   : > { %v5944_v56 = vsub.f32 %v1977_v1, %v5920_v5  ;;  %v5967_v0 = vsub.f32 %v1975_v14, %v5952_v11  ;;  %3977 = vmatpush3.msra.mxu0 %v5920_v5 }
 0x261   : > { %1915 = vadd.xlane.f32.xlu1 %v1914_v46  ;;  %v1918_v16 = vsel %vm1906_vm9, %v1917_v7, 0.0  ;;  %v2132_v46 = vand.u32 4294901760, %v2131_v27  ;;  %v2138_v7 = vsub.f32 %v5883_v9, %v2137_v17  ;;  %v2160_v36 = vand.u32 4294901760, %v2159_v28  ;;  %3978 = vmatprep.subr.mxu0 %v4644_v13 }
 0x262   : > { %v2172_v35 = vand.u32 4294901760, %v5944_v56  ;;  %v2186_v34 = vand.u32 4294901760, %v5967_v0  ;;  %v2167_v4 = vand.u32 4294901760, %v2166_v44  ;;  %v3530_v44 = vld [vmem:[%s6637_s6] ss:$0 sm:$0xff] }
 0x263   : > { %v2139_v43 = vand.u32 4294901760, %v2138_v7  ;;  %3998 = vmatpush3.msra.mxu1 %v2132_v46 }
 0x264   : > { %3999 = vmatprep.subr.mxu1 %v4644_v13  ;;  %v2173_v54 = vsub.f32 %v5944_v56, %v2172_v35 }
 0x265   : > { %1919 = vadd.xlane.f32.xlu1 %v1918_v16  ;;  %v5933_v16 = vand.u32 4294901760, %v1976_v53  ;;  %4000 = vmatpush3.msra.mxu1 %v2139_v43 }
 0x266   : > { %4001 = vmatprep.subr.mxu1 %v4644_v13  ;;  %v2174_v1 = vand.u32 4294901760, %v2173_v54 }
 0x267   : > { %v5950_v59 = vsub.f32 %v1976_v53, %v5933_v16  ;;  %4002 = vmatpush3.msra.mxu1 %v2146_v58  ;;  %v2187_v53 = vsub.f32 %v5967_v0, %v2186_v34  ;;  %3979 = vmatpush3.msra.mxu0 %v5933_v16 }
 0x268   : > { %4003 = vmatprep.subr.mxu1 %v4644_v13  ;;  %3980 = vmatprep.subr.mxu0 %v4644_v13 }
 0x269   : > { %v2179_v37 = vand.u32 4294901760, %v5950_v59  ;;  %4004 = vmatpush3.msra.mxu1 %v2153_v31  ;;  %v2188_v46 = vand.u32 4294901760, %v2187_v53  ;;  %3981 = vmatpush3.msra.mxu0 %v5952_v11 }
 0x26a   : > { %4005 = vmatprep.subr.mxu1 %v4644_v13  ;;  %4018 = vmatprep.subr.mxu0 %v4644_v13 }
 0x26b   : > { %v2180_v27 = vsub.f32 %v5950_v59, %v2179_v37  ;;  %4006 = vmatpush3.msra.mxu1 %v2160_v36  ;;  %v3531_v36 = vld [vmem:[%s6638_s7] ss:$0 sm:$0xff] }
 0x26c   : > { %4007 = vmatprep.subr.mxu1 %v4644_v13 }
 0x26d   : > { %4008 = vmatpush3.msra.mxu1 %v2167_v4  ;;  %v2181_v14 = vand.u32 4294901760, %v2180_v27 }
 0x26e   : > { %4009 = vmatprep.subr.mxu1 %v4644_v13 }
 0x26f   : > { %4010 = vmatpush3.msra.mxu1 %v2174_v1 }
 0x270   : > { %4011 = vmatprep.subr.mxu1 %v4644_v13 }
 0x271   : > { %4012 = vmatpush3.msra.mxu1 %v2181_v14 }
 0x272   : > { %4013 = vmatprep.subr.mxu1 %v4644_v13 }
 0x273   : > { %4014 = vmatpush3.msra.mxu1 %v2188_v46 }
 0x274   : > { %4051 = vmatprep.subr.mxu1 %v4644_v13 }
 0x2ea   : > { %v1916_v7 = vpop.xlane.xlu1 %1915 }
 0x2ee   : > { %v1920_v43 = vpop.xlane.xlu1 %1919 }
 0x2ef   : > { %v1921_v47 = vadd.f32 %v1920_v43, %v1916_v7 }
 0x2f1   : > { %v1922_v30 = vmul.f32 0.004032258, %v1921_v47  ;;  %v1964_v47 = vld [vmem:[%s6639_s8 + $0x28] sm:$0xff] }
 0x2f3   : > { %v1923_v58 = vadd.f32 1e-05, %v1922_v30 }
 0x2f5   : > { %4493 = vrsqrt.f32 %v1923_v58 }
 0x302   : > { %v6011_v28 = vpop.eup %4493 }
 0x303   : > { %v1942_v31 = vmul.f32 %v6011_v28, %v5771_v12 }
 0x305   : > { %v1950_v54 = vmul.f32 %v3530_v44, %v1942_v31  ;;  %v1963_v31 = vld [vmem:[%s6639_s8 + $0x20] sm:$0xff] }
 0x307   : > { %v1958_v4 = vadd.f32 %v3531_v36, %v1950_v54  ;;  %v6272_v36 = vand.u32 4294901760, %v1964_v47 }
 0x309   : > { %v1991_v27 = vsel %vm1906_vm9, %v1958_v4, 0 }
 0x30a   : > { %v6022_v1 = vand.u32 4294901760, %v1991_v27 }
 0x30c   : > { %v6025_v53 = vsub.f32 %v1991_v27, %v6022_v1  ;;  %4016 = vmatmul.mubr.f32.vlgmr.msra.gmra.mxu1 %v6022_v1 }
 0x30d   : > { %4052 = vmatpush3.msra.mxu1 %v5783_v19  ;;  %4081 = vmatprep.mubr.msk.f32.mxu1 %vm4645_vm10, %v4644_v13 }
 0x30e   : > { %4053 = vmatprep.subr.mxu1 %v4644_v13  ;;  %v2075_v12 = vand.u32 4294901760, %v6025_v53 }
 0x30f   : > { %4054 = vmatpush3.msra.mxu1 %v5791_v22 }
 0x310   : > { %4055 = vmatprep.subr.mxu1 %v4644_v13  ;;  %v2076_v14 = vsub.f32 %v6025_v53, %v2075_v12 }
 0x311   : > { %4056 = vmatpush3.msra.mxu1 %v5800_v49 }
 0x312   : > { %4057 = vmatprep.subr.mxu1 %v4644_v13  ;;  %v2077_v46 = vand.u32 4294901760, %v2076_v14  ;;  %v1961_v14 = vld [vmem:[%s6639_s8 + $0x10] sm:$0xff] }
 0x313   : > { %4058 = vmatpush3.msra.mxu1 %v5813_v8 }
 0x314   : > { %4059 = vmatprep.subr.mxu1 %v4644_v13  ;;  %3983 = vmatmul.mubr.f32.vlgmr.msra.gmra.mxu0 %v2077_v46  ;;  %v6302_v46 = vsub.f32 %v1964_v47, %v6272_v36  ;;  %v3528_v47 = vld [vmem:[%s6635_s4] ss:$0 sm:$0xff] }
 0x315   : > { %4019 = vmatpush3.msra.mxu0 %v5789_v20  ;;  %4060 = vmatpush3.msra.mxu1 %v5824_v21  ;;  %v1973_v20 = vld [vmem:[%s6639_s8 + $0x70] sm:$0xff] }
 0x316   : > { %4020 = vmatprep.subr.mxu0 %v4644_v13  ;;  %4061 = vmatprep.subr.mxu1 %v4644_v13 }
 0x317   : > { %4021 = vmatpush3.msra.mxu0 %v5798_v48  ;;  %4062 = vmatpush3.msra.mxu1 %v5840_v26  ;;  %v6131_v48 = vand.u32 4294901760, %v1973_v20 }
 0x318   : > { %4022 = vmatprep.subr.mxu0 %v4644_v13  ;;  %4063 = vmatprep.subr.mxu1 %v4644_v13 }
 0x319   : > { %4023 = vmatpush3.msra.mxu0 %v5810_v50  ;;  %4064 = vmatpush3.msra.mxu1 %v5853_v45 }
 0x31a   : > { %4024 = vmatprep.subr.mxu0 %v4644_v13  ;;  %4065 = vmatprep.subr.mxu1 %v4644_v13 }
 0x31b   : > { %4025 = vmatpush3.msra.mxu0 %v5827_v2  ;;  %4066 = vmatpush3.msra.mxu1 %v5871_v3 }
 0x31c   : > { %4026 = vmatprep.subr.mxu0 %v4644_v13  ;;  %4067 = vmatprep.subr.mxu1 %v4644_v13 }
 0x31d   : > { %4027 = vmatpush3.msra.mxu0 %v5837_v15  ;;  %4068 = vmatpush3.msra.mxu1 %v5886_v40 }
 0x31e   : > { %4028 = vmatprep.subr.mxu0 %v4644_v13  ;;  %4069 = vmatprep.subr.mxu1 %v4644_v13 }
 0x31f   : > { %4029 = vmatpush3.msra.mxu0 %v5850_v23  ;;  %4070 = vmatpush3.msra.mxu1 %v5904_v32 }
 0x320   : > { %4030 = vmatprep.subr.mxu0 %v4644_v13  ;;  %4071 = vmatprep.subr.mxu1 %v4644_v13 }
 0x321   : > { %4031 = vmatpush3.msra.mxu0 %v5868_v41  ;;  %4072 = vmatpush3.msra.mxu1 %v5916_v61  ;;  %v1967_v41 = vld [vmem:[%s6639_s8 + $0x40] sm:$0xff] }
 0x322   : > { %4032 = vmatprep.subr.mxu0 %v4644_v13  ;;  %4073 = vmatprep.subr.mxu1 %v4644_v13 }
 0x323   : > { %4033 = vmatpush3.msra.mxu0 %v5883_v9  ;;  %4074 = vmatpush3.msra.mxu1 %v5918_v63 }
 0x324   : > { %4034 = vmatprep.subr.mxu0 %v4644_v13  ;;  %4075 = vmatprep.subr.mxu1 %v4644_v13 }
 0x325   : > { %4035 = vmatpush3.msra.mxu0 %v5913_v52  ;;  %4076 = vmatpush3.msra.mxu1 %v5920_v5  ;;  %v6213_v52 = vand.u32 4294901760, %v1967_v41 }
 0x326   : > { %4036 = vmatprep.subr.mxu0 %v4644_v13  ;;  %4077 = vmatprep.subr.mxu1 %v4644_v13 }
 0x327   : > { %4037 = vmatpush3.msra.mxu0 %v5930_v39  ;;  %4078 = vmatpush3.msra.mxu1 %v5933_v16  ;;  %v6247_v43 = vsub.f32 %v1967_v41, %v6213_v52  ;;  %v2785_v41 = vand.u32 4294901760, %v6302_v46 }
 0x328   : > { %4038 = vmatprep.subr.mxu0 %v4644_v13  ;;  %4079 = vmatprep.subr.mxu1 %v4644_v13 }
 0x329   : > { %4039 = vmatpush3.msra.mxu0 %v5937_v24  ;;  %4080 = vmatpush3.msra.mxu1 %v5952_v11  ;;  %v2764_v4 = vand.u32 4294901760, %v6247_v43 }
 0x32a   : > { %4040 = vmatprep.subr.mxu0 %v4644_v13  ;;  %4082 = vmatmul.mubr.f32.vlgmr.msra.gmra.mxu1 %v2075_v12 }
 0x32b   : > { %4117 = vmatprep.subr.mxu1 %v4644_v13  ;;  %4041 = vmatpush3.msra.mxu0 %v5941_v51 }
 0x32c   : > { %4118 = vmatpush3.msra.mxu1 %v5783_v19  ;;  %4042 = vmatprep.subr.mxu0 %v4644_v13  ;;  %v1974_v19 = vld [vmem:[%s6639_s8 + $0x78] sm:$0xff] }
 0x32d   : > { %4119 = vmatprep.subr.mxu1 %v4644_v13  ;;  %4043 = vmatpush3.msra.mxu0 %v5944_v56  ;;  %v1962_v56 = vld [vmem:[%s6639_s8 + $0x18] sm:$0xff] }
 0x32e   : > { %4120 = vmatpush3.msra.mxu1 %v5791_v22  ;;  %4044 = vmatprep.subr.mxu0 %v4644_v13  ;;  %v6121_v22 = vand.u32 4294901760, %v1974_v19 }
 0x32f   : > { %4121 = vmatprep.subr.mxu1 %v4644_v13  ;;  %4045 = vmatpush3.msra.mxu0 %v5950_v59 }
 0x330   : > { %4122 = vmatpush3.msra.mxu1 %v5800_v49  ;;  %4046 = vmatprep.subr.mxu0 %v4644_v13  ;;  %v1971_v49 = vld [vmem:[%s6639_s8 + $0x60] sm:$0xff] }
 0x331   : > { %4123 = vmatprep.subr.mxu1 %v4644_v13  ;;  %4047 = vmatpush3.msra.mxu0 %v5967_v0  ;;  %v1960_v0 = vld [vmem:[%s6639_s8 + $0x8] sm:$0xff] }
 0x332   : > { %4048 = vmatprep.mubr.msk.f32.mxu0 %vm4645_vm10, %v4644_v13  ;;  %4124 = vmatpush3.msra.mxu1 %v5813_v8  ;;  %v6152_v8 = vsub.f32 %v1973_v20, %v6131_v48  ;;  %v2765_v20 = vsub.f32 %v6247_v43, %v2764_v4 }
 0x333   : > { %4049 = vmatmul.mubr.f32.vlgmr.msra.gmra.mxu0 %v6025_v53  ;;  %4084 = vmatprep.subr.mxu0 %v4644_v13  ;;  %v6288_v53 = vand.u32 4294901760, %v1963_v31 }
 0x334   : > { %4125 = vmatprep.subr.mxu1 %v4644_v13  ;;  %4085 = vmatpush3.msra.mxu0 %v2088_v25  ;;  %v1972_v25 = vld [vmem:[%s6639_s8 + $0x68] sm:$0xff]  ;;  %v2722_v23 = vand.u32 4294901760, %v6152_v8 }
 0x335   : > { %4126 = vmatpush3.msra.mxu1 %v5824_v21  ;;  %4086 = vmatprep.subr.mxu0 %v4644_v13  ;;  %v6144_v50 = vand.u32 4294901760, %v1972_v25  ;;  %v1970_v21 = vld [vmem:[%s6639_s8 + $0x58] sm:$0xff] }
 0x336   : > { %4127 = vmatprep.subr.mxu1 %v4644_v13  ;;  %4087 = vmatpush3.msra.mxu0 %v2095_v10  ;;  %v6142_v10 = vsub.f32 %v1974_v19, %v6121_v22  ;;  %v6304_v19 = vand.u32 4294901760, %v1962_v56 }
 0x337   : > { %4128 = vmatpush3.msra.mxu1 %v5840_v26  ;;  %4088 = vmatprep.subr.mxu0 %v4644_v13  ;;  %v6166_v15 = vsub.f32 %v1972_v25, %v6144_v50  ;;  %v1969_v26 = vld [vmem:[%s6639_s8 + $0x50] sm:$0xff] }
 0x338   : > { %4129 = vmatprep.subr.mxu1 %v4644_v13  ;;  %4089 = vmatpush3.msra.mxu0 %v2102_v55  ;;  %v6154_v55 = vand.u32 4294901760, %v1971_v49  ;;  %v2715_v2 = vand.u32 4294901760, %v6142_v10 }
 0x339   : > { %4130 = vmatpush3.msra.mxu1 %v5853_v45  ;;  %4090 = vmatprep.subr.mxu0 %v4644_v13 }
 0x33a   : > { %4131 = vmatprep.subr.mxu1 %v4644_v13  ;;  %4091 = vmatpush3.msra.mxu0 %v2109_v38  ;;  %v6173_v38 = vand.u32 4294901760, %v1970_v21  ;;  %v6183_v45 = vsub.f32 %v1971_v49, %v6154_v55  ;;  %v6318_v49 = vsub.f32 %v1963_v31, %v6288_v53  ;;  %v2786_v31 = vsub.f32 %v6302_v46, %v2785_v41 }
 0x33b   : > { %4132 = vmatpush3.msra.mxu1 %v5871_v3  ;;  %4092 = vmatprep.subr.mxu0 %v4644_v13  ;;  %v2716_v3 = vsub.f32 %v6142_v10, %v2715_v2 }
 0x33c   : > { %4133 = vmatprep.subr.mxu1 %v4644_v13  ;;  %4093 = vmatpush3.msra.mxu0 %v2116_v29  ;;  %v1968_v29 = vld [vmem:[%s6639_s8 + $0x48] sm:$0xff] }
 0x33d   : > { %4134 = vmatpush3.msra.mxu1 %v5886_v40  ;;  %4094 = vmatprep.subr.mxu0 %v4644_v13  ;;  %v6199_v9 = vand.u32 4294901760, %v1968_v29  ;;  %v6204_v40 = vsub.f32 %v1970_v21, %v6173_v38  ;;  %v2717_v39 = vand.u32 4294901760, %v2716_v3  ;;  %v6320_v21 = vand.u32 4294901760, %v1961_v14 }
 0x33e   : > { %4135 = vmatprep.subr.mxu1 %v4644_v13  ;;  %4095 = vmatpush3.msra.mxu0 %v2123_v33  ;;  %v6187_v33 = vand.u32 4294901760, %v1969_v26  ;;  %v6333_v3 = vsub.f32 %v1962_v56, %v6304_v19 }
 0x33f   : > { %4136 = vmatpush3.msra.mxu1 %v5904_v32  ;;  %4096 = vmatprep.subr.mxu0 %v4644_v13  ;;  %v2736_v32 = vand.u32 4294901760, %v6183_v45 }
 0x340   : > { %4137 = vmatprep.subr.mxu1 %v4644_v13  ;;  %4097 = vmatpush3.msra.mxu0 %v2130_v62  ;;  %v2729_v62 = vand.u32 4294901760, %v6166_v15 }
 0x341   : > { %4138 = vmatpush3.msra.mxu1 %v5916_v61  ;;  %4098 = vmatprep.subr.mxu0 %v4644_v13  ;;  %v1966_v61 = vld [vmem:[%s6639_s8 + $0x38] sm:$0xff] }
 0x342   : > { %4139 = vmatprep.subr.mxu1 %v4644_v13  ;;  %4099 = vmatpush3.msra.mxu0 %v2137_v17  ;;  %v2723_v17 = vsub.f32 %v6152_v8, %v2722_v23  ;;  %v6239_v7 = vand.u32 4294901760, %v1966_v61 }
 0x343   : > { %4140 = vmatpush3.msra.mxu1 %v5918_v63  ;;  %4100 = vmatprep.subr.mxu0 %v4644_v13  ;;  %v6221_v63 = vsub.f32 %v1969_v26, %v6187_v33 }
 0x344   : > { %4141 = vmatprep.subr.mxu1 %v4644_v13  ;;  %4101 = vmatpush3.msra.mxu0 %v2144_v18  ;;  %v2730_v18 = vsub.f32 %v6166_v15, %v2729_v62  ;;  %v2724_v24 = vand.u32 4294901760, %v2723_v17  ;;  %v6335_v17 = vand.u32 4294901760, %v1960_v0 }
 0x345   : > { %4142 = vmatpush3.msra.mxu1 %v5920_v5  ;;  %4102 = vmatprep.subr.mxu0 %v4644_v13  ;;  %v1965_v5 = vld [vmem:[%s6639_s8 + $0x30] sm:$0xff]  ;;  %v2750_v30 = vand.u32 4294901760, %v6221_v63 }
 0x346   : > { %4143 = vmatprep.subr.mxu1 %v4644_v13  ;;  %4103 = vmatpush3.msra.mxu0 %v2151_v60  ;;  %v2743_v60 = vand.u32 4294901760, %v6204_v40  ;;  %v2731_v58 = vand.u32 4294901760, %v2730_v18  ;;  %v6345_v18 = vsub.f32 %v1961_v14, %v6320_v21  ;;  %v3529_v14 = vld [vmem:[%s6636_s5] ss:$0 sm:$0xff] }
 0x347   : > { %4144 = vmatpush3.msra.mxu1 %v5933_v16  ;;  %4104 = vmatprep.subr.mxu0 %v4644_v13  ;;  %v6233_v16 = vsub.f32 %v1968_v29, %v6199_v9  ;;  %v1959_v29 = vld [vmem:[%s6639_s8] sm:$0xff] }
 0x348   : > { %4145 = vmatprep.subr.mxu1 %v4644_v13  ;;  %4105 = vmatpush3.msra.mxu0 %v2158_v42  ;;  %v2737_v42 = vsub.f32 %v6183_v45, %v2736_v32  ;;  %v2744_v51 = vsub.f32 %v6204_v40, %v2743_v60  ;;  %v2806_v56 = vand.u32 4294901760, %v6345_v18 }
 0x349   : > { %4146 = vmatpush3.msra.mxu1 %v5952_v11  ;;  %4147 = vmatprep.mubr.msk.f32.mxu1 %vm4645_vm10, %v4644_v13  ;;  %v6249_v11 = vand.u32 4294901760, %v1965_v5  ;;  %v2757_v44 = vand.u32 4294901760, %v6233_v16 }
 0x34a   : > { %4106 = vmatprep.subr.mxu0 %v4644_v13  ;;  %4148 = vmatmul.mubr.f32.vlgmr.msra.gmra.mxu1 %v6022_v1  ;;  %v2738_v54 = vand.u32 4294901760, %v2737_v42  ;;  %v2745_v59 = vand.u32 4294901760, %v2744_v51  ;;  %v1925_v42 = vmul.f32 %v6011_v28, %v5773_v6  ;;  %v2799_v51 = vand.u32 4294901760, %v6333_v3 }
 0x34b   : > { %4185 = vmatprep.subr.mxu1 %v4644_v13  ;;  %4107 = vmatpush3.msra.mxu0 %v2165_v57  ;;  %v6270_v57 = vsub.f32 %v1966_v61, %v6239_v7  ;;  %v6277_v27 = vsub.f32 %v1965_v5, %v6249_v11  ;;  %v2758_v12 = vsub.f32 %v6233_v16, %v2757_v44  ;;  %v2766_v61 = vand.u32 4294901760, %v2765_v20 }
 0x34c   : > { %4186 = vmatpush3.msra.mxu1 %v2717_v39  ;;  %4108 = vmatprep.subr.mxu0 %v4644_v13  ;;  %v2792_v39 = vand.u32 4294901760, %v6318_v49  ;;  %v6362_v6 = vsub.f32 %v1960_v0, %v6335_v17  ;;  %v2800_v20 = vsub.f32 %v6333_v3, %v2799_v51 }
 0x34d   : > { %4187 = vmatprep.subr.mxu1 %v4644_v13  ;;  %4109 = vmatpush3.msra.mxu0 %v2172_v35  ;;  %v2751_v35 = vsub.f32 %v6221_v63, %v2750_v30  ;;  %v2778_v25 = vand.u32 4294901760, %v6277_v27  ;;  %v2759_v26 = vand.u32 4294901760, %v2758_v12  ;;  %v1933_v12 = vmul.f32 %v3528_v47, %v1925_v42 }
 0x34e   : > { %4188 = vmatpush3.msra.mxu1 %v2724_v24  ;;  %4110 = vmatprep.subr.mxu0 %v4644_v13  ;;  %v6347_v24 = vand.u32 4294901760, %v1959_v29  ;;  %v2813_v0 = vand.u32 4294901760, %v6362_v6 }
 0x34f   : > { %4189 = vmatprep.subr.mxu1 %v4644_v13  ;;  %4111 = vmatpush3.msra.mxu0 %v2179_v37  ;;  %v2771_v37 = vand.u32 4294901760, %v6270_v57  ;;  %v2779_v5 = vsub.f32 %v6277_v27, %v2778_v25 }
 0x350   : > { %4190 = vmatpush3.msra.mxu1 %v2731_v58  ;;  %4112 = vmatprep.subr.mxu0 %v4644_v13 }
 0x351   : > { %4191 = vmatprep.subr.mxu1 %v4644_v13  ;;  %4113 = vmatpush3.msra.mxu0 %v2186_v34  ;;  %v2752_v34 = vand.u32 4294901760, %v2751_v35  ;;  %v2780_v28 = vand.u32 4294901760, %v2779_v5  ;;  %v6372_v35 = vsub.f32 %v1959_v29, %v6347_v24  ;;  %v2814_v5 = vsub.f32 %v6362_v6, %v2813_v0 }
 0x352   : > { %4114 = vmatprep.mubr.msk.f32.mxu0 %vm4645_vm10, %v4644_v13  ;;  %4192 = vmatpush3.msra.mxu1 %v2738_v54  ;;  %v2793_v54 = vsub.f32 %v6318_v49, %v2792_v39 }
 0x353   : > { %4115 = vmatmul.mubr.f32.vlgmr.msra.gmra.mxu0 %v6022_v1  ;;  %4150 = vmatprep.subr.mxu0 %v4644_v13  ;;  %v2772_v1 = vsub.f32 %v6270_v57, %v2771_v37  ;;  %v2820_v29 = vand.u32 4294901760, %v6372_v35 }
 0x354   : > { %4193 = vmatprep.subr.mxu1 %v4644_v13  ;;  %4151 = vmatpush3.msra.mxu0 %v6121_v22 }
 0x355   : > { %4194 = vmatpush3.msra.mxu1 %v2745_v59  ;;  %4152 = vmatprep.subr.mxu0 %v4644_v13  ;;  %v2773_v58 = vand.u32 4294901760, %v2772_v1  ;;  %v2787_v59 = vand.u32 4294901760, %v2786_v31  ;;  %v1941_v1 = vadd.f32 %v3529_v14, %v1933_v12  ;;  %v2821_v47 = vsub.f32 %v6372_v35, %v2820_v29 }
 0x356   : > { %4195 = vmatprep.subr.mxu1 %v4644_v13  ;;  %4153 = vmatpush3.msra.mxu0 %v6131_v48  ;;  %v2815_v31 = vand.u32 4294901760, %v2814_v5 }
 0x357   : > { %4196 = vmatpush3.msra.mxu1 %v2752_v34  ;;  %4154 = vmatprep.subr.mxu0 %v4644_v13  ;;  %v2794_v34 = vand.u32 4294901760, %v2793_v54 }
 0x358   : > { %4197 = vmatprep.subr.mxu1 %v4644_v13  ;;  %4155 = vmatpush3.msra.mxu0 %v6144_v50 }
 0x359   : > { %4198 = vmatpush3.msra.mxu1 %v2759_v26  ;;  %4156 = vmatprep.subr.mxu0 %v4644_v13  ;;  %v2807_v26 = vsub.f32 %v6345_v18, %v2806_v56 }
 0x35a   : > { %4199 = vmatprep.subr.mxu1 %v4644_v13  ;;  %4157 = vmatpush3.msra.mxu0 %v6154_v55 }
 0x35b   : > { %4200 = vmatpush3.msra.mxu1 %v2766_v61  ;;  %4158 = vmatprep.subr.mxu0 %v4644_v13  ;;  %v2801_v61 = vand.u32 4294901760, %v2800_v20  ;;  %v2808_v42 = vand.u32 4294901760, %v2807_v26 }
 0x35c   : > { %4201 = vmatprep.subr.mxu1 %v4644_v13  ;;  %4159 = vmatpush3.msra.mxu0 %v6173_v38 }
 0x35d   : > { %4202 = vmatpush3.msra.mxu1 %v2773_v58  ;;  %4160 = vmatprep.subr.mxu0 %v4644_v13  ;;  %v6403_v58 = vand.u32 4294901760, %v1941_v1 }
 0x35e   : > { %4203 = vmatprep.subr.mxu1 %v4644_v13  ;;  %4161 = vmatpush3.msra.mxu0 %v6187_v33 }
 0x35f   : > { %4204 = vmatpush3.msra.mxu1 %v2780_v28  ;;  %4162 = vmatprep.subr.mxu0 %v4644_v13  ;;  %v2822_v28 = vand.u32 4294901760, %v2821_v47  ;;  %v6412_v54 = vsub.f32 %v1941_v1, %v6403_v58 }
 0x360   : > { %4205 = vmatprep.subr.mxu1 %v4644_v13  ;;  %4163 = vmatpush3.msra.mxu0 %v6199_v9 }
 0x361   : > { %4206 = vmatpush3.msra.mxu1 %v2787_v59  ;;  %4164 = vmatprep.subr.mxu0 %v4644_v13  ;;  %v2704_v12 = vand.u32 4294901760, %v6412_v54 }
 0x362   : > { %4207 = vmatprep.subr.mxu1 %v4644_v13  ;;  %4165 = vmatpush3.msra.mxu0 %v6213_v52 }
 0x363   : > { %4208 = vmatpush3.msra.mxu1 %v2794_v34  ;;  %4166 = vmatprep.subr.mxu0 %v4644_v13  ;;  %v2705_v14 = vsub.f32 %v6412_v54, %v2704_v12 }
 0x364   : > { %4209 = vmatprep.subr.mxu1 %v4644_v13  ;;  %4167 = vmatpush3.msra.mxu0 %v6239_v7 }
 0x365   : > { %4210 = vmatpush3.msra.mxu1 %v2801_v61  ;;  %4168 = vmatprep.subr.mxu0 %v4644_v13  ;;  %v2706_v59 = vand.u32 4294901760, %v2705_v14 }
 0x366   : > { %4211 = vmatprep.subr.mxu1 %v4644_v13  ;;  %4169 = vmatpush3.msra.mxu0 %v6249_v11 }
 0x367   : > { %4212 = vmatpush3.msra.mxu1 %v2808_v42  ;;  %4170 = vmatprep.subr.mxu0 %v4644_v13 }
 0x368   : > { %4213 = vmatprep.subr.mxu1 %v4644_v13  ;;  %4171 = vmatpush3.msra.mxu0 %v6272_v36 }
 0x369   : > { %4214 = vmatpush3.msra.mxu1 %v2815_v31  ;;  %4172 = vmatprep.subr.mxu0 %v4644_v13 }
 0x36a   : > { %4215 = vmatprep.subr.mxu1 %v4644_v13  ;;  %4173 = vmatpush3.msra.mxu0 %v6288_v53 }
 0x36b   : > { %4216 = vmatpush3.msra.mxu1 %v2822_v28  ;;  %4217 = vmatprep.mubr.msk.f32.mxu1 %vm4645_vm10, %v4644_v13 }
 0x36c   : > { %4174 = vmatprep.subr.mxu0 %v4644_v13  ;;  %4218 = vmatmul.mubr.f32.vlgmr.msra.gmra.mxu1 %v6403_v58 }
 0x36d   : > { %4255 = vmatprep.subr.mxu1 %v4644_v13  ;;  %4175 = vmatpush3.msra.mxu0 %v6304_v19 }
 0x36e   : > { %4256 = vmatpush3.msra.mxu1 %v6121_v22  ;;  %4176 = vmatprep.subr.mxu0 %v4644_v13 }
 0x36f   : > { %4257 = vmatprep.subr.mxu1 %v4644_v13  ;;  %4177 = vmatpush3.msra.mxu0 %v6320_v21 }
 0x370   : > { %4258 = vmatpush3.msra.mxu1 %v6131_v48  ;;  %4178 = vmatprep.subr.mxu0 %v4644_v13 }
 0x371   : > { %4259 = vmatprep.subr.mxu1 %v4644_v13  ;;  %4179 = vmatpush3.msra.mxu0 %v6335_v17 }
 0x372   : > { %4260 = vmatpush3.msra.mxu1 %v6144_v50  ;;  %4180 = vmatprep.subr.mxu0 %v4644_v13 }
 0x373   : > { %4261 = vmatprep.subr.mxu1 %v4644_v13  ;;  %4181 = vmatpush3.msra.mxu0 %v6347_v24 }
 0x374   : > { %4182 = vmatprep.mubr.msk.f32.mxu0 %vm4645_vm10, %v4644_v13  ;;  %4262 = vmatpush3.msra.mxu1 %v6154_v55 }
 0x375   : > { %4183 = vmatmul.mubr.f32.vlgmr.msra.gmra.mxu0 %v2706_v59  ;;  %4220 = vmatprep.subr.mxu0 %v4644_v13 }
 0x376   : > { %4263 = vmatprep.subr.mxu1 %v4644_v13  ;;  %4221 = vmatpush3.msra.mxu0 %v6142_v10 }
 0x377   : > { %4264 = vmatpush3.msra.mxu1 %v6173_v38  ;;  %4222 = vmatprep.subr.mxu0 %v4644_v13 }
 0x378   : > { %4265 = vmatprep.subr.mxu1 %v4644_v13  ;;  %4223 = vmatpush3.msra.mxu0 %v6152_v8 }
 0x379   : > { %4266 = vmatpush3.msra.mxu1 %v6187_v33  ;;  %4224 = vmatprep.subr.mxu0 %v4644_v13 }
 0x37a   : > { %4267 = vmatprep.subr.mxu1 %v4644_v13  ;;  %4225 = vmatpush3.msra.mxu0 %v6166_v15 }
 0x37b   : > { %4268 = vmatpush3.msra.mxu1 %v6199_v9  ;;  %4226 = vmatprep.subr.mxu0 %v4644_v13 }
 0x37c   : > { %4269 = vmatprep.subr.mxu1 %v4644_v13  ;;  %4227 = vmatpush3.msra.mxu0 %v6183_v45 }
 0x37d   : > { %4270 = vmatpush3.msra.mxu1 %v6213_v52  ;;  %4228 = vmatprep.subr.mxu0 %v4644_v13 }
 0x37e   : > { %4271 = vmatprep.subr.mxu1 %v4644_v13  ;;  %4229 = vmatpush3.msra.mxu0 %v6204_v40 }
 0x37f   : > { %4272 = vmatpush3.msra.mxu1 %v6239_v7  ;;  %4230 = vmatprep.subr.mxu0 %v4644_v13 }
 0x380   : > { %4273 = vmatprep.subr.mxu1 %v4644_v13  ;;  %4231 = vmatpush3.msra.mxu0 %v6221_v63 }
 0x381   : > { %4274 = vmatpush3.msra.mxu1 %v6249_v11  ;;  %4232 = vmatprep.subr.mxu0 %v4644_v13 }
 0x382   : > { %4275 = vmatprep.subr.mxu1 %v4644_v13  ;;  %4233 = vmatpush3.msra.mxu0 %v6233_v16 }
 0x383   : > { %4276 = vmatpush3.msra.mxu1 %v6272_v36  ;;  %4234 = vmatprep.subr.mxu0 %v4644_v13 }
 0x384   : > { %4277 = vmatprep.subr.mxu1 %v4644_v13  ;;  %4235 = vmatpush3.msra.mxu0 %v6247_v43 }
 0x385   : > { %4278 = vmatpush3.msra.mxu1 %v6288_v53  ;;  %4236 = vmatprep.subr.mxu0 %v4644_v13 }
 0x386   : > { %4279 = vmatprep.subr.mxu1 %v4644_v13  ;;  %4237 = vmatpush3.msra.mxu0 %v6270_v57 }
 0x387   : > { %4280 = vmatpush3.msra.mxu1 %v6304_v19  ;;  %4238 = vmatprep.subr.mxu0 %v4644_v13 }
 0x388   : > { %4281 = vmatprep.subr.mxu1 %v4644_v13  ;;  %4239 = vmatpush3.msra.mxu0 %v6277_v27 }
 0x389   : > { %4282 = vmatpush3.msra.mxu1 %v6320_v21  ;;  %4240 = vmatprep.subr.mxu0 %v4644_v13 }
 0x38a   : > { %4283 = vmatprep.subr.mxu1 %v4644_v13  ;;  %4241 = vmatpush3.msra.mxu0 %v6302_v46 }
 0x38b   : > { %4284 = vmatpush3.msra.mxu1 %v6335_v17  ;;  %4242 = vmatprep.subr.mxu0 %v4644_v13 }
 0x38c   : > { %4285 = vmatprep.subr.mxu1 %v4644_v13  ;;  %4243 = vmatpush3.msra.mxu0 %v6318_v49 }
 0x38d   : > { %4286 = vmatpush3.msra.mxu1 %v6347_v24  ;;  %4287 = vmatprep.mubr.msk.f32.mxu1 %vm4645_vm10, %v4644_v13 }
 0x38e   : > { %4244 = vmatprep.subr.mxu0 %v4644_v13  ;;  %4288 = vmatmul.mubr.f32.vlgmr.msra.gmra.mxu1 %v2704_v12 }
 0x38f   : > { %4325 = vmatprep.subr.mxu1 %v4644_v13  ;;  %4245 = vmatpush3.msra.mxu0 %v6333_v3 }
 0x390   : > { %4326 = vmatpush3.msra.mxu1 %v6121_v22  ;;  %4246 = vmatprep.subr.mxu0 %v4644_v13 }
 0x391   : > { %4327 = vmatprep.subr.mxu1 %v4644_v13  ;;  %4247 = vmatpush3.msra.mxu0 %v6345_v18  ;;  %v4646_v18 = vmov 0  }
 0x392   : > { %4328 = vmatpush3.msra.mxu1 %v6131_v48  ;;  %4248 = vmatprep.subr.mxu0 %v4644_v13 }
 0x393   : > { %4329 = vmatprep.subr.mxu1 %v4644_v13  ;;  %4249 = vmatpush3.msra.mxu0 %v6362_v6 }
 0x394   : > { %4330 = vmatpush3.msra.mxu1 %v6144_v50  ;;  %4250 = vmatprep.subr.mxu0 %v4644_v13 }
 0x395   : > { %4331 = vmatprep.subr.mxu1 %v4644_v13  ;;  %4251 = vmatpush3.msra.mxu0 %v6372_v35 }
 0x396   : > { %4252 = vmatprep.mubr.msk.f32.mxu0 %vm4645_vm10, %v4644_v13  ;;  %4332 = vmatpush3.msra.mxu1 %v6154_v55 }
 0x397   : > { %4253 = vmatmul.mubr.f32.vlgmr.msra.gmra.mxu0 %v6412_v54  ;;  %4290 = vmatprep.subr.mxu0 %v4644_v13 }
 0x398   : > { %4333 = vmatprep.subr.mxu1 %v4644_v13  ;;  %4291 = vmatpush3.msra.mxu0 %v2715_v2 }
 0x399   : > { %4334 = vmatpush3.msra.mxu1 %v6173_v38  ;;  %4292 = vmatprep.subr.mxu0 %v4644_v13 }
 0x39a   : > { %4335 = vmatprep.subr.mxu1 %v4644_v13  ;;  %4293 = vmatpush3.msra.mxu0 %v2722_v23 }
 0x39b   : > { %4336 = vmatpush3.msra.mxu1 %v6187_v33  ;;  %4294 = vmatprep.subr.mxu0 %v4644_v13 }
 0x39c   : > { %4337 = vmatprep.subr.mxu1 %v4644_v13  ;;  %4295 = vmatpush3.msra.mxu0 %v2729_v62 }
 0x39d   : > { %4338 = vmatpush3.msra.mxu1 %v6199_v9  ;;  %4296 = vmatprep.subr.mxu0 %v4644_v13 }
 0x39e   : > { %4339 = vmatprep.subr.mxu1 %v4644_v13  ;;  %4297 = vmatpush3.msra.mxu0 %v2736_v32 }
 0x39f   : > { %4340 = vmatpush3.msra.mxu1 %v6213_v52  ;;  %4298 = vmatprep.subr.mxu0 %v4644_v13 }
 0x3a0   : > { %4341 = vmatprep.subr.mxu1 %v4644_v13  ;;  %4299 = vmatpush3.msra.mxu0 %v2743_v60 }
 0x3a1   : > { %4342 = vmatpush3.msra.mxu1 %v6239_v7  ;;  %4300 = vmatprep.subr.mxu0 %v4644_v13 }
 0x3a2   : > { %4343 = vmatprep.subr.mxu1 %v4644_v13  ;;  %4301 = vmatpush3.msra.mxu0 %v2750_v30 }
 0x3a3   : > { %4344 = vmatpush3.msra.mxu1 %v6249_v11  ;;  %4302 = vmatprep.subr.mxu0 %v4644_v13 }
 0x3a4   : > { %4345 = vmatprep.subr.mxu1 %v4644_v13  ;;  %4303 = vmatpush3.msra.mxu0 %v2757_v44 }
 0x3a5   : > { %4346 = vmatpush3.msra.mxu1 %v6272_v36  ;;  %4304 = vmatprep.subr.mxu0 %v4644_v13 }
 0x3a6   : > { %4347 = vmatprep.subr.mxu1 %v4644_v13  ;;  %4305 = vmatpush3.msra.mxu0 %v2764_v4 }
 0x3a7   : > { %4348 = vmatpush3.msra.mxu1 %v6288_v53  ;;  %4306 = vmatprep.subr.mxu0 %v4644_v13 }
 0x3a8   : > { %4349 = vmatprep.subr.mxu1 %v4644_v13  ;;  %4307 = vmatpush3.msra.mxu0 %v2771_v37 }
 0x3a9   : > { %4350 = vmatpush3.msra.mxu1 %v6304_v19  ;;  %4308 = vmatprep.subr.mxu0 %v4644_v13  ;;  %v3532_v19 = vld [vmem:[%s6641_s10] ss:$0 sm:$0xff] }
 0x3aa   : > { %4351 = vmatprep.subr.mxu1 %v4644_v13  ;;  %4309 = vmatpush3.msra.mxu0 %v2778_v25 }
 0x3ab   : > { %4352 = vmatpush3.msra.mxu1 %v6320_v21  ;;  %4310 = vmatprep.subr.mxu0 %v4644_v13 }
 0x3ac   : > { %4353 = vmatprep.subr.mxu1 %v4644_v13  ;;  %4311 = vmatpush3.msra.mxu0 %v2785_v41  ;;  %v3533_v41 = vld [vmem:[%s6642_s11] ss:$0 sm:$0xff] }
 0x3ad   : > { %4354 = vmatpush3.msra.mxu1 %v6335_v17  ;;  %4312 = vmatprep.subr.mxu0 %v4644_v13 }
 0x3ae   : > { %4355 = vmatprep.subr.mxu1 %v4644_v13  ;;  %4313 = vmatpush3.msra.mxu0 %v2792_v39 }
 0x3af   : > { %4356 = vmatpush3.msra.mxu1 %v6347_v24  ;;  %4357 = vmatprep.mubr.msk.f32.mxu1 %vm4645_vm10, %v4644_v13  ;;  %v3534_v24 = vld [vmem:[#allocation3] ss:$0 sm:$0xff] }
 0x3b0   : > { %4314 = vmatprep.subr.mxu0 %v4644_v13  ;;  %4358 = vmatmul.mubr.f32.vlgmr.msra.gmra.mxu1 %v6403_v58 }
 0x3b1   : > { %4315 = vmatpush3.msra.mxu0 %v2799_v51  ;;  %4322 = vmatprep.mubr.msk.f32.mxu0 %vm4645_vm10, %v4644_v13 }
 0x3b2   : > { %4316 = vmatprep.subr.mxu0 %v4644_v13  ;;  %4491 = vset.pattern.permute.xlu1 %v4646_v18 }
 0x3b3   : > { %4317 = vmatpush3.msra.mxu0 %v2806_v56  ;;  %4492 = vset.pattern.permute.xlu0 %v4646_v18 }
 0x3b4   : > { %4318 = vmatprep.subr.mxu0 %v4644_v13 }
 0x3b5   : > { %4319 = vmatpush3.msra.mxu0 %v2813_v0 }
 0x3b6   : > { %4320 = vmatprep.subr.mxu0 %v4644_v13 }
 0x3b7   : > { %4321 = vmatpush3.msra.mxu0 %v2820_v29 }
 0x3b8   : > { %4323 = vmatmul.mubr.f32.vlgmr.msra.gmra.mxu0 %v6403_v58 }
 0x3cc   : > { %v2225_v22 = vpop.f32.mrf.mxu1 }
 0x3ce   : > { %v4017_v48 = vpop.f32.mrf.mxu1 }
 0x3d4   : > { %v2079_v10 = vpop.f32.mrf.mxu0 }
 0x3d5   : > { %v2226_v50 = vadd.f32 %v2225_v22, %v2079_v10 }
 0x3d6   : > { %v3984_v8 = vpop.f32.mrf.mxu0 }
 0x3ea   : > { %v2415_v55 = vpop.f32.mrf.mxu1 }
 0x3ec   : > { %v4083_v2 = vpop.f32.mrf.mxu1 }
 0x3f3   : > { %v2327_v15 = vpop.f32.mrf.mxu0 }
 0x3f4   : > { %v2328_v38 = vadd.f32 %v2327_v15, %v2226_v50 }
 0x3f5   : > { %v4050_v23 = vpop.f32.mrf.mxu0 }
 0x3f6   : > { %v2416_v45 = vadd.f32 %v2415_v55, %v2328_v38 }
 0x40a   : > { %v2617_v33 = vpop.f32.mrf.mxu1 }
 0x40c   : > { %v4149_v62 = vpop.f32.mrf.mxu1 }
 0x413   : > { %v2531_v9 = vpop.f32.mrf.mxu0 }
 0x414   : > { %v2532_v13 = vadd.f32 %v2531_v9, %v2416_v45 }
 0x415   : > { %v4116_v40 = vpop.f32.mrf.mxu0 }
 0x416   : > { %v2618_v32 = vadd.f32 %v2617_v33, %v2532_v13 }
 0x42c   : > { %v2859_v52 = vpop.f32.mrf.mxu1 }
 0x42e   : > { %v4219_v63 = vpop.f32.mrf.mxu1 }
 0x435   : > { %v2708_v16 = vpop.f32.mrf.mxu0 }
 0x436   : > { %v2709_v60 = vadd.f32 %v2708_v16, %v2618_v32 }
 0x437   : > { %v4184_v7 = vpop.f32.mrf.mxu0 }
 0x438   : > { %v2860_v43 = vadd.f32 %v2859_v52, %v2709_v60 }
 0x44e   : > { %v3052_v11 = vpop.f32.mrf.mxu1 }
 0x450   : > { %v4289_v30 = vpop.f32.mrf.mxu1 }
 0x457   : > { %v2963_v44 = vpop.f32.mrf.mxu0 }
 0x458   : > { %v2964_v27 = vadd.f32 %v2963_v44, %v2860_v43 }
 0x459   : > { %v4254_v57 = vpop.f32.mrf.mxu0 }
 0x45a   : > { %v3053_v53 = vadd.f32 %v3052_v11, %v2964_v27 }
 0x470   : > { %v3258_v36 = vpop.f32.mrf.mxu1 }
 0x472   : > { %v4359_v4 = vpop.f32.mrf.mxu1 }
 0x478   : > { %v3171_v37 = vpop.f32.mrf.mxu0 }
 0x479   : > { %v3172_v46 = vadd.f32 %v3171_v37, %v3053_v53 }
 0x47a   : > { %v4324_v25 = vpop.f32.mrf.mxu0 }
 0x47b   : > { %v3259_v49 = vadd.f32 %v3258_v36, %v3172_v46 }
 0x47d   : > { %v3269_v21 = vadd.f32 %v3532_v19, %v3259_v49 }
 0x47f   : > { %v3270_v3 = vmax.f32 %v3269_v21, 0.0 }
 0x481   : > { %v3278_v17 = vmul.f32 %v3533_v41, %v3270_v3 }
 0x483   : > { %v3280_v39 = vsel %vm3279_vm11, %v3278_v17, 0.0 }
 0x484   : > { %3281 = vadd.xlane.f32.xlu0 %v3280_v39 }
 0x50d   : > { %v3282_v51 = vpop.xlane.xlu0 %3281 }
 0x50e   : > { %v3290_v6 = vadd.f32 %v3534_v24, %v3282_v51 }
 0x510   : > { %3293 = vperm.xlu1 %4491, %v3290_v6  }
 0x58b   : > { %v3294_v56 = vpop.permute.xlu1 %3293 }
 0x58c   : > { %3296 = vst [vmem:[#allocation5] sm:$0xff] %v3294_v56 }
 0x58d PF: > { %s6825_s23 = sadd.s32 4294967295, %s4601_s14   ;;  %s4647_s26 = smov [#allocation5]  }
 0x58e   : > { %p6601_p7 = scmp.eq.s32.totalorder %s6825_s23, 2  ;;  %s3306_s17 = sshll.u32 %s4647_s26, 4  ;;  %s3307_s17 = int_to_ptr.vmem [resolvable:$true] %s3306_s17 }
 0x58f   : > { %s4495_s16 = scalar_lea.vmem %s3307_s17, 128  ;;  %p4502_p11 = scmp.lt.s32.totalorder %s3307_s17, %s3307_s17 }
 0x590   : > { %p4496_p8 = scmp.ne.s32.totalorder %s3307_s17, %s4495_s16  ;;  %p4503_p12 = scmp.lt.s32.totalorder %s4495_s16, %s4495_s16 }
 0x592   : > { %p4497_p9 = pnand %p4496_p8, %p6601_p7  ;;  %p4504_p13 = por %p4503_p12, %p4502_p11 }
 0x594   : > { %p4498_p10 = pneg %p4497_p9 }
 0x596   : > { %p4505_p0 = pnand %p4504_p13, %p4498_p10 }
 0x598   : > { %4508 = shalt.err (!%p4505_p0)
}
 0x599   : > { %s6827_s21 = sld [smem:[#allocation37_spill]] }
 0x59f   : > { %4361 = dma.vmem_to_hbm [thread:$0]  (%p6601_p7), %s3307_s17, 128, %s6827_s21, [#allocation6]  }
 0x5a0   : > { %4580 = dma.done.wait (%p6601_p7), [#allocation6], 128  }
 0x5a1   : > { %4582 = vsyncadd (%p6601_p7), [#allocation6], 4294967168 }
 0x5a2 PF: > { %s26_s14 = sadd.s32 1, %s4601_s14   ;;  %s6828_s27 = sld [smem:[#allocation8_spill]] }
 0x5a3   : > { %p23_p1 = scmp.ge.s32.totalorder %s26_s14, 5   ;;  %s6829_s28 = sld [smem:[#allocation11_spill]] }
 0x5a4   : > { %s6830_s29 = sld [smem:[#allocation9_spill]] }
 0x5a5   : > { %s6831_s30 = sld [smem:[#allocation10_spill]]  ;;  %25 = sbr.rel (!%p23_p1) target bundleno = 6 (0x6), region = 232 }
 0x5aa   :  { %3319 = vsyncpa [#allocation6], 1 }
 0x5ab   :  { %3321 = vsyncpa [#allocation6 + $0x1], 1 }

// kernel: tpu_custom_call.1
= control target key start
LH: loop header
LB: loop body
LE: loop exit
PB: predicated region body
PF: predicated region fallthrough
CT: control target
= control target key end

     0   :  { %s6631_s0 = inlined_call_operand.vmem [shape: bf16[2,40,256], index: 0, kind: input, shape index: {}]   ;;  %s6632_s1 = inlined_call_operand.vmem [shape: f32[2,120], index: 1, kind: input, shape index: {}]   ;;  %s6633_s2 = inlined_call_operand.vmem [shape: f32[256,128], index: 2, kind: input, shape index: {}]   ;;  %s6634_s3 = inlined_call_operand.vmem [shape: f32[1,128], index: 3, kind: input, shape index: {}]   ;;  %s6635_s4 = inlined_call_operand.vmem [shape: f32[1,128], index: 4, kind: input, shape index: {}]   ;;  %s6636_s5 = inlined_call_operand.vmem [shape: f32[1,128], index: 5, kind: input, shape index: {}]   ;;  %s6637_s6 = inlined_call_operand.vmem [shape: f32[1,120], index: 6, kind: input, shape index: {}]   ;;  %s6638_s7 = inlined_call_operand.vmem [shape: f32[1,120], index: 7, kind: input, shape index: {}]   ;;  %s6639_s8 = inlined_call_operand.vmem [shape: f32[128,64], index: 8, kind: input, shape index: {}]   ;;  %s6640_s9 = inlined_call_operand.vmem [shape: f32[120,64], index: 9, kind: input, shape index: {}]   ;;  %s6641_s10 = inlined_call_operand.vmem [shape: f32[1,64], index: 10, kind: input, shape index: {}]   ;;  %s6642_s11 = inlined_call_operand.vmem [shape: f32[1,64], index: 11, kind: input, shape index: {}]   ;;  %s6643_s12 = inlined_call_operand.<no memory space> [shape: f32[1,1], index: 12, kind: input, shape index: {}]   ;;  %s6644_s13 = inlined_call_operand.hbm [shape: f32[8,128], index: 13, kind: output, shape index: {}]  }
   0x1   :  { %6717 = sst [smem:[#allocation36_spill]] %s6631_s0  ;;  %v18_v0 = vstv %s6643_s12 }
   0x2   :  { %6718 = sst [smem:[#allocation37_spill]] %s6644_s13  ;;  %19 = vst [vmem:[#allocation3] sm:$0x1] %v18_v0 }
   0x3   :  { %20 = vsyncpa [#allocation6], 0  ;;  %s4721_s27 = smov 0   ;;  %s4723_s28 = smov 0  }
   0x4   :  { %s4725_s29 = smov 0   ;;  %s4727_s30 = smov 0  }
   0x5   :  { %s4729_s14 = smov 0  }
   0x6 LB: > { %6719 = sst [smem:[#allocation8_spill]] %s4589_s28  ;;  %s35_s15 = sadd.s32 1, %s4597_s30  ;;  %s4601_s14 = sphi %s4729_s14, %s26_s14   ;;  %s4597_s30 = sphi %s4727_s30, %s6831_s30   ;;  %s4593_s29 = sphi %s4725_s29, %s6830_s29   ;;  %s4589_s28 = sphi %s4723_s28, %s6829_s28   ;;  %s4585_s27 = sphi %s4721_s27, %s6828_s27  }
   0x7   : > { %6720 = sst [smem:[#allocation9_spill]] %s4597_s30  ;;  %p36_p0 = scmp.ge.s32.totalorder %s35_s15, 3 }
   0x8   : > { %p54_p1 = scmp.ne.s32.totalorder %s4589_s28, %s4585_s27  ;;  %p55_p2 = scmp.eq.s32.totalorder %s4601_s14, 0 }
   0x9   : > { %s6833_s15 = smov (%p36_p0, %s35_s15), 0  ;;  %s47_s17 = sadd.s32 1, %s4589_s28 }
   0xa   : > { %6721 = sst [smem:[#allocation10_spill]] %s6833_s15  ;;  %p56_p3 = por %p55_p2, %p54_p1 }
   0xb   : > { %s43_s16 = ssub.s32 %s4597_s30, %s6833_s15  ;;  %p3494_p5 = scmp.ge.s32.totalorder %s4601_s14, 3 }
   0xc   : > { %p45_p4 = scmp.eq.s32.totalorder %s43_s16, 0 }
   0xd   : > { %409 = sbr.rel (%p3494_p5) target bundleno = 69 (0x45), region = 64 }
   0xe   : > { %s4757_s18 = scalar_select %p45_p4, %s4589_s28, %s47_s17  }
  0x10   : > { %6722 = sst [smem:[#allocation11_spill]] %s4757_s18 }
  0x12   : > { %412 = sbr.rel (!%p56_p3) target bundleno = 69 (0x45), region = 68  ;;  %s414_s19 = sand.u32 (%p56_p3), 1, %s4589_s28  }
  0x13   : > { %s3496_s20 = sshll.u32 (%p56_p3), %s4597_s30, 1  ;;  %s3495_s21 = sshll.u32 (%p56_p3), %s414_s19, 7 }
  0x14   : > { %s421_s22 = ssub.s32 (%p56_p3), 5, %s3496_s20  ;;  %s3541_s23 = sshll.u32 (%p56_p3), %s4597_s30, 4 }
  0x15   : > { %p422_p6 = scmp.lt.s32.totalorder (%p56_p3), %s421_s22, 2  ;;  %s6723_s0 = sld [smem:[#allocation36_spill]] (%p56_p3) }
  0x16   : > { %s4771_s17 = scalar_lea.vmem (%p56_p3), [#allocation4], %s3495_s21  }
  0x17   : > { %s6835_s22 = smov (!%p422_p6, %s421_s22), 2 }
  0x18   : > { %s3539_s16 = sshll.u32 %s6835_s22, 8 }
  0x19   : > { %p3502_p7 = scmp.eq.s32.totalorder %s3539_s16, 0 }
  0x1a   : > { %s4774_s12 = sshrl.u32 (!%p3502_p7), %s6835_s22, 1 }
  0x1b   : > { %s4768_s26 = scalar_lea.vmem %s6723_s0, %s3541_s23   ;;  %434 = sbr.rel (%p3502_p7) target bundleno = 69 (0x45), region = 72 }
  0x1c   : > { %p3503_p8 = scmp.le.s32.totalorder (!%p3502_p7), %s4774_s12, 0 }
  0x20   : > { %3411 = sbr.rel (%p3503_p8) target bundleno = 48 (0x30), region = 193  ;;  %s6724_s19 = smov (!%p3503_p8), %s4771_s17 }
  0x21   : > { %s6725_s20 = smov (!%p3503_p8), %s4768_s26  ;;  %s4783_s24 = smov (!%p3503_p8), 0  }
  0x22   : > { %s4785_s23 = smov (!%p3503_p8), 0   ;;  %s4787_s21 = smov (!%p3503_p8), 0  }
  0x25 LB: >> { %v565_v1 = vld [vmem:[%s4609_s20] sm:$0xff]  ;;  %v567_v2 = vld [vmem:[%s4609_s20 + $0x8] sm:$0xff]  ;;  %s573_s25 = sadd.s32 1, %s4613_s24  ;;  %v571_v4 = vld [vmem:[%s4609_s20 + $0x30] sm:$0xff]  ;;  %s576_s16 = sadd.s32 1, %s4617_s23  ;;  %s4621_s21 = sphi %s4787_s21, %s558_s21   ;;  %s4617_s23 = sphi %s4785_s23, %s6727_s23   ;;  %s4613_s24 = sphi %s4783_s24, %s6726_s24   ;;  %s4609_s20 = sphi %s6725_s20, %s586_s20   ;;  %s4605_s19 = sphi %s6724_s19, %s587_s19  }
  0x26   : >> { %v569_v3 = vld [vmem:[%s4609_s20 + $0x28] sm:$0xff]  ;;  %566 = vst [vmem:[%s4605_s19] sm:$0xff] %v565_v1  ;;  %568 = vst [vmem:[%s4605_s19 + $0x8] sm:$0xff] %v567_v2  ;;  %p574_p9 = scmp.ge.s32.totalorder %s573_s25, %s4774_s12  ;;  %s558_s21 = sadd.s32 1, %s4621_s21  }
  0x27   : >> { %570 = vst [vmem:[%s4605_s19 + $0x10] sm:$0xff] %v569_v3  ;;  %572 = vst [vmem:[%s4605_s19 + $0x18] sm:$0xff] %v571_v4  ;;  %p557_p11 = scmp.ge.s32.totalorder %s558_s21, %s4774_s12 }
  0x28   : >> { %s6837_s25 = smov (%p574_p9, %s573_s25), 0  ;;  %s6839_s16 = smov (!%p574_p9, %s576_s16), %s4617_s23 }
  0x29   : >> { %p578_p10 = scmp.ge.s32.totalorder %s6839_s16, 1  ;;  %s3504_s0 = sshll.u32 %s6837_s25, 4 }
  0x2a   : >> { %s6726_s24 = smov %s6837_s25 }
  0x2b   : >> { %s6841_s16 = smov (%p578_p10, %s6839_s16), 0  ;;  %560 = sbr.rel (!%p557_p11) target bundleno = 37 (0x25), region = 199 }
  0x2c   : >> { %s580_s15 = smul.u32 80, %s6841_s16  ;;  %s3505_s30 = sshll.u32 %s6841_s16, 5 }
  0x2d   : >> { %s585_s18 = sadd.s32 %s3505_s30, %s3504_s0  ;;  %s6727_s23 = smov %s6841_s16 }
  0x2e   : >> { %s582_s28 = sadd.s32 %s3504_s0, %s580_s15  ;;  %s587_s19 = scalar_lea.vmem %s4771_s17, %s585_s18 [#allocation4]  }
  0x2f   : >> { %s586_s20 = scalar_lea.vmem %s4768_s26, %s582_s28  }
  0x30 PF: > { %s627_s0 = sand.u32 1, %s6835_s22   ;;  %s3542_s28 = sshll.u32 %s4774_s12, 4 }
  0x31   : > { %s4814_s30 = scalar_lea.vmem %s4768_s26, %s3542_s28   ;;  %s4817_s15 = scalar_lea.vmem %s4771_s17, %s3542_s28 [#allocation4]  }
  0x32   : > { %s4821_s18 = sshll.u32 %s627_s0, 1 }
  0x33   : > { %p3518_p12 = scmp.le.s32.totalorder %s4821_s18, 0 }
  0x34   : > { %s6728_s19 = smov (!%p3518_p12), %s4817_s15  ;;  %s6729_s20 = smov (!%p3518_p12), %s4814_s30 }
  0x35   : > { %3445 = sbr.rel (%p3518_p12) target bundleno = 69 (0x45), region = 215  ;;  %s4830_s24 = smov (!%p3518_p12), 0  }
  0x36   : > { %s4832_s23 = smov (!%p3518_p12), 0   ;;  %s4834_s12 = smov (!%p3518_p12), 0  }
  0x3a LB: >> { %v644_v5 = vld [vmem:[%s4629_s20] sm:$0xff]  ;;  %s646_s26 = sadd.s32 1, %s4633_s24  ;;  %s649_s17 = sadd.s32 1, %s4637_s23  ;;  %s4641_s12 = sphi %s4834_s12, %s637_s12   ;;  %s4637_s23 = sphi %s4832_s23, %s6731_s23   ;;  %s4633_s24 = sphi %s4830_s24, %s6730_s24   ;;  %s4629_s20 = sphi %s6729_s20, %s659_s20   ;;  %s4625_s19 = sphi %s6728_s19, %s660_s19  }
  0x3b   : >> { %645 = vst [vmem:[%s4625_s19] sm:$0xff] %v644_v5  ;;  %p647_p13 = scmp.ge.s32.totalorder %s646_s26, %s627_s0  ;;  %s637_s12 = sadd.s32 1, %s4641_s12  }
  0x3c   : >> { %p636_p1 = scmp.ge.s32.totalorder %s637_s12, %s4821_s18 }
  0x3d   : >> { %s6843_s26 = smov (%p647_p13, %s646_s26), 0  ;;  %s6845_s17 = smov (!%p647_p13, %s649_s17), %s4637_s23 }
  0x3e   : >> { %p651_p0 = scmp.ge.s32.totalorder %s6845_s17, 2  ;;  %s3519_s21 = sshll.u32 %s6843_s26, 3 }
  0x3f   : >> { %s6730_s24 = smov %s6843_s26 }
  0x40   : >> { %s6847_s17 = smov (%p651_p0, %s6845_s17), 0  ;;  %639 = sbr.rel (!%p636_p1) target bundleno = 58 (0x3a), region = 221 }
  0x41   : >> { %s653_s25 = smul.u32 40, %s6847_s17  ;;  %s3520_s16 = sshll.u32 %s6847_s17, 4 }
  0x42   : >> { %s658_s28 = sadd.s32 %s3520_s16, %s3519_s21  ;;  %s6731_s23 = smov %s6847_s17 }
  0x43   : >> { %s655_s13 = sadd.s32 %s3519_s21, %s653_s25  ;;  %s660_s19 = scalar_lea.vmem %s4817_s15, %s658_s28 [#allocation4]  }
  0x44   : >> { %s659_s20 = scalar_lea.vmem %s4814_s30, %s655_s13  }
  0x45 PF: > { %p3522_p2 = scmp.ge.s32.totalorder %s4601_s14, 1  ;;  %p665_p3 = scmp.lt.s32.totalorder %s4601_s14, 4 }
  0x47   : > { %p666_p4 = pnand %p3522_p2, %p665_p3 }
  0x48   : > { %s672_s13 = sand.u32 (!%p666_p4), 1, %s4585_s27   ;;  %p3524_p5 = scmp.ne.s32.totalorder (!%p666_p4), %s4593_s29, 0 }
  0x49   : > { %669 = sbr.rel (%p666_p4) target bundleno = 1442 (0x5a2), region = 134  ;;  %s3523_s21 = sshll.u32 (!%p666_p4), %s672_s13, 7 }
  0x4a   : > { %s4859_s25 = scalar_lea.vmem (!%p666_p4), [#allocation4], %s3523_s21 }
  0x4e   : > { %739 = sbr.rel (%p3524_p5) target bundleno = 85 (0x55), region = 142 }
  0x53   : > { %v4643_v6 = vmov 0.0  }
  0x54   : > { %740 = vst [vmem:[#allocation2] sm:$0xff] %v4643_v6  ;;  %741 = vst [vmem:[#allocation2 + $0x8] sm:$0xff] %v4643_v6 }
  0x55 PF: > { %v745_v7 = vld [vmem:[%s4859_s25] sm:$0xff]  ;;  %v4864_v8 = vld [vmem:[%s4859_s25 + $0x8] sm:$0xff]  ;;  %v747_v9 = vld [vmem:[%s4859_s25 + $0x10] sm:$0xff]  ;;  %v795_v18 = vlaneseq  ;;  %s3525_s27 = sshll.u32 %s4593_s29, 4  ;;  %vm969_vm2 = vcmask 1041409   ;;  %vm971_vm3 = vcmask 1042434  }
  0x56   : > { %v4868_v10 = vld [vmem:[%s4859_s25 + $0x18] sm:$0xff]  ;;  %v749_v11 = vld [vmem:[%s4859_s25 + $0x20] sm:$0xff]  ;;  %v4872_v12 = vld [vmem:[%s4859_s25 + $0x28] sm:$0xff]  ;;  %v761_v15 = vunpack.c.l.bf16 %v745_v7  ;;  %v762_v16 = vunpack.c.h.bf16 %v745_v7  ;;  %v763_v17 = vunpack.c.l.bf16 %v4864_v8  ;;  %v764_v20 = vunpack.c.h.bf16 %v4864_v8  ;;  %p3526_p6 = scmp.ne.s32.totalorder %s4593_s29, 2 }
  0x57   : > { %v4875_v13 = vld [vmem:[%s4859_s25 + $0x30] sm:$0xff]  ;;  %v4878_v14 = vld [vmem:[%s4859_s25 + $0x38] sm:$0xff]  ;;  %v4882_v19 = vld [vmem:[%s4859_s25 + $0x40] sm:$0xff]  ;;  %v765_v21 = vunpack.c.l.bf16 %v747_v9  ;;  %v766_v22 = vunpack.c.h.bf16 %v747_v9  ;;  %v767_v23 = vunpack.c.l.bf16 %v4868_v10  ;;  %v768_v26 = vunpack.c.h.bf16 %v4868_v10 }
  0x58   : > { %v754_v24 = vld [vmem:[%s4859_s25 + $0x48] sm:$0xff]  ;;  %v755_v25 = vld [vmem:[%s4859_s25 + $0x50] sm:$0xff]  ;;  %v769_v27 = vunpack.c.l.bf16 %v749_v11  ;;  %v770_v28 = vunpack.c.h.bf16 %v749_v11  ;;  %v771_v29 = vunpack.c.l.bf16 %v4872_v12  ;;  %v756_v30 = vld [vmem:[%s4859_s25 + $0x58] sm:$0xff]  ;;  %v772_v31 = vunpack.c.h.bf16 %v4872_v12 }
  0x59   : > { %v773_v32 = vunpack.c.l.bf16 %v4875_v13  ;;  %v774_v33 = vunpack.c.h.bf16 %v4875_v13  ;;  %v775_v34 = vunpack.c.l.bf16 %v4878_v14  ;;  %v757_v35 = vld [vmem:[%s4859_s25 + $0x60] sm:$0xff]  ;;  %v758_v36 = vld [vmem:[%s4859_s25 + $0x68] sm:$0xff]  ;;  %v776_v37 = vunpack.c.h.bf16 %v4878_v14  ;;  %v4901_v41 = vld [vmem:[%s4859_s25 + $0x70] sm:$0xff] }
  0x5a   : > { %v777_v38 = vunpack.c.l.bf16 %v4882_v19  ;;  %v796_v39 = vshrl.u32 %v795_v18, 7  ;;  %v798_v40 = vstv %s3525_s27  ;;  %v778_v42 = vunpack.c.h.bf16 %v4882_v19  ;;  %v4905_v46 = vld [vmem:[%s4859_s25 + $0x78] sm:$0xff] }
  0x5b   : > { %v779_v43 = vunpack.c.l.bf16 %v754_v24  ;;  %v780_v44 = vunpack.c.h.bf16 %v754_v24  ;;  %v781_v45 = vunpack.c.l.bf16 %v755_v25  ;;  %v782_v47 = vunpack.c.h.bf16 %v755_v25 }
  0x5c   : > { %v783_v48 = vunpack.c.l.bf16 %v756_v30  ;;  %v797_v49 = vadd.s32 8, %v796_v39  ;;  %v4907_v50 = vadd.s32 %v798_v40, %v796_v39  ;;  %v784_v51 = vunpack.c.h.bf16 %v756_v30 }
  0x5d   : > { %v785_v52 = vunpack.c.l.bf16 %v757_v35  ;;  %v786_v53 = vunpack.c.h.bf16 %v757_v35  ;;  %v787_v54 = vunpack.c.l.bf16 %v758_v36  ;;  %v788_v55 = vunpack.c.h.bf16 %v758_v36 }
  0x5e   : > { %v789_v56 = vunpack.c.l.bf16 %v4901_v41  ;;  %v4910_v57 = vadd.s32 %v798_v40, %v797_v49  ;;  %vm801_vm0 = vcmp.lt.s32.totalorder %v4907_v50, 40  ;;  %v790_v58 = vunpack.c.h.bf16 %v4901_v41 }
  0x5f   : > { %v791_v59 = vunpack.c.l.bf16 %v4905_v46  ;;  %v792_v60 = vunpack.c.h.bf16 %v4905_v46  ;;  %v807_v61 = vsel %vm801_vm0, %v761_v15, 0.0  ;;  %v808_v62 = vsel %vm801_vm0, %v762_v16, 0.0 }
  0x60   : > { %vm802_vm1 = vcmp.lt.s32.totalorder %v4910_v57, 40  ;;  %v811_v63 = vsel %vm801_vm0, %v765_v21, 0.0  ;;  %v812_v0 = vsel %vm801_vm0, %v766_v22, 0.0  ;;  %v815_v2 = vsel %vm801_vm0, %v769_v27, 0.0 }
  0x61   : > { %v809_v1 = vsel %vm802_vm1, %v763_v17, 0.0  ;;  %v816_v3 = vsel %vm801_vm0, %v770_v28, 0.0  ;;  %v819_v4 = vsel %vm801_vm0, %v773_v32, 0.0  ;;  %v810_v5 = vsel %vm802_vm1, %v764_v20, 0.0 }
  0x62   : > { %v813_v6 = vsel %vm802_vm1, %v767_v23, 0.0  ;;  %v814_v7 = vsel %vm802_vm1, %v768_v26, 0.0  ;;  %v817_v8 = vsel %vm802_vm1, %v771_v29, 0.0  ;;  %v818_v9 = vsel %vm802_vm1, %v772_v31, 0.0 }
  0x63   : > { %v820_v10 = vsel %vm801_vm0, %v774_v33, 0.0  ;;  %v821_v11 = vsel %vm802_vm1, %v775_v34, 0.0  ;;  %v822_v12 = vsel %vm802_vm1, %v776_v37, 0.0  ;;  %v4951_v13 = vsel %vm801_vm0, %v777_v38, 0.0 }
  0x64   : > { %v4955_v14 = vsel %vm801_vm0, %v778_v42, 0.0  ;;  %v4959_v15 = vsel %vm802_vm1, %v779_v43, 0.0  ;;  %v4963_v16 = vsel %vm802_vm1, %v780_v44, 0.0  ;;  %v4967_v17 = vsel %vm801_vm0, %v781_v45, 0.0 }
  0x65   : > { %v4971_v18 = vsel %vm801_vm0, %v782_v47, 0.0  ;;  %v4975_v19 = vsel %vm802_vm1, %v783_v48, 0.0  ;;  %v4979_v20 = vsel %vm802_vm1, %v784_v51, 0.0  ;;  %v4983_v21 = vsel %vm801_vm0, %v785_v52, 0.0 }
  0x66   : > { %v4987_v22 = vsel %vm801_vm0, %v786_v53, 0.0  ;;  %v4991_v23 = vsel %vm802_vm1, %v787_v54, 0.0  ;;  %v4995_v24 = vsel %vm802_vm1, %v788_v55, 0.0  ;;  %v4999_v25 = vsel %vm801_vm0, %v789_v56, 0.0 }
  0x67   : > { %v841_v26 = vadd.f32 %v809_v1, %v807_v61  ;;  %v848_v27 = vadd.f32 %v810_v5, %v808_v62  ;;  %v855_v28 = vadd.f32 %v813_v6, %v811_v63  ;;  %v862_v29 = vadd.f32 %v814_v7, %v812_v0 }
  0x68   : > { %v869_v30 = vadd.f32 %v817_v8, %v815_v2  ;;  %v876_v31 = vadd.f32 %v818_v9, %v816_v3  ;;  %v883_v32 = vadd.f32 %v821_v11, %v819_v4  ;;  %v890_v36 = vadd.f32 %v822_v12, %v820_v10 }
  0x69   : > { %v842_v33 = vrot.slane %v841_v26, 4  ;;  %v849_v34 = vrot.slane %v848_v27, 4  ;;  %v856_v35 = vrot.slane %v855_v28, 4  ;;  %v863_v37 = vrot.slane %v862_v29, 4 }
  0x6a   : > { %v870_v38 = vrot.slane %v869_v30, 4  ;;  %v877_v39 = vrot.slane %v876_v31, 4  ;;  %v884_v40 = vrot.slane %v883_v32, 4  ;;  %v891_v45 = vrot.slane %v890_v36, 4 }
  0x6b   : > { %v843_v42 = vadd.f32 %v842_v33, %v841_v26  ;;  %v850_v43 = vadd.f32 %v849_v34, %v848_v27  ;;  %v857_v44 = vadd.f32 %v856_v35, %v855_v28  ;;  %v864_v47 = vadd.f32 %v863_v37, %v862_v29 }
  0x6c   : > { %v871_v48 = vadd.f32 %v870_v38, %v869_v30  ;;  %v878_v49 = vadd.f32 %v877_v39, %v876_v31  ;;  %v885_v51 = vadd.f32 %v884_v40, %v883_v32  ;;  %v892_v55 = vadd.f32 %v891_v45, %v890_v36 }
  0x6d   : > { %v844_v52 = vrot.slane %v843_v42, 2  ;;  %v851_v53 = vrot.slane %v850_v43, 2  ;;  %v858_v54 = vrot.slane %v857_v44, 2  ;;  %v865_v56 = vrot.slane %v864_v47, 2 }
  0x6e   : > { %v872_v61 = vrot.slane %v871_v48, 2  ;;  %v879_v62 = vrot.slane %v878_v49, 2  ;;  %v886_v63 = vrot.slane %v885_v51, 2  ;;  %v893_v3 = vrot.slane %v892_v55, 2 }
  0x6f   : > { %v845_v0 = vadd.f32 %v844_v52, %v843_v42  ;;  %v852_v1 = vadd.f32 %v851_v53, %v850_v43  ;;  %v859_v2 = vadd.f32 %v858_v54, %v857_v44  ;;  %v866_v4 = vadd.f32 %v865_v56, %v864_v47 }
  0x70   : > { %v873_v5 = vadd.f32 %v872_v61, %v871_v48  ;;  %v5001_v6 = vadd.f32 %v879_v62, %v878_v49  ;;  %v5003_v7 = vadd.f32 %v886_v63, %v885_v51  ;;  %v5005_v11 = vadd.f32 %v893_v3, %v892_v55 }
  0x71   : > { %v846_v8 = vrot.slane %v845_v0, 1  ;;  %v853_v9 = vrot.slane %v852_v1, 1  ;;  %v860_v10 = vrot.slane %v859_v2, 1  ;;  %v836_v12 = vsel %vm801_vm0, %v790_v58, 0.0 }
  0x72   : > { %v837_v26 = vsel %vm802_vm1, %v791_v59, 0.0  ;;  %v867_v27 = vrot.slane %v866_v4, 1  ;;  %v874_v28 = vrot.slane %v873_v5, 1  ;;  %v838_v29 = vsel %vm802_vm1, %v792_v60, 0.0 }
  0x73   : > { %v5019_v30 = vadd.f32 %v846_v8, %v845_v0  ;;  %v881_v31 = vrot.slane %v5001_v6, 1  ;;  %v888_v41 = vrot.slane %v5003_v7, 1  ;;  %v5023_v50 = vadd.f32 %v853_v9, %v852_v1 }
  0x74   : > { %v5025_v58 = vadd.f32 %v860_v10, %v859_v2  ;;  %v5027_v32 = vadd.f32 %v867_v27, %v866_v4  ;;  %v895_v59 = vrot.slane %v5005_v11, 1  ;;  %v5030_v33 = vadd.f32 %v874_v28, %v873_v5 }
  0x75   : > { %v897_v46 = vadd.f32 %v4959_v15, %v4951_v13  ;;  %v904_v57 = vadd.f32 %v4963_v16, %v4955_v14  ;;  %v911_v60 = vadd.f32 %v4975_v19, %v4967_v17  ;;  %v918_v34 = vadd.f32 %v4979_v20, %v4971_v18 }
  0x76   : > { %v925_v35 = vadd.f32 %v4991_v23, %v4983_v21  ;;  %v932_v36 = vadd.f32 %v4995_v24, %v4987_v22  ;;  %v939_v37 = vadd.f32 %v837_v26, %v4999_v25  ;;  %v946_v15 = vadd.f32 %v838_v29, %v836_v12 }
  0x77   : > { %v898_v38 = vrot.slane %v897_v46, 4  ;;  %v905_v39 = vrot.slane %v904_v57, 4  ;;  %v912_v13 = vrot.slane %v911_v60, 4  ;;  %v919_v40 = vrot.slane %v918_v34, 4 }
  0x78   : > { %v926_v14 = vrot.slane %v925_v35, 4  ;;  %v933_v16 = vrot.slane %v932_v36, 4  ;;  %v940_v42 = vrot.slane %v939_v37, 4  ;;  %v947_v20 = vrot.slane %v946_v15, 4 }
  0x79   : > { %v899_v17 = vadd.f32 %v898_v38, %v897_v46  ;;  %v906_v19 = vadd.f32 %v905_v39, %v904_v57  ;;  %v913_v18 = vadd.f32 %v912_v13, %v911_v60  ;;  %v920_v21 = vadd.f32 %v919_v40, %v918_v34 }
  0x7a   : > { %v927_v23 = vadd.f32 %v926_v14, %v925_v35  ;;  %v934_v43 = vadd.f32 %v933_v16, %v932_v36  ;;  %v941_v22 = vadd.f32 %v940_v42, %v939_v37  ;;  %vm973_vm4 = vcmask 1043459  }
  0x7b   : > { %v900_v24 = vrot.slane %v899_v17, 2  ;;  %v907_v25 = vrot.slane %v906_v19, 2  ;;  %v914_v44 = vrot.slane %v913_v18, 2  ;;  %v948_v45 = vadd.f32 %v947_v20, %v946_v15 }
  0x7c   : > { %vm975_vm5 = vcmask 1044484   ;;  %v921_v47 = vrot.slane %v920_v21, 2  ;;  %v928_v48 = vrot.slane %v927_v23, 2  ;;  %v935_v49 = vrot.slane %v934_v43, 2 }
  0x7d   : > { %v942_v51 = vrot.slane %v941_v22, 2  ;;  %v901_v52 = vadd.f32 %v900_v24, %v899_v17  ;;  %v908_v53 = vadd.f32 %v907_v25, %v906_v19  ;;  %v915_v54 = vadd.f32 %v914_v44, %v913_v18 }
  0x7e   : > { %v949_v55 = vrot.slane %v948_v45, 2  ;;  %v922_v56 = vadd.f32 %v921_v47, %v920_v21  ;;  %v929_v61 = vadd.f32 %v928_v48, %v927_v23  ;;  %v936_v62 = vadd.f32 %v935_v49, %v934_v43 }
  0x7f   : > { %v943_v63 = vadd.f32 %v942_v51, %v941_v22  ;;  %v902_v0 = vrot.slane %v901_v52, 1  ;;  %v909_v1 = vrot.slane %v908_v53, 1  ;;  %v916_v2 = vrot.slane %v915_v54, 1 }
  0x80   : > { %v950_v3 = vadd.f32 %v949_v55, %v948_v45  ;;  %v882_v4 = vadd.f32 %v881_v31, %v5001_v6  ;;  %v923_v5 = vrot.slane %v922_v56, 1  ;;  %v930_v8 = vrot.slane %v929_v61, 1 }
  0x81   : > { %v937_v9 = vrot.slane %v936_v62, 1  ;;  %v889_v10 = vadd.f32 %v888_v41, %v5003_v7  ;;  %v896_v12 = vadd.f32 %v895_v59, %v5005_v11  ;;  %v944_v26 = vrot.slane %v943_v63, 1 }
  0x82   : > { %v951_v27 = vrot.slane %v950_v3, 1  ;;  %v903_v28 = vadd.f32 %v902_v0, %v901_v52  ;;  %v910_v29 = vadd.f32 %v909_v1, %v908_v53  ;;  %vm977_vm6 = vcmask 1045509  }
  0x83   : > { %vm979_vm7 = vcmask 1046534   ;;  %v917_v46 = vadd.f32 %v916_v2, %v915_v54  ;;  %v924_v57 = vadd.f32 %v923_v5, %v922_v56  ;;  %v970_v60 = vsel %vm969_vm2, %v5025_v58, %v5019_v30  ;;  %v839_v58 = vld [vmem:[#allocation2] sm:$0xff] }
  0x84   : > { %v983_v6 = vsel %vm969_vm2, %v5027_v32, %v5023_v50  ;;  %v931_v31 = vadd.f32 %v930_v8, %v929_v61  ;;  %v938_v7 = vadd.f32 %v937_v9, %v936_v62  ;;  %v972_v11 = vsel %vm971_vm3, %v5030_v33, %v970_v60  ;;  %v840_v50 = vld [vmem:[#allocation2 + $0x8] sm:$0xff] }
  0x85   : > { %v984_v41 = vsel %vm971_vm3, %v882_v4, %v983_v6  ;;  %v945_v59 = vadd.f32 %v944_v26, %v943_v63  ;;  %v952_v34 = vadd.f32 %v951_v27, %v950_v3  ;;  %v974_v35 = vsel %vm973_vm4, %v889_v10, %v972_v11 }
  0x86   : > { %v985_v36 = vsel %vm973_vm4, %v896_v12, %v984_v41  ;;  %v976_v37 = vsel %vm975_vm5, %v903_v28, %v974_v35  ;;  %vm981_vm8 = vcmask 1047559  }
  0x87   : > { %v986_v30 = vsel %vm975_vm5, %v910_v29, %v985_v36  ;;  %v978_v32 = vsel %vm977_vm6, %v917_v46, %v976_v37 }
  0x88   : > { %v987_v38 = vsel %vm977_vm6, %v924_v57, %v986_v30  ;;  %v980_v33 = vsel %vm979_vm7, %v931_v31, %v978_v32 }
  0x89   : > { %v988_v39 = vsel %vm979_vm7, %v938_v7, %v987_v38  ;;  %v982_v13 = vsel %vm981_vm8, %v945_v59, %v980_v33  ;;  %999 = sbr.rel (%p3526_p6) target bundleno = 1421 (0x58d), region = 146 }
  0x8a   : > { %v989_v15 = vsel %vm981_vm8, %v952_v34, %v988_v39  ;;  %v992_v40 = vadd.f32 %v982_v13, %v839_v58 }
  0x8b   : > { %v993_v14 = vadd.f32 %v989_v15, %v840_v50 }
  0x8c   : > { %994 = vst [vmem:[#allocation2] sm:$0xff] %v992_v40 }
  0x8d   : > { %995 = vst [vmem:[#allocation2 + $0x8] sm:$0xff] %v993_v14 }
  0x8e   : > { %v1033_v16 = vld [vmem:[%s6633_s2 + $0xf8] sm:$0xff]  ;;  %v1032_v17 = vld [vmem:[%s6633_s2 + $0xf0] sm:$0xff]  ;;  %v1031_v23 = vld [vmem:[%s6633_s2 + $0xe8] sm:$0xff]  ;;  %vm1906_vm9 = vcmask 982016   ;;  %vm4645_vm10 = vmmov 0   ;;  %vm3279_vm11 = vcmask 523264  }
  0x8f   : > { %v1017_v42 = vld [vmem:[%s6633_s2 + $0x78] sm:$0xff]  ;;  %v5075_v19 = vand.u32 4294901760, %v1033_v16  ;;  %v5079_v20 = vand.u32 4294901760, %v1032_v17  ;;  %v1016_v21 = vld [vmem:[%s6633_s2 + $0x70] sm:$0xff]  ;;  %v1015_v43 = vld [vmem:[%s6633_s2 + $0x68] sm:$0xff]  ;;  %v5092_v24 = vand.u32 4294901760, %v1031_v23 }
  0x90   : > { %v5077_v18 = vand.u32 4294901760, %v1017_v42  ;;  %v5090_v22 = vand.u32 4294901760, %v1016_v21  ;;  %v5094_v25 = vand.u32 4294901760, %v1015_v43  ;;  %v1030_v44 = vld [vmem:[%s6633_s2 + $0xe0] sm:$0xff]  ;;  %v1029_v47 = vld [vmem:[%s6633_s2 + $0xd8] sm:$0xff]  ;;  %v5123_v54 = vld [vmem:[%s6633_s2 + $0xd0] sm:$0xff] }
  0x91   : > { %v1014_v45 = vld [vmem:[%s6633_s2 + $0x60] sm:$0xff]  ;;  %3544 = vmatprep.subr.mxu0 %v5075_v19  ;;  %v5106_v48 = vand.u32 4294901760, %v1030_v44  ;;  %v5110_v51 = vand.u32 4294901760, %v1029_v47  ;;  %v5113_v52 = vsub.f32 %v1033_v16, %v5075_v19  ;;  %v5118_v53 = vld [vmem:[%s6633_s2 + $0x58] sm:$0xff]  ;;  %v5128_v55 = vld [vmem:[%s6633_s2 + $0x50] sm:$0xff]  ;;  %v5138_v62 = vand.u32 4294901760, %v5123_v54 }
  0x92   : > { %v5108_v49 = vand.u32 4294901760, %v1014_v45  ;;  %3545 = vmatpush3.msra.mxu0 %v5077_v18  ;;  %v5132_v56 = vand.u32 4294901760, %v5118_v53  ;;  %v5135_v61 = vsub.f32 %v1017_v42, %v5077_v18  ;;  %v5141_v63 = vsub.f32 %v1032_v17, %v5079_v20  ;;  %v5146_v0 = vld [vmem:[%s6633_s2 + $0xc8] sm:$0xff]  ;;  %v5156_v2 = vld [vmem:[%s6633_s2 + $0xc0] sm:$0xff]  ;;  %v5208_v11 = vld [vmem:[%s6633_s2 + $0xb8] sm:$0xff] }
  0x93   : > { %6732 = vst [vmem:[#allocation12_spill] sm:$0xff] %v5138_v62  ;;  %v5151_v1 = vld [vmem:[%s6633_s2 + $0x48] sm:$0xff]  ;;  %3546 = vmatprep.subr.mxu0 %v5079_v20  ;;  %v6661_v3 = vand.u32 4294901760, %v5113_v52  ;;  %v5161_v4 = vand.u32 4294901760, %v5128_v55  ;;  %v5164_v5 = vsub.f32 %v1016_v21, %v5090_v22  ;;  %v5167_v8 = vand.u32 4294901760, %v5146_v0  ;;  %v5181_v27 = vld [vmem:[%s6633_s2 + $0x40] sm:$0xff] }
  0x94   : > { %3547 = vmatpush3.msra.mxu0 %v5090_v22  ;;  %v6660_v9 = vand.u32 4294901760, %v5135_v61  ;;  %v6658_v10 = vand.u32 4294901760, %v5141_v63  ;;  %v5173_v12 = vsub.f32 %v1031_v23, %v5092_v24  ;;  %v5176_v26 = vand.u32 4294901760, %v5151_v1  ;;  %v5221_v36 = vld [vmem:[%s6633_s2 + $0x38] sm:$0xff]  ;;  %v5231_v32 = vld [vmem:[%s6633_s2 + $0xb0] sm:$0xff]  ;;  %v5261_v17 = vld [vmem:[%s6633_s2 + $0xa8] sm:$0xff] }
  0x95   : > { %6733 = vst [vmem:[#allocation13_spill] sm:$0xff] %v5161_v4  ;;  %6734 = vst [vmem:[#allocation14_spill] sm:$0xff] %v5167_v8  ;;  %3548 = vmatprep.subr.mxu0 %v5092_v24  ;;  %v1269_v28 = vsub.f32 %v5113_v52, %v6661_v3  ;;  %v6657_v29 = vand.u32 4294901760, %v5164_v5  ;;  %v5189_v46 = vsub.f32 %v1015_v43, %v5094_v25  ;;  %v5192_v57 = vand.u32 4294901760, %v5156_v2  ;;  %v5246_v15 = vld [vmem:[%s6633_s2 + $0x30] sm:$0xff] }
  0x96   : > { %6735 = vst [vmem:[#allocation15_spill] sm:$0xff] %v5176_v26  ;;  %3549 = vmatpush3.msra.mxu0 %v5094_v25  ;;  %v1157_v60 = vsub.f32 %v5135_v61, %v6660_v9  ;;  %v1276_v6 = vsub.f32 %v5141_v63, %v6658_v10  ;;  %v6655_v31 = vand.u32 4294901760, %v5173_v12  ;;  %v5203_v7 = vsub.f32 %v1030_v44, %v5106_v48  ;;  %v5397_v9 = vld [vmem:[%s6633_s2 + $0x88] sm:$0xff] }
  0x97   : > { %6736 = vst [vmem:[#allocation16_spill] sm:$0xff] %v5192_v57  ;;  %3550 = vmatprep.subr.mxu0 %v5106_v48  ;;  %v1270_v41 = vand.u32 4294901760, %v1269_v28  ;;  %v1164_v59 = vsub.f32 %v5164_v5, %v6657_v29  ;;  %v6653_v34 = vand.u32 4294901760, %v5189_v46  ;;  %v5216_v35 = vand.u32 4294901760, %v5181_v27 }
  0x98   : > { %3551 = vmatpush3.msra.mxu0 %v5108_v49  ;;  %v1158_v37 = vand.u32 4294901760, %v1157_v60  ;;  %v1277_v30 = vand.u32 4294901760, %v1276_v6  ;;  %v1283_v58 = vsub.f32 %v5173_v12, %v6655_v31  ;;  %v6652_v50 = vand.u32 4294901760, %v5203_v7  ;;  %v5370_v31 = vld [vmem:[%s6633_s2 + $0x90] sm:$0xff] }
  0x99   : > { %6737 = vst [vmem:[#allocation17_spill] sm:$0xff] %v5216_v35  ;;  %3552 = vmatprep.subr.mxu0 %v5110_v51  ;;  %3579 = vmatprep.subr.mxu1 %v1270_v41  ;;  %v1165_v38 = vand.u32 4294901760, %v1164_v59  ;;  %v1171_v33 = vsub.f32 %v5189_v46, %v6653_v34  ;;  %v5238_v39 = vsub.f32 %v1014_v45, %v5108_v49  ;;  %v5241_v13 = vand.u32 4294901760, %v5208_v11  ;;  %v5275_v45 = vld [vmem:[%s6633_s2 + $0x28] sm:$0xff]  ;;  %v5354_v34 = vld [vmem:[%s6633_s2 + $0x18] sm:$0xff] }
  0x9a   : > { %3553 = vmatpush3.msra.mxu0 %v5132_v56  ;;  %3580 = vmatpush3.msra.mxu1 %v1158_v37  ;;  %v1284_v40 = vand.u32 4294901760, %v1283_v58  ;;  %v1290_v14 = vsub.f32 %v5203_v7, %v6652_v50  ;;  %v5253_v16 = vsub.f32 %v1029_v47, %v5110_v51  ;;  %v5256_v42 = vand.u32 4294901760, %v5221_v36 }
  0x9b   : > { %6738 = vst [vmem:[#allocation18_spill] sm:$0xff] %v5241_v13  ;;  %3554 = vmatprep.subr.mxu0 %v5138_v62  ;;  %3581 = vmatprep.subr.mxu1 %v1277_v30  ;;  %v1172_v21 = vand.u32 4294901760, %v1171_v33  ;;  %v6650_v23 = vand.u32 4294901760, %v5238_v39  ;;  %v5267_v43 = vsub.f32 %v5118_v53, %v5132_v56  ;;  %v5270_v44 = vand.u32 4294901760, %v5231_v32 }
  0x9c   : > { %6739 = vst [vmem:[#allocation19_spill] sm:$0xff] %v5256_v42  ;;  %3555 = vmatpush3.msra.mxu0 %v5161_v4  ;;  %3582 = vmatpush3.msra.mxu1 %v1165_v38  ;;  %v1291_v47 = vand.u32 4294901760, %v1290_v14  ;;  %v6648_v28 = vand.u32 4294901760, %v5253_v16  ;;  %v5281_v60 = vsub.f32 %v5123_v54, %v5138_v62  ;;  %v5284_v53 = vand.u32 4294901760, %v5246_v15  ;;  %v5301_v54 = vld [vmem:[%s6633_s2 + $0xa0] sm:$0xff] }
  0x9d   : > { %6740 = vst [vmem:[#allocation20_spill] sm:$0xff] %v5270_v44  ;;  %3556 = vmatprep.subr.mxu0 %v5167_v8  ;;  %3583 = vmatprep.subr.mxu1 %v1284_v40  ;;  %v1178_v6 = vsub.f32 %v5238_v39, %v6650_v23  ;;  %v6649_v41 = vand.u32 4294901760, %v5267_v43  ;;  %v5293_v59 = vsub.f32 %v5128_v55, %v5161_v4  ;;  %v5296_v37 = vand.u32 4294901760, %v5261_v17 }
  0x9e   : > { %6741 = vst [vmem:[#allocation21_spill] sm:$0xff] %v5284_v53  ;;  %3557 = vmatpush3.msra.mxu0 %v5176_v26  ;;  %3584 = vmatpush3.msra.mxu1 %v1172_v21  ;;  %v1297_v30 = vsub.f32 %v5253_v16, %v6648_v28  ;;  %v6651_v58 = vand.u32 4294901760, %v5281_v60  ;;  %v5310_v55 = vsub.f32 %v5146_v0, %v5167_v8  ;;  %v5313_v38 = vand.u32 4294901760, %v5275_v45  ;;  %v5327_v0 = vld [vmem:[%s6633_s2 + $0x20] sm:$0xff] }
  0x9f   : > { %6742 = vst [vmem:[#allocation22_spill] sm:$0xff] %v5296_v37  ;;  %3558 = vmatprep.subr.mxu0 %v5192_v57  ;;  %3585 = vmatprep.subr.mxu1 %v1291_v47  ;;  %v1179_v33 = vand.u32 4294901760, %v1178_v6  ;;  %v1185_v40 = vsub.f32 %v5267_v43, %v6649_v41  ;;  %v6654_v14 = vand.u32 4294901760, %v5293_v59  ;;  %v5322_v21 = vsub.f32 %v5151_v1, %v5176_v26  ;;  %v5340_v1 = vld [vmem:[%s6633_s2 + $0x98] sm:$0xff] }
  0xa0   : > { %6743 = vst [vmem:[#allocation23_spill] sm:$0xff] %v5313_v38  ;;  %3559 = vmatpush3.msra.mxu0 %v5216_v35  ;;  %v1298_v28 = vand.u32 4294901760, %v1297_v30  ;;  %v1304_v47 = vsub.f32 %v5281_v60, %v6651_v58  ;;  %v6656_v6 = vand.u32 4294901760, %v5310_v55  ;;  %v5335_v41 = vand.u32 4294901760, %v5301_v54 }
  0xa1   : > { %3586 = vmatpush3.msra.mxu1 %v1179_v33  ;;  %3560 = vmatprep.subr.mxu0 %v5241_v13  ;;  %v1186_v23 = vand.u32 4294901760, %v1185_v40  ;;  %v1192_v30 = vsub.f32 %v5293_v59, %v6654_v14  ;;  %v6659_v58 = vand.u32 4294901760, %v5322_v21  ;;  %v5349_v50 = vsub.f32 %v5156_v2, %v5192_v57 }
  0xa2   : > { %6744 = vst [vmem:[#allocation24_spill] sm:$0xff] %v5335_v41  ;;  %3587 = vmatprep.subr.mxu1 %v1298_v28  ;;  %3561 = vmatpush3.msra.mxu0 %v5256_v42  ;;  %v1305_v33 = vand.u32 4294901760, %v1304_v47  ;;  %v1311_v40 = vsub.f32 %v5310_v55, %v6656_v6  ;;  %v5361_v14 = vand.u32 4294901760, %v5327_v0  ;;  %v5365_v2 = vsub.f32 %v5181_v27, %v5216_v35  ;;  %v5383_v27 = vld [vmem:[%s6633_s2 + $0x10] sm:$0xff] }
  0xa3   : > { %3588 = vmatpush3.msra.mxu1 %v1186_v23  ;;  %3562 = vmatprep.subr.mxu0 %v5270_v44  ;;  %v1193_v28 = vand.u32 4294901760, %v1192_v30  ;;  %v1199_v47 = vsub.f32 %v5322_v21, %v6659_v58  ;;  %v6664_v6 = vand.u32 4294901760, %v5349_v50  ;;  %v5378_v29 = vand.u32 4294901760, %v5340_v1 }
  0xa4   : > { %6745 = vst [vmem:[#allocation25_spill] sm:$0xff] %v5361_v14  ;;  %3589 = vmatprep.subr.mxu1 %v1305_v33  ;;  %3563 = vmatpush3.msra.mxu0 %v5284_v53  ;;  %v1312_v23 = vand.u32 4294901760, %v1311_v40  ;;  %v6665_v30 = vand.u32 4294901760, %v5365_v2  ;;  %v5389_v10 = vsub.f32 %v5208_v11, %v5241_v13  ;;  %v5392_v58 = vand.u32 4294901760, %v5354_v34 }
  0xa5   : > { %3590 = vmatpush3.msra.mxu1 %v1193_v28  ;;  %3564 = vmatprep.subr.mxu0 %v5296_v37  ;;  %v1200_v33 = vand.u32 4294901760, %v1199_v47  ;;  %v1318_v40 = vsub.f32 %v5349_v50, %v6664_v6  ;;  %v5405_v11 = vsub.f32 %v5221_v36, %v5256_v42  ;;  %v5408_v3 = vand.u32 4294901760, %v5370_v31  ;;  %v5425_v36 = vld [vmem:[%s6633_s2 + $0x8] sm:$0xff] }
  0xa6   : > { %6746 = vst [vmem:[#allocation26_spill] sm:$0xff] %v5392_v58  ;;  %3591 = vmatprep.subr.mxu1 %v1312_v23  ;;  %3565 = vmatpush3.msra.mxu0 %v5313_v38  ;;  %v1206_v28 = vsub.f32 %v5365_v2, %v6665_v30  ;;  %v5417_v13 = vsub.f32 %v5231_v32, %v5270_v44  ;;  %v5420_v6 = vand.u32 4294901760, %v5383_v27  ;;  %v5434_v32 = vand.u32 4294901760, %v5397_v9  ;;  %v5439_v44 = vld [vmem:[%s6633_s2 + $0x80] sm:$0xff] }
  0xa7   : > { %6747 = vst [vmem:[#allocation27_spill] sm:$0xff] %v5408_v3  ;;  %3592 = vmatpush3.msra.mxu1 %v1200_v33  ;;  %3566 = vmatprep.subr.mxu0 %v5335_v41  ;;  %v1319_v23 = vand.u32 4294901760, %v1318_v40  ;;  %v5431_v47 = vsub.f32 %v5246_v15, %v5284_v53  ;;  %v6750_v42 = vand.u32 4294901760, %v5389_v10  ;;  %v5448_v15 = vsub.f32 %v5261_v17, %v5296_v37  ;;  %v5465_v17 = vld [vmem:[%s6633_s2] sm:$0xff] }
  0xa8   : > { %6748 = vst [vmem:[#allocation28_spill] sm:$0xff] %v5420_v6  ;;  %6749 = vst [vmem:[#allocation29_spill] sm:$0xff] %v5434_v32  ;;  %3567 = vmatpush3.msra.mxu0 %v5361_v14  ;;  %v1207_v33 = vand.u32 4294901760, %v1206_v28  ;;  %v6684_v30 = vand.u32 4294901760, %v5417_v13  ;;  %v6752_v53 = vand.u32 4294901760, %v5405_v11  ;;  %v5456_v28 = vand.u32 4294901760, %v5425_v36 }
  0xa9   : > { %v1325_v40 = vsub.f32 %v5389_v10, %v6750_v42  ;;  %6751 = vst [vmem:[#allocation30_spill] sm:$0xff] %v5448_v15  ;;  %3593 = vmatprep.subr.mxu1 %v1319_v23  ;;  %3568 = vmatprep.subr.mxu0 %v5378_v29  ;;  %v5460_v42 = vsub.f32 %v5275_v45, %v5313_v38  ;;  %v5473_v37 = vand.u32 4294901760, %v5439_v44  ;;  %v1001_v45 = vld [vmem:[#allocation2 + $0x8] sm:$0xff]  ;;  %v6753_v26 = vand.u32 4294901760, %v5431_v47 }
  0xaa   : > { %v1213_v35 = vsub.f32 %v5405_v11, %v6752_v53  ;;  %3594 = vmatpush3.msra.mxu1 %v1207_v33  ;;  %3569 = vmatpush3.msra.mxu0 %v5392_v58  ;;  %v1332_v53 = vsub.f32 %v5417_v13, %v6684_v30  ;;  %v5482_v8 = vsub.f32 %v5301_v54, %v5335_v41  ;;  %v1000_v30 = vld [vmem:[#allocation2] sm:$0xff]  ;;  %v6754_v4 = vand.u32 4294901760, %v5448_v15 }
  0xab   : > { %v1326_v23 = vand.u32 4294901760, %v1325_v40  ;;  %3570 = vmatprep.subr.mxu0 %v5408_v3  ;;  %v1220_v33 = vsub.f32 %v5431_v47, %v6753_v26  ;;  %v5489_v62 = vand.u32 4294901760, %v5465_v17  ;;  %v5493_v26 = vsub.f32 %v5327_v0, %v5361_v14 }
  0xac   : > { %v1214_v38 = vand.u32 4294901760, %v1213_v35  ;;  %v1333_v57 = vand.u32 4294901760, %v1332_v53  ;;  %3571 = vmatpush3.msra.mxu0 %v5420_v6  ;;  %v1339_v35 = vsub.f32 %v5448_v15, %v6754_v4  ;;  %v6755_v54 = vand.u32 4294901760, %v5460_v42 }
  0xad   : > { %3595 = vmatprep.subr.mxu1 %v1326_v23  ;;  %v1221_v40 = vand.u32 4294901760, %v1220_v33  ;;  %3572 = vmatprep.subr.mxu0 %v5434_v32  ;;  %v6693_v53 = vand.u32 4294901760, %v5482_v8  ;;  %v5500_v41 = vand.u32 4294901760, %v1001_v45  ;;  %v6694_v15 = vand.u32 4294901760, %v5493_v26 }
  0xae   : > { %3596 = vmatpush3.msra.mxu1 %v1214_v38  ;;  %v1227_v23 = vsub.f32 %v5460_v42, %v6755_v54  ;;  %v1340_v4 = vand.u32 4294901760, %v1339_v35  ;;  %3573 = vmatpush3.msra.mxu0 %v5456_v28  ;;  %v5506_v38 = vsub.f32 %v5340_v1, %v5378_v29  ;;  %v5508_v0 = vand.u32 4294901760, %v1000_v30 }
  0xaf   : > { %6756 = vst [vmem:[#allocation31_spill] sm:$0xff] %v5500_v41  ;;  %3597 = vmatprep.subr.mxu1 %v1333_v57  ;;  %3574 = vmatprep.subr.mxu0 %v5473_v37  ;;  %v1346_v54 = vsub.f32 %v5482_v8, %v6693_v53  ;;  %v5515_v57 = vsub.f32 %v1001_v45, %v5500_v41 }
  0xb0   : > { %6757 = vst [vmem:[#allocation32_spill] sm:$0xff] %v5508_v0  ;;  %3598 = vmatpush3.msra.mxu1 %v1221_v40  ;;  %v1228_v33 = vand.u32 4294901760, %v1227_v23  ;;  %v5519_v35 = vsub.f32 %v5354_v34, %v5392_v58  ;;  %3575 = vmatpush3.msra.mxu0 %v5489_v62  ;;  %v1234_v1 = vsub.f32 %v5493_v26, %v6694_v15 }
  0xb1   : > { %3599 = vmatprep.subr.mxu1 %v1340_v4  ;;  %v5527_v23 = vsub.f32 %v1000_v30, %v5508_v0  ;;  %v5531_v45 = vsub.f32 %v5370_v31, %v5408_v3  ;;  %v1347_v53 = vand.u32 4294901760, %v1346_v54  ;;  %v6699_v34 = vand.u32 4294901760, %v5515_v57  ;;  %3614 = vmatprep.subr.mxu0 %v5113_v52 }
  0xb2   : > { %3600 = vmatpush3.msra.mxu1 %v1228_v33  ;;  %v6702_v4 = vand.u32 4294901760, %v5519_v35  ;;  %v5538_v15 = vsub.f32 %v5383_v27, %v5420_v6  ;;  %v1235_v40 = vand.u32 4294901760, %v1234_v1  ;;  %v6758_v30 = vand.u32 4294901760, %v5506_v38  ;;  %1378 = vmatprep.mubr.f32.mxu1 %v5500_v41 }
  0xb3   : > { %3601 = vmatprep.subr.mxu1 %v1347_v53  ;;  %v1140_v54 = vsub.f32 %v5515_v57, %v6699_v34  ;;  %v6759_v33 = vand.u32 4294901760, %v5527_v23  ;;  %v6760_v41 = vand.u32 4294901760, %v5531_v45  ;;  %v5565_v6 = vsub.f32 %v5425_v36, %v5456_v28 }
  0xb4   : > { %v1353_v58 = vsub.f32 %v5506_v38, %v6758_v30  ;;  %v1241_v27 = vsub.f32 %v5519_v35, %v6702_v4  ;;  %v5555_v30 = vsub.f32 %v5397_v9, %v5434_v32  ;;  %3602 = vmatpush3.msra.mxu1 %v1235_v40  ;;  %v6762_v3 = vand.u32 4294901760, %v5538_v15 }
  0xb5   : > { %v1146_v53 = vsub.f32 %v5527_v23, %v6759_v33  ;;  %v1360_v34 = vsub.f32 %v5531_v45, %v6760_v41  ;;  %6761 = vst [vmem:[#allocation33_spill] sm:$0xff] %v5565_v6  ;;  %v1141_v4 = vand.u32 4294901760, %v1140_v54  ;;  %v6709_v33 = vand.u32 4294901760, %v5565_v6 }
  0xb6   : > { %v1354_v31 = vand.u32 4294901760, %v1353_v58  ;;  %v1242_v1 = vand.u32 4294901760, %v1241_v27  ;;  %v1248_v9 = vsub.f32 %v5538_v15, %v6762_v3  ;;  %v6710_v58 = vand.u32 4294901760, %v5555_v30 }
  0xb7   : > { %v1147_v40 = vand.u32 4294901760, %v1146_v53  ;;  %v1361_v32 = vand.u32 4294901760, %v1360_v34  ;;  %v5574_v41 = vsub.f32 %v5439_v44, %v5473_v37  ;;  %1142 = vmatprep.mubr.f32.mxu0 %v1141_v4  ;;  %v5581_v3 = vsub.f32 %v5465_v17, %v5489_v62 }
  0xb8   : > { %3603 = vmatprep.subr.mxu1 %v1354_v31  ;;  %v1249_v36 = vand.u32 4294901760, %v1248_v9  ;;  %v1367_v54 = vsub.f32 %v5555_v30, %v6710_v58  ;;  %v1255_v34 = vsub.f32 %v5565_v6, %v6709_v33  ;;  %v6765_v9 = vld [vmem:[#allocation12_spill] sm:$0xff]  ;;  %v6779_v58 = vand.u32 4294901760, %v5113_v52 }
  0xb9   : > { %6763 = vst [vmem:[#allocation34_spill] sm:$0xff] %v5574_v41  ;;  %3604 = vmatpush3.msra.mxu1 %v1242_v1  ;;  %6764 = vst [vmem:[#allocation35_spill] sm:$0xff] %v5581_v3  ;;  %1148 = vmatmul.mubr.f32.vlgmr.msra.gmra.mxu0 %v1147_v40  ;;  %v6708_v44 = vand.u32 4294901760, %v5574_v41  ;;  %v6707_v31 = vand.u32 4294901760, %v5581_v3  ;;  %v6766_v40 = vld [vmem:[#allocation13_spill] sm:$0xff]  ;;  %v6778_v33 = vld [vmem:[#allocation24_spill] sm:$0xff] }
  0xba   : > { %3605 = vmatprep.subr.mxu1 %v1361_v32  ;;  %3615 = vmatpush3.msra.mxu0 %v5135_v61  ;;  %v1368_v4 = vand.u32 4294901760, %v1367_v54  ;;  %v1256_v27 = vand.u32 4294901760, %v1255_v34  ;;  %v6768_v54 = vld [vmem:[#allocation14_spill] sm:$0xff]  ;;  %v6769_v34 = vld [vmem:[#allocation15_spill] sm:$0xff]  ;;  %v6787_v52 = vand.u32 4294901760, %v5173_v12 }
  0xbb   : > { %3606 = vmatpush3.msra.mxu1 %v1249_v36  ;;  %3616 = vmatprep.subr.mxu0 %v5141_v63  ;;  %v1374_v17 = vsub.f32 %v5574_v41, %v6708_v44  ;;  %v1262_v32 = vsub.f32 %v5581_v3, %v6707_v31  ;;  %v6767_v36 = vld [vmem:[#allocation30_spill] sm:$0xff]  ;;  %v6777_v44 = vld [vmem:[#allocation23_spill] sm:$0xff] }
  0xbc   : > { %1515 = vmatprep.mubr.f32.mxu0 %v5515_v57  ;;  %3617 = vmatpush3.msra.mxu0 %v5164_v5  ;;  %v6776_v31 = vld [vmem:[#allocation22_spill] sm:$0xff] }
  0xbd   : > { %3607 = vmatprep.subr.mxu1 %v1368_v4  ;;  %3618 = vmatprep.subr.mxu0 %v5173_v12  ;;  %v1375_v1 = vand.u32 4294901760, %v1374_v17  ;;  %v1263_v53 = vand.u32 4294901760, %v1262_v32  ;;  %v6770_v4 = vld [vmem:[#allocation16_spill] sm:$0xff]  ;;  %v6772_v17 = vld [vmem:[#allocation18_spill] sm:$0xff]  ;;  %v6773_v32 = vld [vmem:[#allocation19_spill] sm:$0xff]  ;;  %v6792_v12 = vand.u32 4294901760, %v5527_v23 }
  0xbe   : > { %3608 = vmatpush3.msra.mxu1 %v1256_v27  ;;  %3619 = vmatpush3.msra.mxu0 %v5189_v46  ;;  %v6771_v27 = vld [vmem:[#allocation17_spill] sm:$0xff] }
  0xbf   : > { %3609 = vmatprep.subr.mxu1 %v1375_v1  ;;  %3620 = vmatprep.subr.mxu0 %v5203_v7  ;;  %v6774_v1 = vld [vmem:[#allocation20_spill] sm:$0xff] }
  0xc0   : > { %3610 = vmatpush3.msra.mxu1 %v1263_v53  ;;  %3621 = vmatpush3.msra.mxu0 %v5238_v39  ;;  %v6775_v53 = vld [vmem:[#allocation21_spill] sm:$0xff] }
  0xc1   : > { %1380 = vmatmul.mubr.f32.vlgmr.msra.gmra.mxu1 %v5508_v0  ;;  %3622 = vmatprep.subr.mxu0 %v5253_v16  ;;  %v6780_v0 = vld [vmem:[#allocation26_spill] sm:$0xff] }
  0xc2   : > { %3649 = vmatprep.subr.mxu1 %v5075_v19  ;;  %3623 = vmatpush3.msra.mxu0 %v5267_v43 }
  0xc3   : > { %3650 = vmatpush3.msra.mxu1 %v5077_v18  ;;  %3624 = vmatprep.subr.mxu0 %v5281_v60 }
  0xc4   : > { %3651 = vmatprep.subr.mxu1 %v5079_v20  ;;  %3625 = vmatpush3.msra.mxu0 %v5293_v59 }
  0xc5   : > { %3652 = vmatpush3.msra.mxu1 %v5090_v22  ;;  %3626 = vmatprep.subr.mxu0 %v5310_v55 }
  0xc6   : > { %3653 = vmatprep.subr.mxu1 %v5092_v24  ;;  %3627 = vmatpush3.msra.mxu0 %v5322_v21 }
  0xc7   : > { %3654 = vmatpush3.msra.mxu1 %v5094_v25  ;;  %3628 = vmatprep.subr.mxu0 %v5349_v50 }
  0xc8   : > { %3655 = vmatprep.subr.mxu1 %v5106_v48  ;;  %3629 = vmatpush3.msra.mxu0 %v5365_v2 }
  0xc9   : > { %3656 = vmatpush3.msra.mxu1 %v5108_v49  ;;  %3630 = vmatprep.subr.mxu0 %v5389_v10 }
  0xca   : > { %3657 = vmatprep.subr.mxu1 %v5110_v51  ;;  %3631 = vmatpush3.msra.mxu0 %v5405_v11 }
  0xcb   : > { %3658 = vmatpush3.msra.mxu1 %v5132_v56  ;;  %3632 = vmatprep.subr.mxu0 %v5417_v13 }
  0xcc   : > { %3659 = vmatprep.subr.mxu1 %v6765_v9  ;;  %3633 = vmatpush3.msra.mxu0 %v5431_v47 }
  0xcd   : > { %3660 = vmatpush3.msra.mxu1 %v6766_v40  ;;  %3634 = vmatprep.subr.mxu0 %v6767_v36 }
  0xce   : > { %3661 = vmatprep.subr.mxu1 %v6768_v54  ;;  %3635 = vmatpush3.msra.mxu0 %v5460_v42 }
  0xcf   : > { %3662 = vmatpush3.msra.mxu1 %v6769_v34  ;;  %3636 = vmatprep.subr.mxu0 %v5482_v8 }
  0xd0   : > { %3663 = vmatprep.subr.mxu1 %v6770_v4  ;;  %3637 = vmatpush3.msra.mxu0 %v5493_v26 }
  0xd1   : > { %3664 = vmatpush3.msra.mxu1 %v6771_v27  ;;  %3638 = vmatprep.subr.mxu0 %v5506_v38 }
  0xd2   : > { %3665 = vmatprep.subr.mxu1 %v6772_v17  ;;  %3639 = vmatpush3.msra.mxu0 %v5519_v35 }
  0xd3   : > { %3666 = vmatpush3.msra.mxu1 %v6773_v32  ;;  %3640 = vmatprep.subr.mxu0 %v5531_v45 }
  0xd4   : > { %3667 = vmatprep.subr.mxu1 %v6774_v1  ;;  %3641 = vmatpush3.msra.mxu0 %v5538_v15 }
  0xd5   : > { %3668 = vmatpush3.msra.mxu1 %v6775_v53  ;;  %3642 = vmatprep.subr.mxu0 %v5555_v30 }
  0xd6   : > { %3669 = vmatprep.subr.mxu1 %v6776_v31  ;;  %3643 = vmatpush3.msra.mxu0 %v5565_v6  ;;  %v6781_v6 = vand.u32 4294901760, %v5135_v61  ;;  %v6788_v61 = vand.u32 4294901760, %v5189_v46  ;;  %v6794_v46 = vand.u32 4294901760, %v5267_v43  ;;  %v6812_v43 = vand.u32 4294901760, %v5538_v15 }
  0xd7   : > { %3670 = vmatpush3.msra.mxu1 %v6777_v44  ;;  %3644 = vmatprep.subr.mxu0 %v5574_v41  ;;  %v6782_v44 = vld [vmem:[#allocation27_spill] sm:$0xff]  ;;  %v6786_v41 = vld [vmem:[#allocation29_spill] sm:$0xff] }
  0xd8   : > { %3671 = vmatprep.subr.mxu1 %v6778_v33  ;;  %3645 = vmatpush3.msra.mxu0 %v5581_v3  ;;  %v6783_v33 = vand.u32 4294901760, %v5141_v63  ;;  %v6784_v3 = vld [vmem:[#allocation28_spill] sm:$0xff]  ;;  %v6789_v63 = vand.u32 4294901760, %v5203_v7  ;;  %v6795_v7 = vand.u32 4294901760, %v5281_v60  ;;  %v6813_v60 = vand.u32 4294901760, %v5555_v30 }
  0xd9   : > { %3672 = vmatpush3.msra.mxu1 %v5361_v14  ;;  %1518 = vmatmul.mubr.f32.vlgmr.msra.gmra.mxu0 %v5527_v23  ;;  %v6785_v14 = vand.u32 4294901760, %v5164_v5  ;;  %v6790_v5 = vand.u32 4294901760, %v5515_v57  ;;  %v6824_v57 = vld [vmem:[#allocation32_spill] sm:$0xff] }
  0xda   : > { %3673 = vmatprep.subr.mxu1 %v5378_v29  ;;  %3684 = vmatprep.subr.mxu0 %v6779_v58  ;;  %v3527_v58 = vld [vmem:[%s6634_s3] ss:$0 sm:$0xff] }
  0xdb   : > { %3674 = vmatpush3.msra.mxu1 %v6780_v0  ;;  %3685 = vmatpush3.msra.mxu0 %v6781_v6  ;;  %v6793_v6 = vand.u32 4294901760, %v5253_v16  ;;  %v6797_v16 = vand.u32 4294901760, %v5310_v55 }
  0xdc   : > { %3675 = vmatprep.subr.mxu1 %v6782_v44  ;;  %3686 = vmatprep.subr.mxu0 %v6783_v33 }
  0xdd   : > { %3676 = vmatpush3.msra.mxu1 %v6784_v3  ;;  %3687 = vmatpush3.msra.mxu0 %v6785_v14  ;;  %v6791_v14 = vand.u32 4294901760, %v5238_v39  ;;  %v6796_v39 = vand.u32 4294901760, %v5293_v59  ;;  %v6814_v59 = vld [vmem:[#allocation33_spill] sm:$0xff] }
  0xde   : > { %3677 = vmatprep.subr.mxu1 %v6786_v41  ;;  %3688 = vmatprep.subr.mxu0 %v6787_v52  ;;  %v6815_v55 = vand.u32 4294901760, %v6814_v59 }
  0xdf   : > { %3678 = vmatpush3.msra.mxu1 %v5456_v28  ;;  %3689 = vmatpush3.msra.mxu0 %v6788_v61 }
  0xe0   : > { %3679 = vmatprep.subr.mxu1 %v5473_v37  ;;  %3690 = vmatprep.subr.mxu0 %v6789_v63 }
  0xe1   : > { %3680 = vmatpush3.msra.mxu1 %v5489_v62  ;;  %1622 = vmatprep.mubr.f32.mxu1 %v6790_v5 }
  0xe2   : > { %3691 = vmatpush3.msra.mxu0 %v6791_v14  ;;  %1626 = vmatmul.mubr.f32.vlgmr.msra.gmra.mxu1 %v6792_v12 }
  0xe3   : > { %3692 = vmatprep.subr.mxu0 %v6793_v6  ;;  %3719 = vmatprep.subr.mxu1 %v5075_v19  ;;  %v6798_v19 = vand.u32 4294901760, %v5322_v21  ;;  %v6816_v21 = vld [vmem:[#allocation23_spill] sm:$0xff] }
  0xe4   : > { %3693 = vmatpush3.msra.mxu0 %v6794_v46  ;;  %3720 = vmatpush3.msra.mxu1 %v5077_v18  ;;  %v6799_v18 = vand.u32 4294901760, %v5349_v50  ;;  %v6809_v50 = vand.u32 4294901760, %v5506_v38  ;;  %v6823_v38 = vld [vmem:[#allocation25_spill] sm:$0xff] }
  0xe5   : > { %3694 = vmatprep.subr.mxu0 %v6795_v7  ;;  %3721 = vmatprep.subr.mxu1 %v5079_v20  ;;  %v6800_v20 = vand.u32 4294901760, %v5365_v2  ;;  %v6817_v2 = vld [vmem:[#allocation34_spill] sm:$0xff] }
  0xe6   : > { %3695 = vmatpush3.msra.mxu0 %v6796_v39  ;;  %3722 = vmatpush3.msra.mxu1 %v5090_v22  ;;  %v6801_v22 = vand.u32 4294901760, %v5389_v10  ;;  %v6808_v10 = vand.u32 4294901760, %v5493_v26  ;;  %v6822_v26 = vld [vmem:[#allocation31_spill] sm:$0xff] }
  0xe7   : > { %3696 = vmatprep.subr.mxu0 %v6797_v16  ;;  %3723 = vmatprep.subr.mxu1 %v5092_v24  ;;  %v6802_v24 = vand.u32 4294901760, %v5405_v11  ;;  %v6818_v11 = vand.u32 4294901760, %v6817_v2  ;;  %v1989_v39 = vld [vmem:[%s6640_s9 + $0x70] sm:$0xff] }
  0xe8   : > { %3697 = vmatpush3.msra.mxu0 %v6798_v19  ;;  %3724 = vmatpush3.msra.mxu1 %v5094_v25  ;;  %v6803_v25 = vand.u32 4294901760, %v5417_v13  ;;  %v6810_v13 = vand.u32 4294901760, %v5519_v35  ;;  %v5783_v19 = vand.u32 4294901760, %v1989_v39 }
  0xe9   : > { %3698 = vmatprep.subr.mxu0 %v6799_v18  ;;  %3725 = vmatprep.subr.mxu1 %v5106_v48  ;;  %v6804_v48 = vand.u32 4294901760, %v5431_v47  ;;  %v6819_v47 = vld [vmem:[#allocation24_spill] sm:$0xff]  ;;  %v1988_v18 = vld [vmem:[%s6640_s9 + $0x68] sm:$0xff] }
  0xea   : > { %3699 = vmatpush3.msra.mxu0 %v6800_v20  ;;  %3726 = vmatpush3.msra.mxu1 %v5108_v49  ;;  %v6805_v49 = vand.u32 4294901760, %v6767_v36  ;;  %v5789_v20 = vsub.f32 %v1989_v39, %v5783_v19 }
  0xeb   : > { %3700 = vmatprep.subr.mxu0 %v6801_v22  ;;  %3727 = vmatprep.subr.mxu1 %v5110_v51  ;;  %v6806_v51 = vand.u32 4294901760, %v5460_v42  ;;  %v6820_v42 = vld [vmem:[#allocation35_spill] sm:$0xff]  ;;  %v5791_v22 = vand.u32 4294901760, %v1988_v18 }
  0xec   : > { %3701 = vmatpush3.msra.mxu0 %v6802_v24  ;;  %3728 = vmatpush3.msra.mxu1 %v5132_v56  ;;  %v6807_v56 = vand.u32 4294901760, %v5482_v8  ;;  %v6811_v8 = vand.u32 4294901760, %v5531_v45  ;;  %v6821_v15 = vand.u32 4294901760, %v6820_v42  ;;  %v1987_v24 = vld [vmem:[%s6640_s9 + $0x60] sm:$0xff] }
  0xed   : > { %3702 = vmatprep.subr.mxu0 %v6803_v25  ;;  %3729 = vmatprep.subr.mxu1 %v6765_v9  ;;  %v2088_v25 = vand.u32 4294901760, %v5789_v20 }
  0xee   : > { %3703 = vmatpush3.msra.mxu0 %v6804_v48  ;;  %3730 = vmatpush3.msra.mxu1 %v6766_v40  ;;  %v5798_v48 = vsub.f32 %v1988_v18, %v5791_v22 }
  0xef   : > { %3704 = vmatprep.subr.mxu0 %v6805_v49  ;;  %3731 = vmatprep.subr.mxu1 %v6768_v54  ;;  %v5800_v49 = vand.u32 4294901760, %v1987_v24 }
  0xf0   : > { %3705 = vmatpush3.msra.mxu0 %v6806_v51  ;;  %3732 = vmatpush3.msra.mxu1 %v6769_v34  ;;  %v1986_v51 = vld [vmem:[%s6640_s9 + $0x58] sm:$0xff] }
  0xf1   : > { %3706 = vmatprep.subr.mxu0 %v6807_v56  ;;  %3733 = vmatprep.subr.mxu1 %v6770_v4  ;;  %v2089_v56 = vsub.f32 %v5789_v20, %v2088_v25 }
  0xf2   : > { %3707 = vmatpush3.msra.mxu0 %v6808_v10  ;;  %3734 = vmatpush3.msra.mxu1 %v6771_v27  ;;  %v2095_v10 = vand.u32 4294901760, %v5798_v48 }
  0xf3   : > { %3708 = vmatprep.subr.mxu0 %v6809_v50  ;;  %3735 = vmatprep.subr.mxu1 %v6772_v17  ;;  %v5810_v50 = vsub.f32 %v1987_v24, %v5800_v49 }
  0xf4   : > { %3709 = vmatpush3.msra.mxu0 %v6810_v13  ;;  %3736 = vmatpush3.msra.mxu1 %v6773_v32  ;;  %v4644_v13 = vmov 0.0   ;;  %v2096_v59 = vsub.f32 %v5798_v48, %v2095_v10 }
  0xf5   : > { %3710 = vmatprep.subr.mxu0 %v6811_v8  ;;  %3737 = vmatprep.subr.mxu1 %v6774_v1  ;;  %v5813_v8 = vand.u32 4294901760, %v1986_v51 }
  0xf6   : > { %3711 = vmatpush3.msra.mxu0 %v6812_v43  ;;  %3738 = vmatpush3.msra.mxu1 %v6775_v53  ;;  %v1903_v53 = vld [vmem:[%s6632_s1] sm:$0xff]  ;;  %v1985_v43 = vld [vmem:[%s6640_s9 + $0x50] sm:$0xff] }
  0xf7   : > { %3712 = vmatprep.subr.mxu0 %v6813_v60  ;;  %3739 = vmatprep.subr.mxu1 %v6776_v31  ;;  %v1907_v52 = vsel %vm1906_vm9, %v1903_v53, 0.0  ;;  %v2090_v60 = vand.u32 4294901760, %v2089_v56  ;;  %v5827_v2 = vsub.f32 %v1986_v51, %v5813_v8 }
  0xf8   : > { %3713 = vmatpush3.msra.mxu0 %v6815_v55  ;;  %3740 = vmatpush3.msra.mxu1 %v6816_v21  ;;  %v2102_v55 = vand.u32 4294901760, %v5810_v50  ;;  %v5824_v21 = vand.u32 4294901760, %v1985_v43 }
  0xf9   : > { %3714 = vmatprep.subr.mxu0 %v6818_v11  ;;  %3741 = vmatprep.subr.mxu1 %v6819_v47  ;;  %v1984_v11 = vld [vmem:[%s6640_s9 + $0x48] sm:$0xff]  ;;  %v2097_v47 = vand.u32 4294901760, %v2096_v59 }
  0xfa   : > { %3715 = vmatpush3.msra.mxu0 %v6821_v15  ;;  %1792 = vmatprep.mubr.f32.mxu0 %v6822_v26  ;;  %v2103_v42 = vsub.f32 %v5810_v50, %v2102_v55  ;;  %v5837_v15 = vsub.f32 %v1985_v43, %v5824_v21 }
  0xfb   : > { %3742 = vmatpush3.msra.mxu1 %v6823_v38  ;;  %1794 = vmatmul.mubr.f32.vlgmr.msra.gmra.mxu0 %v6824_v57  ;;  %v2109_v38 = vand.u32 4294901760, %v5827_v2 }
  0xfc   : > { %3743 = vmatprep.subr.mxu1 %v5378_v29  ;;  %1896 = vmatprep.mubr.f32.mxu1 %v6822_v26  ;;  %v5840_v26 = vand.u32 4294901760, %v1984_v11 }
  0xfd   : > { %3744 = vmatpush3.msra.mxu1 %v6780_v0  ;;  %3952 = vmatprep.subr.mxu0 %v4644_v13 }
  0xfe   : > { %3745 = vmatprep.subr.mxu1 %v6782_v44  ;;  %3953 = vmatpush3.msra.mxu0 %v5783_v19 }
  0xff   : > { %3746 = vmatpush3.msra.mxu1 %v6784_v3  ;;  %3954 = vmatprep.subr.mxu0 %v4644_v13 }
 0x100   : > { %3747 = vmatprep.subr.mxu1 %v6786_v41  ;;  %3955 = vmatpush3.msra.mxu0 %v5791_v22 }
 0x101   : > { %3748 = vmatpush3.msra.mxu1 %v5456_v28  ;;  %3956 = vmatprep.subr.mxu0 %v4644_v13 }
 0x102   : > { %3749 = vmatprep.subr.mxu1 %v5473_v37  ;;  %3957 = vmatpush3.msra.mxu0 %v5800_v49 }
 0x103   : > { %3750 = vmatpush3.msra.mxu1 %v5489_v62  ;;  %3958 = vmatprep.subr.mxu0 %v4644_v13 }
 0x104   : > { %1898 = vmatmul.mubr.f32.vlgmr.msra.gmra.mxu1 %v6824_v57  ;;  %3985 = vmatprep.subr.mxu1 %v4644_v13  ;;  %v1983_v57 = vld [vmem:[%s6640_s9 + $0x40] sm:$0xff] }
 0x105   : > { %3986 = vmatpush3.msra.mxu1 %v2090_v60  ;;  %3959 = vmatpush3.msra.mxu0 %v5813_v8 }
 0x106   : > { %3987 = vmatprep.subr.mxu1 %v4644_v13  ;;  %3960 = vmatprep.subr.mxu0 %v4644_v13 }
 0x107   : > { %3988 = vmatpush3.msra.mxu1 %v2097_v47  ;;  %3961 = vmatpush3.msra.mxu0 %v5824_v21 }
 0x108   : > { %3989 = vmatprep.subr.mxu1 %v4644_v13  ;;  %3962 = vmatprep.subr.mxu0 %v4644_v13 }
 0x109   : > { %3963 = vmatpush3.msra.mxu0 %v5840_v26  ;;  %4015 = vmatprep.mubr.msk.f32.mxu1 %vm4645_vm10, %v4644_v13 }
 0x10a   : > { %3964 = vmatprep.subr.mxu0 %v4644_v13  ;;  %3982 = vmatprep.mubr.msk.f32.mxu0 %vm4645_vm10, %v4644_v13 }
 0x179   : > { %v3576_v35 = vpop.f32.mrf.mxu0 }
 0x17b   : > { %v3577_v29 = vpop.f32.mrf.mxu0 }
 0x17c   : > { %v3578_v0 = vadd.f32 %v3577_v29, %v3576_v35  ;;  %v2104_v35 = vand.u32 4294901760, %v2103_v42  ;;  %v2116_v29 = vand.u32 4294901760, %v5837_v15 }
 0x17e   : > { %v1150_v28 = vadd.f32 %v3578_v0, %v3527_v58  ;;  %v1982_v0 = vld [vmem:[%s6640_s9 + $0x38] sm:$0xff]  ;;  %3990 = vmatpush3.msra.mxu1 %v2104_v35  ;;  %v2117_v58 = vsub.f32 %v5837_v15, %v2116_v29 }
 0x17f   : > { %3991 = vmatprep.subr.mxu1 %v4644_v13 }
 0x181   : > { %v3611_v23 = vpop.f32.mrf.mxu1 }
 0x183   : > { %v3612_v30 = vpop.f32.mrf.mxu1 }
 0x184   : > { %v3613_v44 = vadd.f32 %v3612_v30, %v3611_v23  ;;  %v5850_v23 = vsub.f32 %v1984_v11, %v5840_v26  ;;  %v2110_v30 = vsub.f32 %v5827_v2, %v2109_v38 }
 0x186   : > { %v1382_v9 = vadd.f32 %v3613_v44, %v1150_v28  ;;  %v2111_v28 = vand.u32 4294901760, %v2110_v30  ;;  %v1981_v44 = vld [vmem:[%s6640_s9 + $0x30] sm:$0xff] }
 0x188   : > { %3992 = vmatpush3.msra.mxu1 %v2111_v28 }
 0x189   : > { %3993 = vmatprep.subr.mxu1 %v4644_v13 }
 0x199   : > { %v3646_v45 = vpop.f32.mrf.mxu0 }
 0x19b   : > { %v3647_v33 = vpop.f32.mrf.mxu0 }
 0x19c   : > { %v3648_v31 = vadd.f32 %v3647_v33, %v3646_v45  ;;  %v5853_v45 = vand.u32 4294901760, %v1983_v57  ;;  %v2123_v33 = vand.u32 4294901760, %v5850_v23 }
 0x19e   : > { %v1520_v36 = vadd.f32 %v3648_v31, %v1382_v9  ;;  %v2124_v31 = vsub.f32 %v5850_v23, %v2123_v33  ;;  %3965 = vmatpush3.msra.mxu0 %v5853_v45 }
 0x19f   : > { %3966 = vmatprep.subr.mxu0 %v4644_v13 }
 0x1a2   : > { %v3681_v41 = vpop.f32.mrf.mxu1 }
 0x1a4   : > { %v3682_v37 = vpop.f32.mrf.mxu1 }
 0x1a5   : > { %v3683_v40 = vadd.f32 %v3682_v37, %v3681_v41  ;;  %v5868_v41 = vsub.f32 %v1983_v57, %v5853_v45  ;;  %v2118_v37 = vand.u32 4294901760, %v2117_v58 }
 0x1a7   : > { %v1628_v4 = vadd.f32 %v3683_v40, %v1520_v36  ;;  %v5886_v40 = vand.u32 4294901760, %v1981_v44  ;;  %v1980_v36 = vld [vmem:[%s6640_s9 + $0x28] sm:$0xff]  ;;  %3994 = vmatpush3.msra.mxu1 %v2118_v37 }
 0x1a8   : > { %3995 = vmatprep.subr.mxu1 %v4644_v13 }
 0x1bb   : > { %v3716_v3 = vpop.f32.mrf.mxu0 }
 0x1bd   : > { %v3717_v62 = vpop.f32.mrf.mxu0 }
 0x1be   : > { %v3718_v54 = vadd.f32 %v3717_v62, %v3716_v3  ;;  %v5871_v3 = vand.u32 4294901760, %v1982_v0  ;;  %v2130_v62 = vand.u32 4294901760, %v5868_v41 }
 0x1c0   : > { %v1796_v17 = vadd.f32 %v3718_v54, %v1628_v4  ;;  %v5883_v9 = vsub.f32 %v1982_v0, %v5871_v3  ;;  %v1979_v54 = vld [vmem:[%s6640_s9 + $0x20] sm:$0xff]  ;;  %v2125_v4 = vand.u32 4294901760, %v2124_v31  ;;  %3967 = vmatpush3.msra.mxu0 %v5871_v3 }
 0x1c1   : > { %3968 = vmatprep.subr.mxu0 %v4644_v13 }
 0x1c2   : > { %3996 = vmatpush3.msra.mxu1 %v2125_v4  ;;  %3969 = vmatpush3.msra.mxu0 %v5886_v40 }
 0x1c3   : > { %3997 = vmatprep.subr.mxu1 %v4644_v13  ;;  %3970 = vmatprep.subr.mxu0 %v4644_v13 }
 0x1c4   : > { %v3751_v34 = vpop.f32.mrf.mxu1 }
 0x1c6   : > { %v3752_v27 = vpop.f32.mrf.mxu1 }
 0x1c7   : > { %v3753_v32 = vadd.f32 %v3752_v27, %v3751_v34  ;;  %v1978_v34 = vld [vmem:[%s6640_s9 + $0x18] sm:$0xff]  ;;  %v2131_v27 = vsub.f32 %v5868_v41, %v2130_v62 }
 0x1c9   : > { %v1900_v1 = vadd.f32 %v3753_v32, %v1796_v17  ;;  %v2137_v17 = vand.u32 4294901760, %v5883_v9  ;;  %v5904_v32 = vand.u32 4294901760, %v1980_v36 }
 0x1cb   : > { %1904 = vadd.xlane.f32.xlu0 %v1900_v1  ;;  %v5930_v39 = vsub.f32 %v1980_v36, %v5904_v32  ;;  %3971 = vmatpush3.msra.mxu0 %v5904_v32 }
 0x1cc   : > { %3972 = vmatprep.subr.mxu0 %v4644_v13 }
 0x1cd   : > { %v2151_v60 = vand.u32 4294901760, %v5930_v39 }
 0x1cf   : > { %1908 = vadd.xlane.f32.xlu0 %v1907_v52  ;;  %v5913_v52 = vsub.f32 %v1981_v44, %v5886_v40  ;;  %v2152_v30 = vsub.f32 %v5930_v39, %v2151_v60 }
 0x1d1   : > { %v2144_v18 = vand.u32 4294901760, %v5913_v52  ;;  %v2153_v31 = vand.u32 4294901760, %v2152_v30 }
 0x1d3   : > { %v2145_v47 = vsub.f32 %v5913_v52, %v2144_v18 }
 0x1d5   : > { %v2146_v58 = vand.u32 4294901760, %v2145_v47 }
 0x254   : > { %v1905_v61 = vpop.xlane.xlu0 %1904 }
 0x258   : > { %v1909_v63 = vpop.xlane.xlu0 %1908 }
 0x259   : > { %v1910_v5 = vadd.f32 %v1909_v63, %v1905_v61  ;;  %v5916_v61 = vand.u32 4294901760, %v1979_v54  ;;  %v5918_v63 = vand.u32 4294901760, %v1978_v34 }
 0x25b   : > { %v1911_v14 = vmul.f32 0.004032258, %v1910_v5  ;;  %v5937_v24 = vsub.f32 %v1979_v54, %v5916_v61  ;;  %v5941_v51 = vsub.f32 %v1978_v34, %v5918_v63  ;;  %3973 = vmatpush3.msra.mxu0 %v5916_v61 }
 0x25c   : > { %3974 = vmatprep.subr.mxu0 %v4644_v13 }
 0x25d   : > { %v5771_v12 = vsub.f32 %v1903_v53, %v1911_v14  ;;  %v5773_v6 = vsub.f32 %v1900_v1, %v1911_v14  ;;  %v1977_v1 = vld [vmem:[%s6640_s9 + $0x10] sm:$0xff]  ;;  %v1976_v53 = vld [vmem:[%s6640_s9 + $0x8] sm:$0xff]  ;;  %v1975_v14 = vld [vmem:[%s6640_s9] sm:$0xff]  ;;  %v2158_v42 = vand.u32 4294901760, %v5937_v24  ;;  %v2165_v57 = vand.u32 4294901760, %v5941_v51  ;;  %3975 = vmatpush3.msra.mxu0 %v5918_v63 }
 0x25e   : > { %v5920_v5 = vand.u32 4294901760, %v1977_v1  ;;  %v5952_v11 = vand.u32 4294901760, %v1975_v14  ;;  %3976 = vmatprep.subr.mxu0 %v4644_v13 }
 0x25f   : > { %v1914_v46 = vmul.f32 %v5773_v6, %v5773_v6  ;;  %v1917_v7 = vmul.f32 %v5771_v12, %v5771_v12  ;;  %v2159_v28 = vsub.f32 %v5937_v24, %v2158_v42  ;;  %v2166_v44 = vsub.f32 %v5941_v51, %v2165_v57 }
 0x260   : > { %v5944_v56 = vsub.f32 %v1977_v1, %v5920_v5  ;;  %v5967_v0 = vsub.f32 %v1975_v14, %v5952_v11  ;;  %3977 = vmatpush3.msra.mxu0 %v5920_v5 }
 0x261   : > { %1915 = vadd.xlane.f32.xlu1 %v1914_v46  ;;  %v1918_v16 = vsel %vm1906_vm9, %v1917_v7, 0.0  ;;  %v2132_v46 = vand.u32 4294901760, %v2131_v27  ;;  %v2138_v7 = vsub.f32 %v5883_v9, %v2137_v17  ;;  %v2160_v36 = vand.u32 4294901760, %v2159_v28  ;;  %3978 = vmatprep.subr.mxu0 %v4644_v13 }
 0x262   : > { %v2172_v35 = vand.u32 4294901760, %v5944_v56  ;;  %v2186_v34 = vand.u32 4294901760, %v5967_v0  ;;  %v2167_v4 = vand.u32 4294901760, %v2166_v44  ;;  %v3530_v44 = vld [vmem:[%s6637_s6] ss:$0 sm:$0xff] }
 0x263   : > { %v2139_v43 = vand.u32 4294901760, %v2138_v7  ;;  %3998 = vmatpush3.msra.mxu1 %v2132_v46 }
 0x264   : > { %3999 = vmatprep.subr.mxu1 %v4644_v13  ;;  %v2173_v54 = vsub.f32 %v5944_v56, %v2172_v35 }
 0x265   : > { %1919 = vadd.xlane.f32.xlu1 %v1918_v16  ;;  %v5933_v16 = vand.u32 4294901760, %v1976_v53  ;;  %4000 = vmatpush3.msra.mxu1 %v2139_v43 }
 0x266   : > { %4001 = vmatprep.subr.mxu1 %v4644_v13  ;;  %v2174_v1 = vand.u32 4294901760, %v2173_v54 }
 0x267   : > { %v5950_v59 = vsub.f32 %v1976_v53, %v5933_v16  ;;  %4002 = vmatpush3.msra.mxu1 %v2146_v58  ;;  %v2187_v53 = vsub.f32 %v5967_v0, %v2186_v34  ;;  %3979 = vmatpush3.msra.mxu0 %v5933_v16 }
 0x268   : > { %4003 = vmatprep.subr.mxu1 %v4644_v13  ;;  %3980 = vmatprep.subr.mxu0 %v4644_v13 }
 0x269   : > { %v2179_v37 = vand.u32 4294901760, %v5950_v59  ;;  %4004 = vmatpush3.msra.mxu1 %v2153_v31  ;;  %v2188_v46 = vand.u32 4294901760, %v2187_v53  ;;  %3981 = vmatpush3.msra.mxu0 %v5952_v11 }
 0x26a   : > { %4005 = vmatprep.subr.mxu1 %v4644_v13  ;;  %4018 = vmatprep.subr.mxu0 %v4644_v13 }
 0x26b   : > { %v2180_v27 = vsub.f32 %v5950_v59, %v2179_v37  ;;  %4006 = vmatpush3.msra.mxu1 %v2160_v36  ;;  %v3531_v36 = vld [vmem:[%s6638_s7] ss:$0 sm:$0xff] }
 0x26c   : > { %4007 = vmatprep.subr.mxu1 %v4644_v13 }
 0x26d   : > { %4008 = vmatpush3.msra.mxu1 %v2167_v4  ;;  %v2181_v14 = vand.u32 4294901760, %v2180_v27 }
 0x26e   : > { %4009 = vmatprep.subr.mxu1 %v4644_v13 }
 0x26f   : > { %4010 = vmatpush3.msra.mxu1 %v2174_v1 }
 0x270   : > { %4011 = vmatprep.subr.mxu1 %v4644_v13 }
 0x271   : > { %4012 = vmatpush3.msra.mxu1 %v2181_v14 }
 0x272   : > { %4013 = vmatprep.subr.mxu1 %v4644_v13 }
 0x273   : > { %4014 = vmatpush3.msra.mxu1 %v2188_v46 }
 0x274   : > { %4051 = vmatprep.subr.mxu1 %v4644_v13 }
 0x2ea   : > { %v1916_v7 = vpop.xlane.xlu1 %1915 }
 0x2ee   : > { %v1920_v43 = vpop.xlane.xlu1 %1919 }
 0x2ef   : > { %v1921_v47 = vadd.f32 %v1920_v43, %v1916_v7 }
 0x2f1   : > { %v1922_v30 = vmul.f32 0.004032258, %v1921_v47  ;;  %v1964_v47 = vld [vmem:[%s6639_s8 + $0x28] sm:$0xff] }
 0x2f3   : > { %v1923_v58 = vadd.f32 1e-05, %v1922_v30 }
 0x2f5   : > { %4493 = vrsqrt.f32 %v1923_v58 }
 0x302   : > { %v6011_v28 = vpop.eup %4493 }
 0x303   : > { %v1942_v31 = vmul.f32 %v6011_v28, %v5771_v12 }
 0x305   : > { %v1950_v54 = vmul.f32 %v3530_v44, %v1942_v31  ;;  %v1963_v31 = vld [vmem:[%s6639_s8 + $0x20] sm:$0xff] }
 0x307   : > { %v1958_v4 = vadd.f32 %v3531_v36, %v1950_v54  ;;  %v6272_v36 = vand.u32 4294901760, %v1964_v47 }
 0x309   : > { %v1991_v27 = vsel %vm1906_vm9, %v1958_v4, 0 }
 0x30a   : > { %v6022_v1 = vand.u32 4294901760, %v1991_v27 }
 0x30c   : > { %v6025_v53 = vsub.f32 %v1991_v27, %v6022_v1  ;;  %4016 = vmatmul.mubr.f32.vlgmr.msra.gmra.mxu1 %v6022_v1 }
 0x30d   : > { %4052 = vmatpush3.msra.mxu1 %v5783_v19  ;;  %4081 = vmatprep.mubr.msk.f32.mxu1 %vm4645_vm10, %v4644_v13 }
 0x30e   : > { %4053 = vmatprep.subr.mxu1 %v4644_v13  ;;  %v2075_v12 = vand.u32 4294901760, %v6025_v53 }
 0x30f   : > { %4054 = vmatpush3.msra.mxu1 %v5791_v22 }
 0x310   : > { %4055 = vmatprep.subr.mxu1 %v4644_v13  ;;  %v2076_v14 = vsub.f32 %v6025_v53, %v2075_v12 }
 0x311   : > { %4056 = vmatpush3.msra.mxu1 %v5800_v49 }
 0x312   : > { %4057 = vmatprep.subr.mxu1 %v4644_v13  ;;  %v2077_v46 = vand.u32 4294901760, %v2076_v14  ;;  %v1961_v14 = vld [vmem:[%s6639_s8 + $0x10] sm:$0xff] }
 0x313   : > { %4058 = vmatpush3.msra.mxu1 %v5813_v8 }
 0x314   : > { %4059 = vmatprep.subr.mxu1 %v4644_v13  ;;  %3983 = vmatmul.mubr.f32.vlgmr.msra.gmra.mxu0 %v2077_v46  ;;  %v6302_v46 = vsub.f32 %v1964_v47, %v6272_v36  ;;  %v3528_v47 = vld [vmem:[%s6635_s4] ss:$0 sm:$0xff] }
 0x315   : > { %4019 = vmatpush3.msra.mxu0 %v5789_v20  ;;  %4060 = vmatpush3.msra.mxu1 %v5824_v21  ;;  %v1973_v20 = vld [vmem:[%s6639_s8 + $0x70] sm:$0xff] }
 0x316   : > { %4020 = vmatprep.subr.mxu0 %v4644_v13  ;;  %4061 = vmatprep.subr.mxu1 %v4644_v13 }
 0x317   : > { %4021 = vmatpush3.msra.mxu0 %v5798_v48  ;;  %4062 = vmatpush3.msra.mxu1 %v5840_v26  ;;  %v6131_v48 = vand.u32 4294901760, %v1973_v20 }
 0x318   : > { %4022 = vmatprep.subr.mxu0 %v4644_v13  ;;  %4063 = vmatprep.subr.mxu1 %v4644_v13 }
 0x319   : > { %4023 = vmatpush3.msra.mxu0 %v5810_v50  ;;  %4064 = vmatpush3.msra.mxu1 %v5853_v45 }
 0x31a   : > { %4024 = vmatprep.subr.mxu0 %v4644_v13  ;;  %4065 = vmatprep.subr.mxu1 %v4644_v13 }
 0x31b   : > { %4025 = vmatpush3.msra.mxu0 %v5827_v2  ;;  %4066 = vmatpush3.msra.mxu1 %v5871_v3 }
 0x31c   : > { %4026 = vmatprep.subr.mxu0 %v4644_v13  ;;  %4067 = vmatprep.subr.mxu1 %v4644_v13 }
 0x31d   : > { %4027 = vmatpush3.msra.mxu0 %v5837_v15  ;;  %4068 = vmatpush3.msra.mxu1 %v5886_v40 }
 0x31e   : > { %4028 = vmatprep.subr.mxu0 %v4644_v13  ;;  %4069 = vmatprep.subr.mxu1 %v4644_v13 }
 0x31f   : > { %4029 = vmatpush3.msra.mxu0 %v5850_v23  ;;  %4070 = vmatpush3.msra.mxu1 %v5904_v32 }
 0x320   : > { %4030 = vmatprep.subr.mxu0 %v4644_v13  ;;  %4071 = vmatprep.subr.mxu1 %v4644_v13 }
 0x321   : > { %4031 = vmatpush3.msra.mxu0 %v5868_v41  ;;  %4072 = vmatpush3.msra.mxu1 %v5916_v61  ;;  %v1967_v41 = vld [vmem:[%s6639_s8 + $0x40] sm:$0xff] }
 0x322   : > { %4032 = vmatprep.subr.mxu0 %v4644_v13  ;;  %4073 = vmatprep.subr.mxu1 %v4644_v13 }
 0x323   : > { %4033 = vmatpush3.msra.mxu0 %v5883_v9  ;;  %4074 = vmatpush3.msra.mxu1 %v5918_v63 }
 0x324   : > { %4034 = vmatprep.subr.mxu0 %v4644_v13  ;;  %4075 = vmatprep.subr.mxu1 %v4644_v13 }
 0x325   : > { %4035 = vmatpush3.msra.mxu0 %v5913_v52  ;;  %4076 = vmatpush3.msra.mxu1 %v5920_v5  ;;  %v6213_v52 = vand.u32 4294901760, %v1967_v41 }
 0x326   : > { %4036 = vmatprep.subr.mxu0 %v4644_v13  ;;  %4077 = vmatprep.subr.mxu1 %v4644_v13 }
 0x327   : > { %4037 = vmatpush3.msra.mxu0 %v5930_v39  ;;  %4078 = vmatpush3.msra.mxu1 %v5933_v16  ;;  %v6247_v43 = vsub.f32 %v1967_v41, %v6213_v52  ;;  %v2785_v41 = vand.u32 4294901760, %v6302_v46 }
 0x328   : > { %4038 = vmatprep.subr.mxu0 %v4644_v13  ;;  %4079 = vmatprep.subr.mxu1 %v4644_v13 }
 0x329   : > { %4039 = vmatpush3.msra.mxu0 %v5937_v24  ;;  %4080 = vmatpush3.msra.mxu1 %v5952_v11  ;;  %v2764_v4 = vand.u32 4294901760, %v6247_v43 }
 0x32a   : > { %4040 = vmatprep.subr.mxu0 %v4644_v13  ;;  %4082 = vmatmul.mubr.f32.vlgmr.msra.gmra.mxu1 %v2075_v12 }
 0x32b   : > { %4117 = vmatprep.subr.mxu1 %v4644_v13  ;;  %4041 = vmatpush3.msra.mxu0 %v5941_v51 }
 0x32c   : > { %4118 = vmatpush3.msra.mxu1 %v5783_v19  ;;  %4042 = vmatprep.subr.mxu0 %v4644_v13  ;;  %v1974_v19 = vld [vmem:[%s6639_s8 + $0x78] sm:$0xff] }
 0x32d   : > { %4119 = vmatprep.subr.mxu1 %v4644_v13  ;;  %4043 = vmatpush3.msra.mxu0 %v5944_v56  ;;  %v1962_v56 = vld [vmem:[%s6639_s8 + $0x18] sm:$0xff] }
 0x32e   : > { %4120 = vmatpush3.msra.mxu1 %v5791_v22  ;;  %4044 = vmatprep.subr.mxu0 %v4644_v13  ;;  %v6121_v22 = vand.u32 4294901760, %v1974_v19 }
 0x32f   : > { %4121 = vmatprep.subr.mxu1 %v4644_v13  ;;  %4045 = vmatpush3.msra.mxu0 %v5950_v59 }
 0x330   : > { %4122 = vmatpush3.msra.mxu1 %v5800_v49  ;;  %4046 = vmatprep.subr.mxu0 %v4644_v13  ;;  %v1971_v49 = vld [vmem:[%s6639_s8 + $0x60] sm:$0xff] }
 0x331   : > { %4123 = vmatprep.subr.mxu1 %v4644_v13  ;;  %4047 = vmatpush3.msra.mxu0 %v5967_v0  ;;  %v1960_v0 = vld [vmem:[%s6639_s8 + $0x8] sm:$0xff] }
 0x332   : > { %4048 = vmatprep.mubr.msk.f32.mxu0 %vm4645_vm10, %v4644_v13  ;;  %4124 = vmatpush3.msra.mxu1 %v5813_v8  ;;  %v6152_v8 = vsub.f32 %v1973_v20, %v6131_v48  ;;  %v2765_v20 = vsub.f32 %v6247_v43, %v2764_v4 }
 0x333   : > { %4049 = vmatmul.mubr.f32.vlgmr.msra.gmra.mxu0 %v6025_v53  ;;  %4084 = vmatprep.subr.mxu0 %v4644_v13  ;;  %v6288_v53 = vand.u32 4294901760, %v1963_v31 }
 0x334   : > { %4125 = vmatprep.subr.mxu1 %v4644_v13  ;;  %4085 = vmatpush3.msra.mxu0 %v2088_v25  ;;  %v1972_v25 = vld [vmem:[%s6639_s8 + $0x68] sm:$0xff]  ;;  %v2722_v23 = vand.u32 4294901760, %v6152_v8 }
 0x335   : > { %4126 = vmatpush3.msra.mxu1 %v5824_v21  ;;  %4086 = vmatprep.subr.mxu0 %v4644_v13  ;;  %v6144_v50 = vand.u32 4294901760, %v1972_v25  ;;  %v1970_v21 = vld [vmem:[%s6639_s8 + $0x58] sm:$0xff] }
 0x336   : > { %4127 = vmatprep.subr.mxu1 %v4644_v13  ;;  %4087 = vmatpush3.msra.mxu0 %v2095_v10  ;;  %v6142_v10 = vsub.f32 %v1974_v19, %v6121_v22  ;;  %v6304_v19 = vand.u32 4294901760, %v1962_v56 }
 0x337   : > { %4128 = vmatpush3.msra.mxu1 %v5840_v26  ;;  %4088 = vmatprep.subr.mxu0 %v4644_v13  ;;  %v6166_v15 = vsub.f32 %v1972_v25, %v6144_v50  ;;  %v1969_v26 = vld [vmem:[%s6639_s8 + $0x50] sm:$0xff] }
 0x338   : > { %4129 = vmatprep.subr.mxu1 %v4644_v13  ;;  %4089 = vmatpush3.msra.mxu0 %v2102_v55  ;;  %v6154_v55 = vand.u32 4294901760, %v1971_v49  ;;  %v2715_v2 = vand.u32 4294901760, %v6142_v10 }
 0x339   : > { %4130 = vmatpush3.msra.mxu1 %v5853_v45  ;;  %4090 = vmatprep.subr.mxu0 %v4644_v13 }
 0x33a   : > { %4131 = vmatprep.subr.mxu1 %v4644_v13  ;;  %4091 = vmatpush3.msra.mxu0 %v2109_v38  ;;  %v6173_v38 = vand.u32 4294901760, %v1970_v21  ;;  %v6183_v45 = vsub.f32 %v1971_v49, %v6154_v55  ;;  %v6318_v49 = vsub.f32 %v1963_v31, %v6288_v53  ;;  %v2786_v31 = vsub.f32 %v6302_v46, %v2785_v41 }
 0x33b   : > { %4132 = vmatpush3.msra.mxu1 %v5871_v3  ;;  %4092 = vmatprep.subr.mxu0 %v4644_v13  ;;  %v2716_v3 = vsub.f32 %v6142_v10, %v2715_v2 }
 0x33c   : > { %4133 = vmatprep.subr.mxu1 %v4644_v13  ;;  %4093 = vmatpush3.msra.mxu0 %v2116_v29  ;;  %v1968_v29 = vld [vmem:[%s6639_s8 + $0x48] sm:$0xff] }
 0x33d   : > { %4134 = vmatpush3.msra.mxu1 %v5886_v40  ;;  %4094 = vmatprep.subr.mxu0 %v4644_v13  ;;  %v6199_v9 = vand.u32 4294901760, %v1968_v29  ;;  %v6204_v40 = vsub.f32 %v1970_v21, %v6173_v38  ;;  %v2717_v39 = vand.u32 4294901760, %v2716_v3  ;;  %v6320_v21 = vand.u32 4294901760, %v1961_v14 }
 0x33e   : > { %4135 = vmatprep.subr.mxu1 %v4644_v13  ;;  %4095 = vmatpush3.msra.mxu0 %v2123_v33  ;;  %v6187_v33 = vand.u32 4294901760, %v1969_v26  ;;  %v6333_v3 = vsub.f32 %v1962_v56, %v6304_v19 }
 0x33f   : > { %4136 = vmatpush3.msra.mxu1 %v5904_v32  ;;  %4096 = vmatprep.subr.mxu0 %v4644_v13  ;;  %v2736_v32 = vand.u32 4294901760, %v6183_v45 }
 0x340   : > { %4137 = vmatprep.subr.mxu1 %v4644_v13  ;;  %4097 = vmatpush3.msra.mxu0 %v2130_v62  ;;  %v2729_v62 = vand.u32 4294901760, %v6166_v15 }
 0x341   : > { %4138 = vmatpush3.msra.mxu1 %v5916_v61  ;;  %4098 = vmatprep.subr.mxu0 %v4644_v13  ;;  %v1966_v61 = vld [vmem:[%s6639_s8 + $0x38] sm:$0xff] }
 0x342   : > { %4139 = vmatprep.subr.mxu1 %v4644_v13  ;;  %4099 = vmatpush3.msra.mxu0 %v2137_v17  ;;  %v2723_v17 = vsub.f32 %v6152_v8, %v2722_v23  ;;  %v6239_v7 = vand.u32 4294901760, %v1966_v61 }
 0x343   : > { %4140 = vmatpush3.msra.mxu1 %v5918_v63  ;;  %4100 = vmatprep.subr.mxu0 %v4644_v13  ;;  %v6221_v63 = vsub.f32 %v1969_v26, %v6187_v33 }
 0x344   : > { %4141 = vmatprep.subr.mxu1 %v4644_v13  ;;  %4101 = vmatpush3.msra.mxu0 %v2144_v18  ;;  %v2730_v18 = vsub.f32 %v6166_v15, %v2729_v62  ;;  %v2724_v24 = vand.u32 4294901760, %v2723_v17  ;;  %v6335_v17 = vand.u32 4294901760, %v1960_v0 }
 0x345   : > { %4142 = vmatpush3.msra.mxu1 %v5920_v5  ;;  %4102 = vmatprep.subr.mxu0 %v4644_v13  ;;  %v1965_v5 = vld [vmem:[%s6639_s8 + $0x30] sm:$0xff]  ;;  %v2750_v30 = vand.u32 4294901760, %v6221_v63 }
 0x346   : > { %4143 = vmatprep.subr.mxu1 %v4644_v13  ;;  %4103 = vmatpush3.msra.mxu0 %v2151_v60  ;;  %v2743_v60 = vand.u32 4294901760, %v6204_v40  ;;  %v2731_v58 = vand.u32 4294901760, %v2730_v18  ;;  %v6345_v18 = vsub.f32 %v1961_v14, %v6320_v21  ;;  %v3529_v14 = vld [vmem:[%s6636_s5] ss:$0 sm:$0xff] }
 0x347   : > { %4144 = vmatpush3.msra.mxu1 %v5933_v16  ;;  %4104 = vmatprep.subr.mxu0 %v4644_v13  ;;  %v6233_v16 = vsub.f32 %v1968_v29, %v6199_v9  ;;  %v1959_v29 = vld [vmem:[%s6639_s8] sm:$0xff] }
 0x348   : > { %4145 = vmatprep.subr.mxu1 %v4644_v13  ;;  %4105 = vmatpush3.msra.mxu0 %v2158_v42  ;;  %v2737_v42 = vsub.f32 %v6183_v45, %v2736_v32  ;;  %v2744_v51 = vsub.f32 %v6204_v40, %v2743_v60  ;;  %v2806_v56 = vand.u32 4294901760, %v6345_v18 }
 0x349   : > { %4146 = vmatpush3.msra.mxu1 %v5952_v11  ;;  %4147 = vmatprep.mubr.msk.f32.mxu1 %vm4645_vm10, %v4644_v13  ;;  %v6249_v11 = vand.u32 4294901760, %v1965_v5  ;;  %v2757_v44 = vand.u32 4294901760, %v6233_v16 }
 0x34a   : > { %4106 = vmatprep.subr.mxu0 %v4644_v13  ;;  %4148 = vmatmul.mubr.f32.vlgmr.msra.gmra.mxu1 %v6022_v1  ;;  %v2738_v54 = vand.u32 4294901760, %v2737_v42  ;;  %v2745_v59 = vand.u32 4294901760, %v2744_v51  ;;  %v1925_v42 = vmul.f32 %v6011_v28, %v5773_v6  ;;  %v2799_v51 = vand.u32 4294901760, %v6333_v3 }
 0x34b   : > { %4185 = vmatprep.subr.mxu1 %v4644_v13  ;;  %4107 = vmatpush3.msra.mxu0 %v2165_v57  ;;  %v6270_v57 = vsub.f32 %v1966_v61, %v6239_v7  ;;  %v6277_v27 = vsub.f32 %v1965_v5, %v6249_v11  ;;  %v2758_v12 = vsub.f32 %v6233_v16, %v2757_v44  ;;  %v2766_v61 = vand.u32 4294901760, %v2765_v20 }
 0x34c   : > { %4186 = vmatpush3.msra.mxu1 %v2717_v39  ;;  %4108 = vmatprep.subr.mxu0 %v4644_v13  ;;  %v2792_v39 = vand.u32 4294901760, %v6318_v49  ;;  %v6362_v6 = vsub.f32 %v1960_v0, %v6335_v17  ;;  %v2800_v20 = vsub.f32 %v6333_v3, %v2799_v51 }
 0x34d   : > { %4187 = vmatprep.subr.mxu1 %v4644_v13  ;;  %4109 = vmatpush3.msra.mxu0 %v2172_v35  ;;  %v2751_v35 = vsub.f32 %v6221_v63, %v2750_v30  ;;  %v2778_v25 = vand.u32 4294901760, %v6277_v27  ;;  %v2759_v26 = vand.u32 4294901760, %v2758_v12  ;;  %v1933_v12 = vmul.f32 %v3528_v47, %v1925_v42 }
 0x34e   : > { %4188 = vmatpush3.msra.mxu1 %v2724_v24  ;;  %4110 = vmatprep.subr.mxu0 %v4644_v13  ;;  %v6347_v24 = vand.u32 4294901760, %v1959_v29  ;;  %v2813_v0 = vand.u32 4294901760, %v6362_v6 }
 0x34f   : > { %4189 = vmatprep.subr.mxu1 %v4644_v13  ;;  %4111 = vmatpush3.msra.mxu0 %v2179_v37  ;;  %v2771_v37 = vand.u32 4294901760, %v6270_v57  ;;  %v2779_v5 = vsub.f32 %v6277_v27, %v2778_v25 }
 0x350   : > { %4190 = vmatpush3.msra.mxu1 %v2731_v58  ;;  %4112 = vmatprep.subr.mxu0 %v4644_v13 }
 0x351   : > { %4191 = vmatprep.subr.mxu1 %v4644_v13  ;;  %4113 = vmatpush3.msra.mxu0 %v2186_v34  ;;  %v2752_v34 = vand.u32 4294901760, %v2751_v35  ;;  %v2780_v28 = vand.u32 4294901760, %v2779_v5  ;;  %v6372_v35 = vsub.f32 %v1959_v29, %v6347_v24  ;;  %v2814_v5 = vsub.f32 %v6362_v6, %v2813_v0 }
 0x352   : > { %4114 = vmatprep.mubr.msk.f32.mxu0 %vm4645_vm10, %v4644_v13  ;;  %4192 = vmatpush3.msra.mxu1 %v2738_v54  ;;  %v2793_v54 = vsub.f32 %v6318_v49, %v2792_v39 }
 0x353   : > { %4115 = vmatmul.mubr.f32.vlgmr.msra.gmra.mxu0 %v6022_v1  ;;  %4150 = vmatprep.subr.mxu0 %v4644_v13  ;;  %v2772_v1 = vsub.f32 %v6270_v57, %v2771_v37  ;;  %v2820_v29 = vand.u32 4294901760, %v6372_v35 }
 0x354   : > { %4193 = vmatprep.subr.mxu1 %v4644_v13  ;;  %4151 = vmatpush3.msra.mxu0 %v6121_v22 }
 0x355   : > { %4194 = vmatpush3.msra.mxu1 %v2745_v59  ;;  %4152 = vmatprep.subr.mxu0 %v4644_v13  ;;  %v2773_v58 = vand.u32 4294901760, %v2772_v1  ;;  %v2787_v59 = vand.u32 4294901760, %v2786_v31  ;;  %v1941_v1 = vadd.f32 %v3529_v14, %v1933_v12  ;;  %v2821_v47 = vsub.f32 %v6372_v35, %v2820_v29 }
 0x356   : > { %4195 = vmatprep.subr.mxu1 %v4644_v13  ;;  %4153 = vmatpush3.msra.mxu0 %v6131_v48  ;;  %v2815_v31 = vand.u32 4294901760, %v2814_v5 }
 0x357   : > { %4196 = vmatpush3.msra.mxu1 %v2752_v34  ;;  %4154 = vmatprep.subr.mxu0 %v4644_v13  ;;  %v2794_v34 = vand.u32 4294901760, %v2793_v54 }
 0x358   : > { %4197 = vmatprep.subr.mxu1 %v4644_v13  ;;  %4155 = vmatpush3.msra.mxu0 %v6144_v50 }
 0x359   : > { %4198 = vmatpush3.msra.mxu1 %v2759_v26  ;;  %4156 = vmatprep.subr.mxu0 %v4644_v13  ;;  %v2807_v26 = vsub.f32 %v6345_v18, %v2806_v56 }
 0x35a   : > { %4199 = vmatprep.subr.mxu1 %v4644_v13  ;;  %4157 = vmatpush3.msra.mxu0 %v6154_v55 }
 0x35b   : > { %4200 = vmatpush3.msra.mxu1 %v2766_v61  ;;  %4158 = vmatprep.subr.mxu0 %v4644_v13  ;;  %v2801_v61 = vand.u32 4294901760, %v2800_v20  ;;  %v2808_v42 = vand.u32 4294901760, %v2807_v26 }
 0x35c   : > { %4201 = vmatprep.subr.mxu1 %v4644_v13  ;;  %4159 = vmatpush3.msra.mxu0 %v6173_v38 }
 0x35d   : > { %4202 = vmatpush3.msra.mxu1 %v2773_v58  ;;  %4160 = vmatprep.subr.mxu0 %v4644_v13  ;;  %v6403_v58 = vand.u32 4294901760, %v1941_v1 }
 0x35e   : > { %4203 = vmatprep.subr.mxu1 %v4644_v13  ;;  %4161 = vmatpush3.msra.mxu0 %v6187_v33 }
 0x35f   : > { %4204 = vmatpush3.msra.mxu1 %v2780_v28  ;;  %4162 = vmatprep.subr.mxu0 %v4644_v13  ;;  %v2822_v28 = vand.u32 4294901760, %v2821_v47  ;;  %v6412_v54 = vsub.f32 %v1941_v1, %v6403_v58 }
 0x360   : > { %4205 = vmatprep.subr.mxu1 %v4644_v13  ;;  %4163 = vmatpush3.msra.mxu0 %v6199_v9 }
 0x361   : > { %4206 = vmatpush3.msra.mxu1 %v2787_v59  ;;  %4164 = vmatprep.subr.mxu0 %v4644_v13  ;;  %v2704_v12 = vand.u32 4294901760, %v6412_v54 }
 0x362   : > { %4207 = vmatprep.subr.mxu1 %v4644_v13  ;;  %4165 = vmatpush3.msra.mxu0 %v6213_v52 }
 0x363   : > { %4208 = vmatpush3.msra.mxu1 %v2794_v34  ;;  %4166 = vmatprep.subr.mxu0 %v4644_v13  ;;  %v2705_v14 = vsub.f32 %v6412_v54, %v2704_v12 }
 0x364   : > { %4209 = vmatprep.subr.mxu1 %v4644_v13  ;;  %4167 = vmatpush3.msra.mxu0 %v6239_v7 }
 0x365   : > { %4210 = vmatpush3.msra.mxu1 %v2801_v61  ;;  %4168 = vmatprep.subr.mxu0 %v4644_v13  ;;  %v2706_v59 = vand.u32 4294901760, %v2705_v14 }
 0x366   : > { %4211 = vmatprep.subr.mxu1 %v4644_v13  ;;  %4169 = vmatpush3.msra.mxu0 %v6249_v11 }
 0x367   : > { %4212 = vmatpush3.msra.mxu1 %v2808_v42  ;;  %4170 = vmatprep.subr.mxu0 %v4644_v13 }
 0x368   : > { %4213 = vmatprep.subr.mxu1 %v4644_v13  ;;  %4171 = vmatpush3.msra.mxu0 %v6272_v36 }
 0x369   : > { %4214 = vmatpush3.msra.mxu1 %v2815_v31  ;;  %4172 = vmatprep.subr.mxu0 %v4644_v13 }
 0x36a   : > { %4215 = vmatprep.subr.mxu1 %v4644_v13  ;;  %4173 = vmatpush3.msra.mxu0 %v6288_v53 }
 0x36b   : > { %4216 = vmatpush3.msra.mxu1 %v2822_v28  ;;  %4217 = vmatprep.mubr.msk.f32.mxu1 %vm4645_vm10, %v4644_v13 }
 0x36c   : > { %4174 = vmatprep.subr.mxu0 %v4644_v13  ;;  %4218 = vmatmul.mubr.f32.vlgmr.msra.gmra.mxu1 %v6403_v58 }
 0x36d   : > { %4255 = vmatprep.subr.mxu1 %v4644_v13  ;;  %4175 = vmatpush3.msra.mxu0 %v6304_v19 }
 0x36e   : > { %4256 = vmatpush3.msra.mxu1 %v6121_v22  ;;  %4176 = vmatprep.subr.mxu0 %v4644_v13 }
 0x36f   : > { %4257 = vmatprep.subr.mxu1 %v4644_v13  ;;  %4177 = vmatpush3.msra.mxu0 %v6320_v21 }
 0x370   : > { %4258 = vmatpush3.msra.mxu1 %v6131_v48  ;;  %4178 = vmatprep.subr.mxu0 %v4644_v13 }
 0x371   : > { %4259 = vmatprep.subr.mxu1 %v4644_v13  ;;  %4179 = vmatpush3.msra.mxu0 %v6335_v17 }
 0x372   : > { %4260 = vmatpush3.msra.mxu1 %v6144_v50  ;;  %4180 = vmatprep.subr.mxu0 %v4644_v13 }
 0x373   : > { %4261 = vmatprep.subr.mxu1 %v4644_v13  ;;  %4181 = vmatpush3.msra.mxu0 %v6347_v24 }
 0x374   : > { %4182 = vmatprep.mubr.msk.f32.mxu0 %vm4645_vm10, %v4644_v13  ;;  %4262 = vmatpush3.msra.mxu1 %v6154_v55 }
 0x375   : > { %4183 = vmatmul.mubr.f32.vlgmr.msra.gmra.mxu0 %v2706_v59  ;;  %4220 = vmatprep.subr.mxu0 %v4644_v13 }
 0x376   : > { %4263 = vmatprep.subr.mxu1 %v4644_v13  ;;  %4221 = vmatpush3.msra.mxu0 %v6142_v10 }
 0x377   : > { %4264 = vmatpush3.msra.mxu1 %v6173_v38  ;;  %4222 = vmatprep.subr.mxu0 %v4644_v13 }
 0x378   : > { %4265 = vmatprep.subr.mxu1 %v4644_v13  ;;  %4223 = vmatpush3.msra.mxu0 %v6152_v8 }
 0x379   : > { %4266 = vmatpush3.msra.mxu1 %v6187_v33  ;;  %4224 = vmatprep.subr.mxu0 %v4644_v13 }
 0x37a   : > { %4267 = vmatprep.subr.mxu1 %v4644_v13  ;;  %4225 = vmatpush3.msra.mxu0 %v6166_v15 }
 0x37b   : > { %4268 = vmatpush3.msra.mxu1 %v6199_v9  ;;  %4226 = vmatprep.subr.mxu0 %v4644_v13 }
 0x37c   : > { %4269 = vmatprep.subr.mxu1 %v4644_v13  ;;  %4227 = vmatpush3.msra.mxu0 %v6183_v45 }
 0x37d   : > { %4270 = vmatpush3.msra.mxu1 %v6213_v52  ;;  %4228 = vmatprep.subr.mxu0 %v4644_v13 }
 0x37e   : > { %4271 = vmatprep.subr.mxu1 %v4644_v13  ;;  %4229 = vmatpush3.msra.mxu0 %v6204_v40 }
 0x37f   : > { %4272 = vmatpush3.msra.mxu1 %v6239_v7  ;;  %4230 = vmatprep.subr.mxu0 %v4644_v13 }
 0x380   : > { %4273 = vmatprep.subr.mxu1 %v4644_v13  ;;  %4231 = vmatpush3.msra.mxu0 %v6221_v63 }
 0x381   : > { %4274 = vmatpush3.msra.mxu1 %v6249_v11  ;;  %4232 = vmatprep.subr.mxu0 %v4644_v13 }
 0x382   : > { %4275 = vmatprep.subr.mxu1 %v4644_v13  ;;  %4233 = vmatpush3.msra.mxu0 %v6233_v16 }
 0x383   : > { %4276 = vmatpush3.msra.mxu1 %v6272_v36  ;;  %4234 = vmatprep.subr.mxu0 %v4644_v13 }
 0x384   : > { %4277 = vmatprep.subr.mxu1 %v4644_v13  ;;  %4235 = vmatpush3.msra.mxu0 %v6247_v43 }
 0x385   : > { %4278 = vmatpush3.msra.mxu1 %v6288_v53  ;;  %4236 = vmatprep.subr.mxu0 %v4644_v13 }
 0x386   : > { %4279 = vmatprep.subr.mxu1 %v4644_v13  ;;  %4237 = vmatpush3.msra.mxu0 %v6270_v57 }
 0x387   : > { %4280 = vmatpush3.msra.mxu1 %v6304_v19  ;;  %4238 = vmatprep.subr.mxu0 %v4644_v13 }
 0x388   : > { %4281 = vmatprep.subr.mxu1 %v4644_v13  ;;  %4239 = vmatpush3.msra.mxu0 %v6277_v27 }
 0x389   : > { %4282 = vmatpush3.msra.mxu1 %v6320_v21  ;;  %4240 = vmatprep.subr.mxu0 %v4644_v13 }
 0x38a   : > { %4283 = vmatprep.subr.mxu1 %v4644_v13  ;;  %4241 = vmatpush3.msra.mxu0 %v6302_v46 }
 0x38b   : > { %4284 = vmatpush3.msra.mxu1 %v6335_v17  ;;  %4242 = vmatprep.subr.mxu0 %v4644_v13 }
 0x38c   : > { %4285 = vmatprep.subr.mxu1 %v4644_v13  ;;  %4243 = vmatpush3.msra.mxu0 %v6318_v49 }
 0x38d   : > { %4286 = vmatpush3.msra.mxu1 %v6347_v24  ;;  %4287 = vmatprep.mubr.msk.f32.mxu1 %vm4645_vm10, %v4644_v13 }
 0x38e   : > { %4244 = vmatprep.subr.mxu0 %v4644_v13  ;;  %4288 = vmatmul.mubr.f32.vlgmr.msra.gmra.mxu1 %v2704_v12 }
 0x38f   : > { %4325 = vmatprep.subr.mxu1 %v4644_v13  ;;  %4245 = vmatpush3.msra.mxu0 %v6333_v3 }
 0x390   : > { %4326 = vmatpush3.msra.mxu1 %v6121_v22  ;;  %4246 = vmatprep.subr.mxu0 %v4644_v13 }
 0x391   : > { %4327 = vmatprep.subr.mxu1 %v4644_v13  ;;  %4247 = vmatpush3.msra.mxu0 %v6345_v18  ;;  %v4646_v18 = vmov 0  }
 0x392   : > { %4328 = vmatpush3.msra.mxu1 %v6131_v48  ;;  %4248 = vmatprep.subr.mxu0 %v4644_v13 }
 0x393   : > { %4329 = vmatprep.subr.mxu1 %v4644_v13  ;;  %4249 = vmatpush3.msra.mxu0 %v6362_v6 }
 0x394   : > { %4330 = vmatpush3.msra.mxu1 %v6144_v50  ;;  %4250 = vmatprep.subr.mxu0 %v4644_v13 }
 0x395   : > { %4331 = vmatprep.subr.mxu1 %v4644_v13  ;;  %4251 = vmatpush3.msra.mxu0 %v6372_v35 }
 0x396   : > { %4252 = vmatprep.mubr.msk.f32.mxu0 %vm4645_vm10, %v4644_v13  ;;  %4332 = vmatpush3.msra.mxu1 %v6154_v55 }
 0x397   : > { %4253 = vmatmul.mubr.f32.vlgmr.msra.gmra.mxu0 %v6412_v54  ;;  %4290 = vmatprep.subr.mxu0 %v4644_v13 }
 0x398   : > { %4333 = vmatprep.subr.mxu1 %v4644_v13  ;;  %4291 = vmatpush3.msra.mxu0 %v2715_v2 }
 0x399   : > { %4334 = vmatpush3.msra.mxu1 %v6173_v38  ;;  %4292 = vmatprep.subr.mxu0 %v4644_v13 }
 0x39a   : > { %4335 = vmatprep.subr.mxu1 %v4644_v13  ;;  %4293 = vmatpush3.msra.mxu0 %v2722_v23 }
 0x39b   : > { %4336 = vmatpush3.msra.mxu1 %v6187_v33  ;;  %4294 = vmatprep.subr.mxu0 %v4644_v13 }
 0x39c   : > { %4337 = vmatprep.subr.mxu1 %v4644_v13  ;;  %4295 = vmatpush3.msra.mxu0 %v2729_v62 }
 0x39d   : > { %4338 = vmatpush3.msra.mxu1 %v6199_v9  ;;  %4296 = vmatprep.subr.mxu0 %v4644_v13 }
 0x39e   : > { %4339 = vmatprep.subr.mxu1 %v4644_v13  ;;  %4297 = vmatpush3.msra.mxu0 %v2736_v32 }
 0x39f   : > { %4340 = vmatpush3.msra.mxu1 %v6213_v52  ;;  %4298 = vmatprep.subr.mxu0 %v4644_v13 }
 0x3a0   : > { %4341 = vmatprep.subr.mxu1 %v4644_v13  ;;  %4299 = vmatpush3.msra.mxu0 %v2743_v60 }
 0x3a1   : > { %4342 = vmatpush3.msra.mxu1 %v6239_v7  ;;  %4300 = vmatprep.subr.mxu0 %v4644_v13 }
 0x3a2   : > { %4343 = vmatprep.subr.mxu1 %v4644_v13  ;;  %4301 = vmatpush3.msra.mxu0 %v2750_v30 }
 0x3a3   : > { %4344 = vmatpush3.msra.mxu1 %v6249_v11  ;;  %4302 = vmatprep.subr.mxu0 %v4644_v13 }
 0x3a4   : > { %4345 = vmatprep.subr.mxu1 %v4644_v13  ;;  %4303 = vmatpush3.msra.mxu0 %v2757_v44 }
 0x3a5   : > { %4346 = vmatpush3.msra.mxu1 %v6272_v36  ;;  %4304 = vmatprep.subr.mxu0 %v4644_v13 }
 0x3a6   : > { %4347 = vmatprep.subr.mxu1 %v4644_v13  ;;  %4305 = vmatpush3.msra.mxu0 %v2764_v4 }
 0x3a7   : > { %4348 = vmatpush3.msra.mxu1 %v6288_v53  ;;  %4306 = vmatprep.subr.mxu0 %v4644_v13 }
 0x3a8   : > { %4349 = vmatprep.subr.mxu1 %v4644_v13  ;;  %4307 = vmatpush3.msra.mxu0 %v2771_v37 }
 0x3a9   : > { %4350 = vmatpush3.msra.mxu1 %v6304_v19  ;;  %4308 = vmatprep.subr.mxu0 %v4644_v13  ;;  %v3532_v19 = vld [vmem:[%s6641_s10] ss:$0 sm:$0xff] }
 0x3aa   : > { %4351 = vmatprep.subr.mxu1 %v4644_v13  ;;  %4309 = vmatpush3.msra.mxu0 %v2778_v25 }
 0x3ab   : > { %4352 = vmatpush3.msra.mxu1 %v6320_v21  ;;  %4310 = vmatprep.subr.mxu0 %v4644_v13 }
 0x3ac   : > { %4353 = vmatprep.subr.mxu1 %v4644_v13  ;;  %4311 = vmatpush3.msra.mxu0 %v2785_v41  ;;  %v3533_v41 = vld [vmem:[%s6642_s11] ss:$0 sm:$0xff] }
 0x3ad   : > { %4354 = vmatpush3.msra.mxu1 %v6335_v17  ;;  %4312 = vmatprep.subr.mxu0 %v4644_v13 }
 0x3ae   : > { %4355 = vmatprep.subr.mxu1 %v4644_v13  ;;  %4313 = vmatpush3.msra.mxu0 %v2792_v39 }
 0x3af   : > { %4356 = vmatpush3.msra.mxu1 %v6347_v24  ;;  %4357 = vmatprep.mubr.msk.f32.mxu1 %vm4645_vm10, %v4644_v13  ;;  %v3534_v24 = vld [vmem:[#allocation3] ss:$0 sm:$0xff] }
 0x3b0   : > { %4314 = vmatprep.subr.mxu0 %v4644_v13  ;;  %4358 = vmatmul.mubr.f32.vlgmr.msra.gmra.mxu1 %v6403_v58 }
 0x3b1   : > { %4315 = vmatpush3.msra.mxu0 %v2799_v51  ;;  %4322 = vmatprep.mubr.msk.f32.mxu0 %vm4645_vm10, %v4644_v13 }
 0x3b2   : > { %4316 = vmatprep.subr.mxu0 %v4644_v13  ;;  %4491 = vset.pattern.permute.xlu1 %v4646_v18 }
 0x3b3   : > { %4317 = vmatpush3.msra.mxu0 %v2806_v56  ;;  %4492 = vset.pattern.permute.xlu0 %v4646_v18 }
 0x3b4   : > { %4318 = vmatprep.subr.mxu0 %v4644_v13 }
 0x3b5   : > { %4319 = vmatpush3.msra.mxu0 %v2813_v0 }
 0x3b6   : > { %4320 = vmatprep.subr.mxu0 %v4644_v13 }
 0x3b7   : > { %4321 = vmatpush3.msra.mxu0 %v2820_v29 }
 0x3b8   : > { %4323 = vmatmul.mubr.f32.vlgmr.msra.gmra.mxu0 %v6403_v58 }
 0x3cc   : > { %v2225_v22 = vpop.f32.mrf.mxu1 }
 0x3ce   : > { %v4017_v48 = vpop.f32.mrf.mxu1 }
 0x3d4   : > { %v2079_v10 = vpop.f32.mrf.mxu0 }
 0x3d5   : > { %v2226_v50 = vadd.f32 %v2225_v22, %v2079_v10 }
 0x3d6   : > { %v3984_v8 = vpop.f32.mrf.mxu0 }
 0x3ea   : > { %v2415_v55 = vpop.f32.mrf.mxu1 }
 0x3ec   : > { %v4083_v2 = vpop.f32.mrf.mxu1 }
 0x3f3   : > { %v2327_v15 = vpop.f32.mrf.mxu0 }
 0x3f4   : > { %v2328_v38 = vadd.f32 %v2327_v15, %v2226_v50 }
 0x3f5   : > { %v4050_v23 = vpop.f32.mrf.mxu0 }
 0x3f6   : > { %v2416_v45 = vadd.f32 %v2415_v55, %v2328_v38 }
 0x40a   : > { %v2617_v33 = vpop.f32.mrf.mxu1 }
 0x40c   : > { %v4149_v62 = vpop.f32.mrf.mxu1 }
 0x413   : > { %v2531_v9 = vpop.f32.mrf.mxu0 }
 0x414   : > { %v2532_v13 = vadd.f32 %v2531_v9, %v2416_v45 }
 0x415   : > { %v4116_v40 = vpop.f32.mrf.mxu0 }
 0x416   : > { %v2618_v32 = vadd.f32 %v2617_v33, %v2532_v13 }
 0x42c   : > { %v2859_v52 = vpop.f32.mrf.mxu1 }
 0x42e   : > { %v4219_v63 = vpop.f32.mrf.mxu1 }
 0x435   : > { %v2708_v16 = vpop.f32.mrf.mxu0 }
 0x436   : > { %v2709_v60 = vadd.f32 %v2708_v16, %v2618_v32 }
 0x437   : > { %v4184_v7 = vpop.f32.mrf.mxu0 }
 0x438   : > { %v2860_v43 = vadd.f32 %v2859_v52, %v2709_v60 }
 0x44e   : > { %v3052_v11 = vpop.f32.mrf.mxu1 }
 0x450   : > { %v4289_v30 = vpop.f32.mrf.mxu1 }
 0x457   : > { %v2963_v44 = vpop.f32.mrf.mxu0 }
 0x458   : > { %v2964_v27 = vadd.f32 %v2963_v44, %v2860_v43 }
 0x459   : > { %v4254_v57 = vpop.f32.mrf.mxu0 }
 0x45a   : > { %v3053_v53 = vadd.f32 %v3052_v11, %v2964_v27 }
 0x470   : > { %v3258_v36 = vpop.f32.mrf.mxu1 }
 0x472   : > { %v4359_v4 = vpop.f32.mrf.mxu1 }
 0x478   : > { %v3171_v37 = vpop.f32.mrf.mxu0 }
 0x479   : > { %v3172_v46 = vadd.f32 %v3171_v37, %v3053_v53 }
 0x47a   : > { %v4324_v25 = vpop.f32.mrf.mxu0 }
 0x47b   : > { %v3259_v49 = vadd.f32 %v3258_v36, %v3172_v46 }
 0x47d   : > { %v3269_v21 = vadd.f32 %v3532_v19, %v3259_v49 }
 0x47f   : > { %v3270_v3 = vmax.f32 %v3269_v21, 0.0 }
 0x481   : > { %v3278_v17 = vmul.f32 %v3533_v41, %v3270_v3 }
 0x483   : > { %v3280_v39 = vsel %vm3279_vm11, %v3278_v17, 0.0 }
 0x484   : > { %3281 = vadd.xlane.f32.xlu0 %v3280_v39 }
 0x50d   : > { %v3282_v51 = vpop.xlane.xlu0 %3281 }
 0x50e   : > { %v3290_v6 = vadd.f32 %v3534_v24, %v3282_v51 }
 0x510   : > { %3293 = vperm.xlu1 %4491, %v3290_v6  }
 0x58b   : > { %v3294_v56 = vpop.permute.xlu1 %3293 }
 0x58c   : > { %3296 = vst [vmem:[#allocation5] sm:$0xff] %v3294_v56 }
 0x58d PF: > { %s6825_s23 = sadd.s32 4294967295, %s4601_s14   ;;  %s4647_s26 = smov [#allocation5]  }
 0x58e   : > { %p6601_p7 = scmp.eq.s32.totalorder %s6825_s23, 2  ;;  %s3306_s17 = sshll.u32 %s4647_s26, 4  ;;  %s3307_s17 = int_to_ptr.vmem [resolvable:$true] %s3306_s17 }
 0x58f   : > { %s4495_s16 = scalar_lea.vmem %s3307_s17, 128  ;;  %p4502_p11 = scmp.lt.s32.totalorder %s3307_s17, %s3307_s17 }
 0x590   : > { %p4496_p8 = scmp.ne.s32.totalorder %s3307_s17, %s4495_s16  ;;  %p4503_p12 = scmp.lt.s32.totalorder %s4495_s16, %s4495_s16 }
 0x592   : > { %p4497_p9 = pnand %p4496_p8, %p6601_p7  ;;  %p4504_p13 = por %p4503_p12, %p4502_p11 }
 0x594   : > { %p4498_p10 = pneg %p4497_p9 }
 0x596   : > { %p4505_p0 = pnand %p4504_p13, %p4498_p10 }
 0x598   : > { %4508 = shalt.err (!%p4505_p0)
}
 0x599   : > { %s6827_s21 = sld [smem:[#allocation37_spill]] }
 0x59f   : > { %4361 = dma.vmem_to_hbm [thread:$0]  (%p6601_p7), %s3307_s17, 128, %s6827_s21, [#allocation6]  }
 0x5a0   : > { %4580 = dma.done.wait (%p6601_p7), [#allocation6], 128  }
 0x5a1   : > { %4582 = vsyncadd (%p6601_p7), [#allocation6], 4294967168 }
 0x5a2 PF: > { %s26_s14 = sadd.s32 1, %s4601_s14   ;;  %s6828_s27 = sld [smem:[#allocation8_spill]] }
 0x5a3   : > { %p23_p1 = scmp.ge.s32.totalorder %s26_s14, 5   ;;  %s6829_s28 = sld [smem:[#allocation11_spill]] }
 0x5a4   : > { %s6830_s29 = sld [smem:[#allocation9_spill]] }
 0x5a5   : > { %s6831_s30 = sld [smem:[#allocation10_spill]]  ;;  %25 = sbr.rel (!%p23_p1) target bundleno = 6 (0x6), region = 232 }
 0x5aa   :  { %3319 = vsyncpa [#allocation6], 1 }
 0x5ab   :  { %3321 = vsyncpa [#allocation6 + $0x1], 1 }

</bundles_post_ra>
